<compile_context>
chip_gen: v7x
topology: tpu7x:2x2x1
jax: 0.10.0
libtpu: 0.0.40
codegen_flags: <defaults>
</compile_context>

<pallas_src>
import numpy as np
import jax
import jax.numpy as jnp
from jax import lax
from jax.experimental import pallas as pl
from jax.experimental.pallas import tpu as pltpu


_LP = 128  # lane-aligned left zero halo of the flattened, packed activation


def _ceil8(n):
    return -(-n // 8) * 8


# ----------------------------------------------------------------------------
# Host-side packing of weights / tiny 0-1 constant matrices (done once)
# ----------------------------------------------------------------------------
def _pack_conv_w(w, cin_p, cout_p):
    # (Cout, Cin, 3, 3) -> (Cout_p, 9*Cin_p); column = (ki*3+kj)*Cin_p + ci
    w = np.asarray(w, np.float32)
    cout, cin, kh, kw = w.shape
    wt = np.transpose(w, (0, 2, 3, 1)).reshape(cout, kh * kw, cin)
    wp = np.zeros((cout_p, kh * kw, cin_p), np.float32)
    wp[:cout, :, :cin] = wt
    return wp.reshape(cout_p, kh * kw * cin_p)


def _pack_deconv_w(w, cin_p, cout_p):
    # (Cin, Cout, 2, 2) -> (4*Cout_p, Cin_p); row = (2p+q)*Cout_p + co
    w = np.asarray(w, np.float32)
    cin, cout = w.shape[:2]
    wt = np.transpose(w, (2, 3, 1, 0))                 # (2, 2, Cout, Cin)
    wp = np.zeros((2, 2, cout_p, cin_p), np.float32)
    wp[:, :, :cout, :cin] = wt
    return wp.reshape(4 * cout_p, cin_p)


def _pad_bias(b, cp):
    b = np.asarray(b, np.float32).reshape(-1)
    return np.pad(b, (0, cp - b.shape[0])).reshape(cp, 1)


def _conv_tap_masks(h, w, nb):
    # (9, nb*h*w): mask[tap, pos] = 1 iff the (ki-1, kj-1)-shifted read for the
    # image at pos stays inside that image (handles conv zero padding AND the
    # row/image wrap of the flat contiguous layout).
    i, j = np.meshgrid(np.arange(h), np.arange(w), indexing="ij")
    m = np.zeros((9, h * w), np.float32)
    for ki in range(3):
        for kj in range(3):
            ok = ((i + ki - 1 >= 0) & (i + ki - 1 < h) &
                  (j + kj - 1 >= 0) & (j + kj - 1 < w))
            m[ki * 3 + kj] = ok.ravel().astype(np.float32)
    return np.tile(m, (1, nb))


def _pool_selector(h, w, nb):
    # ONE compaction matrix (nb*h*w, nb*h*w/4): picks position (2ip, 2jp) of
    # each image (where the 2x2 window max has been pre-computed on the VPU).
    hw, h2, w2 = h * w, h // 2, w // 2
    hw4 = h2 * w2
    sel = np.zeros((nb * hw, nb * hw4), np.float32)
    ip, jp = np.meshgrid(np.arange(h2), np.arange(w2), indexing="ij")
    src = ((2 * ip) * w + 2 * jp).ravel()
    dst = (ip * w2 + jp).ravel()
    for b in range(nb):
        sel[b * hw + src, b * hw4 + dst] = 1.0
    return sel


def _deconv_placers(h, w, nb):
    # plc[t]: (nb*h*w, nb*4*h*w); t = 2p+q scatters (b, i, j) -> (b, 2i+p, 2j+q)
    hw, wo, hwo = h * w, 2 * w, 4 * h * w
    plc = np.zeros((4, nb * hw, nb * hwo), np.float32)
    i, j = np.meshgrid(np.arange(h), np.arange(w), indexing="ij")
    src = (i * w + j).ravel()
    for p in (0, 1):
        for q in (0, 1):
            t = 2 * p + q
            dst = ((2 * i + p) * wo + (2 * j + q)).ravel()
            for b in range(nb):
                plc[t, b * hw + src, b * hwo + dst] = 1.0
    return plc


# ----------------------------------------------------------------------------
# Builder: packs constants once and returns a jitted forward(x) callable
# ----------------------------------------------------------------------------
def build_cnn_autoencoder_forward(params, input_shape, images_per_block=None):
    conv_params, deconv_params = params
    N, C0, H0, W0 = input_shape
    if images_per_block is None:
        # keep grid >= 2 when possible (both TensorCores busy on v7x)
        images_per_block = N // 2 if (N >= 2 and N % 2 == 0) else 1
    nb = images_per_block
    assert N % nb == 0, "batch must be divisible by images_per_block"
    G = N // nb
    HW0 = H0 * W0
    C0p = _ceil8(C0)

    # ---- per-layer metadata + packed constant operands ----------------------
    conv_meta, deconv_meta, operands = [], [], []
    Cp, H, W = C0p, H0, W0
    for (w, b) in conv_params:
        w = np.asarray(w, np.float32)
        assert w.shape[2:] == (3, 3), "kernel assumes 3x3 convs, padding=1"
        assert H % 2 == 0 and W % 2 == 0, "kernel assumes maxpool(2)"
        cout = int(w.shape[0])
        cin_p, cout_p = Cp, _ceil8(cout)
        conv_meta.append((cin_p, cout_p, H, W))
        operands += [
            jnp.asarray(_pack_conv_w(w, cin_p, cout_p)),       # (Cout_p, 9Cin_p)
            jnp.asarray(_pad_bias(b, cout_p)),                 # (Cout_p, 1)
            jnp.asarray(_conv_tap_masks(H, W, nb)),            # (9, nb*HW)
            jnp.asarray(_pool_selector(H, W, nb)),             # (nb*HW, nb*HW/4)
        ]
        Cp, H, W = cout_p, H // 2, W // 2
    for (w, b) in deconv_params:
        w = np.asarray(w, np.float32)
        assert w.shape[2:] == (2, 2), "kernel assumes 2x2 stride-2 deconvs"
        cout = int(w.shape[1])
        cin_p, cout_p = Cp, _ceil8(cout)
        deconv_meta.append((cin_p, cout_p, H, W))
        operands += [
            jnp.asarray(_pack_deconv_w(w, cin_p, cout_p)),     # (4Cout_p, Cin_p)
            jnp.asarray(_pad_bias(b, cout_p)),                 # (Cout_p, 1)
            jnp.asarray(_deconv_placers(H, W, nb)),            # (4, nbHW, nb4HW)
        ]
        Cp, H, W = cout_p, 2 * H, 2 * W
    assert (H, W) == (H0, W0) and Cp == C0p, "autoencoder must restore shape"

    n_conv, n_dec = len(conv_meta), len(deconv_meta)

    # ------------------------------- kernel ----------------------------------
    def kernel(*refs):
        x_ref = refs[0]
        idx = 1
        conv_refs = []
        for _ in range(n_conv):
            conv_refs.append(refs[idx:idx + 4]); idx += 4
        dec_refs = []
        for _ in range(n_dec):
            dec_refs.append(refs[idx:idx + 3]); idx += 3
        o_ref = refs[idx]
        scratch = refs[idx + 1:]

        a = x_ref[0, :, :]                       # (C0p, nb*H0*W0), lane-dense

        # -------- encoder: conv3x3(pad=1) -> (pool -> +bias -> ReLU) ---------
        for li in range(n_conv):
            cin_p, cout_p, h, w = conv_meta[li]
            L = nb * h * w
            w_ref, b_ref, m_ref, sel_ref = conv_refs[li]
            pad_scr, patch_scr, pool_scr = scratch[3 * li:3 * li + 3]

            # only halo/tail need zeros; interior is fully overwritten each step
            pad_scr[:, 0:_LP] = jnp.zeros((cin_p, _LP), jnp.float32)
            pad_scr[:, _LP + L:_LP + L + 128] = jnp.zeros((cin_p, 128),
                                                          jnp.float32)
            pad_scr[:, _LP:_LP + L] = a

            # im2col: 9 statically shifted slices * per-tap boundary masks
            for ki in range(3):
                for kj in range(3):
                    t = ki * 3 + kj
                    s = _LP + (ki - 1) * w + (kj - 1)
                    patch_scr[t * cin_p:(t + 1) * cin_p, :] = (
                        pad_scr[:, s:s + L] * m_ref[t:t + 1, :])

            # conv = ONE MXU matmul: (Cout_p, 9*Cin_p) @ (9*Cin_p, nb*HW)
            y = jnp.dot(w_ref[...], patch_scr[...],
                        preferred_element_type=jnp.float32)

            # 2x2 max-pool: two VPU pairwise maxes over lane-shifted slices,
            # then ONE compaction matmul (bias+ReLU after pool: they commute).
            pool_scr[:, L:L + 128] = jnp.zeros((cout_p, 128), jnp.float32)
            pool_scr[:, 0:L] = y
            hmax = jnp.maximum(y, pool_scr[:, 1:1 + L])        # max over cols
            pool_scr[:, 0:L] = hmax
            vmax = jnp.maximum(hmax, pool_scr[:, w:w + L])     # max over rows
            pooled = jnp.dot(vmax, sel_ref[...],
                             preferred_element_type=jnp.float32)
            a = jnp.maximum(pooled + b_ref[...], 0.0)          # (Cout_p, L/4)

        # -------- decoder: ConvTranspose2d(k=2, s=2) -> ReLU / sigmoid -------
        for li in range(n_dec):
            cin_p, cout_p, h, w = deconv_meta[li]
            dm_ref, b_ref, plc_ref = dec_refs[li]

            # all 4 deconv taps in ONE matmul: (4*Cout_p, Cin_p) @ (Cin_p, L)
            v_all = jnp.dot(dm_ref[...], a, preferred_element_type=jnp.float32)
            out = None
            for t in range(4):                                  # (p, q) taps
                placed = jnp.dot(v_all[t * cout_p:(t + 1) * cout_p, :],
                                 plc_ref[t],
                                 preferred_element_type=jnp.float32)
                out = placed if out is None else out + placed   # (Cout_p, 4L)
            out = out + b_ref[...]
            if li != n_dec - 1:
                a = jnp.maximum(out, 0.0)                       # ReLU
            else:
                # exact sigmoid (approx=True would use the EUP vrcp but can
                # exceed the 1e-4 parity tolerance)
                a = pl.reciprocal(1.0 + jnp.exp(-out))

        o_ref[0, :, :] = a          # full 8-sublane, 128k-lane dense store

    # ------------------------------- specs -----------------------------------
    def _const_spec(arr):
        zeros = (0,) * arr.ndim
        return pl.BlockSpec(arr.shape, lambda g: zeros)

    in_specs = [pl.BlockSpec((1, C0p, nb * HW0), lambda g: (g, 0, 0))]
    in_specs += [_const_spec(op) for op in operands]

    scratch_shapes = []
    for (cin_p, cout_p, h, w) in conv_meta:
        L = nb * h * w
        scratch_shapes += [
            pltpu.VMEM((cin_p, _LP + L + 128), jnp.float32),   # padded act
            pltpu.VMEM((9 * cin_p, L), jnp.float32),           # im2col patch
            pltpu.VMEM((cout_p, L + 128), jnp.float32),        # pool staging
        ]

    fwd = pl.pallas_call(
        kernel,
        out_shape=jax.ShapeDtypeStruct((G, C0p, nb * HW0), jnp.float32),
        grid=(G,),
        in_specs=in_specs,
        out_specs=pl.BlockSpec((1, C0p, nb * HW0), lambda g: (g, 0, 0)),
        scratch_shapes=scratch_shapes,
        compiler_params=pltpu.CompilerParams(
            dimension_semantics=("parallel",)),                # both TCs on v7x
    )

    @jax.jit
    def forward(x):
        x = x.astype(jnp.float32)
        x = jnp.pad(x, ((0, 0), (0, C0p - C0), (0, 0), (0, 0)))
        x = x.reshape(G, nb, C0p, HW0).transpose(0, 2, 1, 3)
        x = x.reshape(G, C0p, nb * HW0)
        y = fwd(x, *operands)
        y = y.reshape(G, C0p, nb, HW0).transpose(0, 2, 1, 3)
        y = y.reshape(N, C0p, H0, W0)
        return y[:, :C0]

    return forward


def cnn_autoencoder_forward(x, params, images_per_block=None):
    """Convenience wrapper (packs constants per call; prefer the builder)."""
    return build_cnn_autoencoder_forward(params, x.shape, images_per_block)(x)


# ----------------------------------------------------------------------------
# Pure-JAX reference (correctness check only)
# ----------------------------------------------------------------------------
def reference_forward(x, params):
    conv_params, deconv_params = params
    for (w, b) in conv_params:
        y = lax.conv_general_dilated(
            x, w, window_strides=(1, 1), padding=((1, 1), (1, 1)),
            dimension_numbers=("NCHW", "OIHW", "NCHW"),
            precision=lax.Precision.HIGHEST)
        y = jnp.maximum(y + b[None, :, None, None], 0.0)
        N, C, H, W = y.shape
        x = y.reshape(N, C, H // 2, 2, W // 2, 2).max(axis=(3, 5))
    for i, (w, b) in enumerate(deconv_params):
        N, Cin, H, W = x.shape
        Cout = w.shape[1]
        out = jnp.zeros((N, Cout, 2 * H, 2 * W), x.dtype)
        for p in range(2):
            for q in range(2):
                contrib = jnp.einsum("ncij,cd->ndij", x, w[:, :, p, q],
                                     precision=lax.Precision.HIGHEST)
                out = out.at[:, :, p::2, q::2].set(contrib)
        out = out + b[None, :, None, None]
        if i != len(deconv_params) - 1:
            x = jnp.maximum(out, 0.0)
        else:
            x = 1.0 / (1.0 + jnp.exp(-out))
    return x


def init_params(key, channel_maps, kernel_size=3):
    conv_params, deconv_params = [], []
    rev = list(reversed(channel_maps))
    for i in range(len(channel_maps) - 1):
        cin, cout = channel_maps[i], channel_maps[i + 1]
        key, k1, k2 = jax.random.split(key, 3)
        bound = 1.0 / np.sqrt(cin * kernel_size * kernel_size)
        w = jax.random.uniform(k1, (cout, cin, kernel_size, kernel_size),
                               jnp.float32, -bound, bound)
        bb = jax.random.uniform(k2, (cout,), jnp.float32, -bound, bound)
        conv_params.append((w, bb))
    for i in range(len(rev) - 1):
        cin, cout = rev[i], rev[i + 1]
        key, k1, k2 = jax.random.split(key, 3)
        bound = 1.0 / np.sqrt(cin * 2 * 2)
        w = jax.random.uniform(k1, (cin, cout, 2, 2), jnp.float32, -bound, bound)
        bb = jax.random.uniform(k2, (cout,), jnp.float32, -bound, bound)
        deconv_params.append((w, bb))
    return conv_params, deconv_params


if __name__ == "__main__":
    # Module config: channel_maps=[4, 8, 16], kernel=3, pad=1, scale=2,
    # num_channels=4, img 16x16.  Batch=4 so 2 images fold per grid step and
    # the grid still has 2 "parallel" steps.
    channel_maps = [4, 8, 16]
    N, H, W = 4, 16, 16

    key = jax.random.PRNGKey(0)
    key, kx, kp = jax.random.split(key, 3)
    x = jax.random.uniform(kx, (N, channel_maps[0], H, W), jnp.float32)
    params = init_params(kp, channel_maps)

    # constants are packed once here; the returned forward is jitted
    forward = build_cnn_autoencoder_forward(params, x.shape)
    y = jax.block_until_ready(forward(x))

    y_ref = reference_forward(x, params)
    np.testing.assert_allclose(np.asarray(y), np.asarray(y_ref),
                               rtol=1e-4, atol=1e-4)
    assert y.shape == x.shape and y.dtype == jnp.float32

    # TODO(synk): errors/predict/fit/set_optimal_threshold/save/load (BCELoss
    # training + histogram thresholding + I/O) are not part of forward() and
    # are not translated.
    print("KERNEL_OK")
</pallas_src>

<mosaic_0001>
module attributes {stable_mosaic.version = 11 : i64} {
  func.func @kernel(%arg0: i32, %arg1: memref<1x8x512xf32, #tpu.memory_space<vmem>>, %arg2: memref<8x72xf32, #tpu.memory_space<vmem>>, %arg3: memref<8x1xf32, #tpu.memory_space<vmem>>, %arg4: memref<9x512xf32, #tpu.memory_space<vmem>>, %arg5: memref<512x128xf32, #tpu.memory_space<vmem>>, %arg6: memref<16x72xf32, #tpu.memory_space<vmem>>, %arg7: memref<16x1xf32, #tpu.memory_space<vmem>>, %arg8: memref<9x128xf32, #tpu.memory_space<vmem>>, %arg9: memref<128x32xf32, #tpu.memory_space<vmem>>, %arg10: memref<32x16xf32, #tpu.memory_space<vmem>>, %arg11: memref<8x1xf32, #tpu.memory_space<vmem>>, %arg12: memref<4x32x128xf32, #tpu.memory_space<vmem>>, %arg13: memref<32x8xf32, #tpu.memory_space<vmem>>, %arg14: memref<8x1xf32, #tpu.memory_space<vmem>>, %arg15: memref<4x128x512xf32, #tpu.memory_space<vmem>>, %arg16: memref<1x8x512xf32, #tpu.memory_space<vmem>>, %arg17: memref<8x768xf32, #tpu.memory_space<vmem>>, %arg18: memref<72x512xf32, #tpu.memory_space<vmem>>, %arg19: memref<8x640xf32, #tpu.memory_space<vmem>>, %arg20: memref<8x384xf32, #tpu.memory_space<vmem>>, %arg21: memref<72x128xf32, #tpu.memory_space<vmem>>, %arg22: memref<16x256xf32, #tpu.memory_space<vmem>>) attributes {dimension_semantics = [#tpu.dimension_semantics<parallel>], iteration_bounds = array<i64: 2>, scalar_prefetch = 0 : i64, scratch_operands = 6 : i64, tpu.core_type = #tpu.core_type<tc>, window_params = [{transform_indices = @transform_0, window_bounds = array<i64: 1, 8, 512>}, {pipeline_mode = #tpu.pipeline_mode<synchronous>, transform_indices = @transform_1, window_bounds = array<i64: 8, 72>}, {pipeline_mode = #tpu.pipeline_mode<synchronous>, transform_indices = @transform_2, window_bounds = array<i64: 8, 1>}, {pipeline_mode = #tpu.pipeline_mode<synchronous>, transform_indices = @transform_3, window_bounds = array<i64: 9, 512>}, {pipeline_mode = #tpu.pipeline_mode<synchronous>, transform_indices = @transform_4, window_bounds = array<i64: 512, 128>}, {pipeline_mode = #tpu.pipeline_mode<synchronous>, transform_indices = @transform_5, window_bounds = array<i64: 16, 72>}, {pipeline_mode = #tpu.pipeline_mode<synchronous>, transform_indices = @transform_6, window_bounds = array<i64: 16, 1>}, {pipeline_mode = #tpu.pipeline_mode<synchronous>, transform_indices = @transform_7, window_bounds = array<i64: 9, 128>}, {pipeline_mode = #tpu.pipeline_mode<synchronous>, transform_indices = @transform_8, window_bounds = array<i64: 128, 32>}, {pipeline_mode = #tpu.pipeline_mode<synchronous>, transform_indices = @transform_9, window_bounds = array<i64: 32, 16>}, {pipeline_mode = #tpu.pipeline_mode<synchronous>, transform_indices = @transform_10, window_bounds = array<i64: 8, 1>}, {pipeline_mode = #tpu.pipeline_mode<synchronous>, transform_indices = @transform_11, window_bounds = array<i64: 4, 32, 128>}, {pipeline_mode = #tpu.pipeline_mode<synchronous>, transform_indices = @transform_12, window_bounds = array<i64: 32, 8>}, {pipeline_mode = #tpu.pipeline_mode<synchronous>, transform_indices = @transform_13, window_bounds = array<i64: 8, 1>}, {pipeline_mode = #tpu.pipeline_mode<synchronous>, transform_indices = @transform_14, window_bounds = array<i64: 4, 128, 512>}, {transform_indices = @transform_15, window_bounds = array<i64: 1, 8, 512>}]} {
    %c0 = arith.constant 0 : index
    %c0_0 = arith.constant 0 : index
    %c0_1 = arith.constant 0 : index
    %0 = vector.load %arg1[%c0, %c0_0, %c0_1] : memref<1x8x512xf32, #tpu.memory_space<vmem>>, vector<1x8x512xf32>
    %1 = vector.shape_cast %0 : vector<1x8x512xf32> to vector<8x512xf32>
    %cst = arith.constant 0.000000e+00 : f32
    %2 = vector.broadcast %cst : f32 to vector<8x128xf32>
    %c0_2 = arith.constant 0 : index
    %c0_3 = arith.constant 0 : index
    %3 = vector.load %arg17[%c0_2, %c0_3] : memref<8x768xf32, #tpu.memory_space<vmem>>, vector<8x128xf32>
    tpu.vector_store %arg17[%c0_2, %c0_3], %2 {strides = array<i32>} : memref<8x768xf32, #tpu.memory_space<vmem>>, vector<8x128xf32>,
    %cst_4 = arith.constant 0.000000e+00 : f32
    %4 = vector.broadcast %cst_4 : f32 to vector<8x128xf32>
    %c0_5 = arith.constant 0 : index
    %c640 = arith.constant 640 : index
    %5 = vector.load %arg17[%c0_5, %c640] : memref<8x768xf32, #tpu.memory_space<vmem>>, vector<8x128xf32>
    tpu.vector_store %arg17[%c0_5, %c640], %4 {strides = array<i32>} : memref<8x768xf32, #tpu.memory_space<vmem>>, vector<8x128xf32>,
    %c0_6 = arith.constant 0 : index
    %c128 = arith.constant 128 : index
    %6 = vector.load %arg17[%c0_6, %c128] : memref<8x768xf32, #tpu.memory_space<vmem>>, vector<8x512xf32>
    tpu.vector_store %arg17[%c0_6, %c128], %1 {strides = array<i32>} : memref<8x768xf32, #tpu.memory_space<vmem>>, vector<8x512xf32>,
    %c0_7 = arith.constant 0 : index
    %c111 = arith.constant 111 : index
    %7 = vector.load %arg17[%c0_7, %c111] : memref<8x768xf32, #tpu.memory_space<vmem>>, vector<8x512xf32>
    %c0_8 = arith.constant 0 : index
    %c0_9 = arith.constant 0 : index
    %8 = vector.load %arg4[%c0_8, %c0_9] : memref<9x512xf32, #tpu.memory_space<vmem>>, vector<1x512xf32>
    %9 = vector.broadcast %8 : vector<1x512xf32> to vector<8x512xf32>
    %10 = arith.mulf %7, %9 : vector<8x512xf32>
    %c0_10 = arith.constant 0 : index
    %c0_11 = arith.constant 0 : index
    %11 = vector.load %arg18[%c0_10, %c0_11] : memref<72x512xf32, #tpu.memory_space<vmem>>, vector<8x512xf32>
    tpu.vector_store %arg18[%c0_10, %c0_11], %10 {strides = array<i32>} : memref<72x512xf32, #tpu.memory_space<vmem>>, vector<8x512xf32>,
    %c0_12 = arith.constant 0 : index
    %c112 = arith.constant 112 : index
    %12 = vector.load %arg17[%c0_12, %c112] : memref<8x768xf32, #tpu.memory_space<vmem>>, vector<8x512xf32>
    %c1 = arith.constant 1 : index
    %c0_13 = arith.constant 0 : index
    %13 = vector.load %arg4[%c1, %c0_13] : memref<9x512xf32, #tpu.memory_space<vmem>>, vector<1x512xf32>
    %14 = vector.broadcast %13 : vector<1x512xf32> to vector<8x512xf32>
    %15 = arith.mulf %12, %14 : vector<8x512xf32>
    %c8 = arith.constant 8 : index
    %c0_14 = arith.constant 0 : index
    %16 = vector.load %arg18[%c8, %c0_14] : memref<72x512xf32, #tpu.memory_space<vmem>>, vector<8x512xf32>
    tpu.vector_store %arg18[%c8, %c0_14], %15 {strides = array<i32>} : memref<72x512xf32, #tpu.memory_space<vmem>>, vector<8x512xf32>,
    %c0_15 = arith.constant 0 : index
    %c113 = arith.constant 113 : index
    %17 = vector.load %arg17[%c0_15, %c113] : memref<8x768xf32, #tpu.memory_space<vmem>>, vector<8x512xf32>
    %c2 = arith.constant 2 : index
    %c0_16 = arith.constant 0 : index
    %18 = vector.load %arg4[%c2, %c0_16] : memref<9x512xf32, #tpu.memory_space<vmem>>, vector<1x512xf32>
    %19 = vector.broadcast %18 : vector<1x512xf32> to vector<8x512xf32>
    %20 = arith.mulf %17, %19 : vector<8x512xf32>
    %c16 = arith.constant 16 : index
    %c0_17 = arith.constant 0 : index
    %21 = vector.load %arg18[%c16, %c0_17] : memref<72x512xf32, #tpu.memory_space<vmem>>, vector<8x512xf32>
    tpu.vector_store %arg18[%c16, %c0_17], %20 {strides = array<i32>} : memref<72x512xf32, #tpu.memory_space<vmem>>, vector<8x512xf32>,
    %c0_18 = arith.constant 0 : index
    %c127 = arith.constant 127 : index
    %22 = vector.load %arg17[%c0_18, %c127] : memref<8x768xf32, #tpu.memory_space<vmem>>, vector<8x512xf32>
    %c3 = arith.constant 3 : index
    %c0_19 = arith.constant 0 : index
    %23 = vector.load %arg4[%c3, %c0_19] : memref<9x512xf32, #tpu.memory_space<vmem>>, vector<1x512xf32>
    %24 = vector.broadcast %23 : vector<1x512xf32> to vector<8x512xf32>
    %25 = arith.mulf %22, %24 : vector<8x512xf32>
    %c24 = arith.constant 24 : index
    %c0_20 = arith.constant 0 : index
    %26 = vector.load %arg18[%c24, %c0_20] : memref<72x512xf32, #tpu.memory_space<vmem>>, vector<8x512xf32>
    tpu.vector_store %arg18[%c24, %c0_20], %25 {strides = array<i32>} : memref<72x512xf32, #tpu.memory_space<vmem>>, vector<8x512xf32>,
    %c0_21 = arith.constant 0 : index
    %c128_22 = arith.constant 128 : index
    %27 = vector.load %arg17[%c0_21, %c128_22] : memref<8x768xf32, #tpu.memory_space<vmem>>, vector<8x512xf32>
    %c4 = arith.constant 4 : index
    %c0_23 = arith.constant 0 : index
    %28 = vector.load %arg4[%c4, %c0_23] : memref<9x512xf32, #tpu.memory_space<vmem>>, vector<1x512xf32>
    %29 = vector.broadcast %28 : vector<1x512xf32> to vector<8x512xf32>
    %30 = arith.mulf %27, %29 : vector<8x512xf32>
    %c32 = arith.constant 32 : index
    %c0_24 = arith.constant 0 : index
    %31 = vector.load %arg18[%c32, %c0_24] : memref<72x512xf32, #tpu.memory_space<vmem>>, vector<8x512xf32>
    tpu.vector_store %arg18[%c32, %c0_24], %30 {strides = array<i32>} : memref<72x512xf32, #tpu.memory_space<vmem>>, vector<8x512xf32>,
    %c0_25 = arith.constant 0 : index
    %c129 = arith.constant 129 : index
    %32 = vector.load %arg17[%c0_25, %c129] : memref<8x768xf32, #tpu.memory_space<vmem>>, vector<8x512xf32>
    %c5 = arith.constant 5 : index
    %c0_26 = arith.constant 0 : index
    %33 = vector.load %arg4[%c5, %c0_26] : memref<9x512xf32, #tpu.memory_space<vmem>>, vector<1x512xf32>
    %34 = vector.broadcast %33 : vector<1x512xf32> to vector<8x512xf32>
    %35 = arith.mulf %32, %34 : vector<8x512xf32>
    %c40 = arith.constant 40 : index
    %c0_27 = arith.constant 0 : index
    %36 = vector.load %arg18[%c40, %c0_27] : memref<72x512xf32, #tpu.memory_space<vmem>>, vector<8x512xf32>
    tpu.vector_store %arg18[%c40, %c0_27], %35 {strides = array<i32>} : memref<72x512xf32, #tpu.memory_space<vmem>>, vector<8x512xf32>,
    %c0_28 = arith.constant 0 : index
    %c143 = arith.constant 143 : index
    %37 = vector.load %arg17[%c0_28, %c143] : memref<8x768xf32, #tpu.memory_space<vmem>>, vector<8x512xf32>
    %c6 = arith.constant 6 : index
    %c0_29 = arith.constant 0 : index
    %38 = vector.load %arg4[%c6, %c0_29] : memref<9x512xf32, #tpu.memory_space<vmem>>, vector<1x512xf32>
    %39 = vector.broadcast %38 : vector<1x512xf32> to vector<8x512xf32>
    %40 = arith.mulf %37, %39 : vector<8x512xf32>
    %c48 = arith.constant 48 : index
    %c0_30 = arith.constant 0 : index
    %41 = vector.load %arg18[%c48, %c0_30] : memref<72x512xf32, #tpu.memory_space<vmem>>, vector<8x512xf32>
    tpu.vector_store %arg18[%c48, %c0_30], %40 {strides = array<i32>} : memref<72x512xf32, #tpu.memory_space<vmem>>, vector<8x512xf32>,
    %c0_31 = arith.constant 0 : index
    %c144 = arith.constant 144 : index
    %42 = vector.load %arg17[%c0_31, %c144] : memref<8x768xf32, #tpu.memory_space<vmem>>, vector<8x512xf32>
    %c7 = arith.constant 7 : index
    %c0_32 = arith.constant 0 : index
    %43 = vector.load %arg4[%c7, %c0_32] : memref<9x512xf32, #tpu.memory_space<vmem>>, vector<1x512xf32>
    %44 = vector.broadcast %43 : vector<1x512xf32> to vector<8x512xf32>
    %45 = arith.mulf %42, %44 : vector<8x512xf32>
    %c56 = arith.constant 56 : index
    %c0_33 = arith.constant 0 : index
    %46 = vector.load %arg18[%c56, %c0_33] : memref<72x512xf32, #tpu.memory_space<vmem>>, vector<8x512xf32>
    tpu.vector_store %arg18[%c56, %c0_33], %45 {strides = array<i32>} : memref<72x512xf32, #tpu.memory_space<vmem>>, vector<8x512xf32>,
    %c0_34 = arith.constant 0 : index
    %c145 = arith.constant 145 : index
    %47 = vector.load %arg17[%c0_34, %c145] : memref<8x768xf32, #tpu.memory_space<vmem>>, vector<8x512xf32>
    %c8_35 = arith.constant 8 : index
    %c0_36 = arith.constant 0 : index
    %48 = vector.load %arg4[%c8_35, %c0_36] : memref<9x512xf32, #tpu.memory_space<vmem>>, vector<1x512xf32>
    %49 = vector.broadcast %48 : vector<1x512xf32> to vector<8x512xf32>
    %50 = arith.mulf %47, %49 : vector<8x512xf32>
    %c64 = arith.constant 64 : index
    %c0_37 = arith.constant 0 : index
    %51 = vector.load %arg18[%c64, %c0_37] : memref<72x512xf32, #tpu.memory_space<vmem>>, vector<8x512xf32>
    tpu.vector_store %arg18[%c64, %c0_37], %50 {strides = array<i32>} : memref<72x512xf32, #tpu.memory_space<vmem>>, vector<8x512xf32>,
    %c0_38 = arith.constant 0 : index
    %c0_39 = arith.constant 0 : index
    %52 = vector.load %arg2[%c0_38, %c0_39] : memref<8x72xf32, #tpu.memory_space<vmem>>, vector<8x72xf32>
    %c0_40 = arith.constant 0 : index
    %c0_41 = arith.constant 0 : index
    %53 = vector.load %arg18[%c0_40, %c0_41] : memref<72x512xf32, #tpu.memory_space<vmem>>, vector<72x512xf32>
    %cst_42 = arith.constant dense<0.000000e+00> : vector<8x512xf32>
    %54 = tpu.matmul %52, %53, %cst_42 {dimension_numbers = #tpu.dot_dimension_numbers<[1], [0], [0], [1], [0, 0, 1, 1], [], []>} : vector<8x72xf32>, vector<72x512xf32>, vector<8x512xf32> -> vector<8x512xf32>
    %cst_43 = arith.constant 0.000000e+00 : f32
    %55 = vector.broadcast %cst_43 : f32 to vector<8x128xf32>
    %c0_44 = arith.constant 0 : index
    %c512 = arith.constant 512 : index
    %56 = vector.load %arg19[%c0_44, %c512] : memref<8x640xf32, #tpu.memory_space<vmem>>, vector<8x128xf32>
    tpu.vector_store %arg19[%c0_44, %c512], %55 {strides = array<i32>} : memref<8x640xf32, #tpu.memory_space<vmem>>, vector<8x128xf32>,
    %c0_45 = arith.constant 0 : index
    %c0_46 = arith.constant 0 : index
    %57 = vector.load %arg19[%c0_45, %c0_46] : memref<8x640xf32, #tpu.memory_space<vmem>>, vector<8x512xf32>
    tpu.vector_store %arg19[%c0_45, %c0_46], %54 {strides = array<i32>} : memref<8x640xf32, #tpu.memory_space<vmem>>, vector<8x512xf32>,
    %c0_47 = arith.constant 0 : index
    %c1_48 = arith.constant 1 : index
    %58 = vector.load %arg19[%c0_47, %c1_48] : memref<8x640xf32, #tpu.memory_space<vmem>>, vector<8x512xf32>
    %59 = arith.maximumf %54, %58 : vector<8x512xf32>
    %c0_49 = arith.constant 0 : index
    %c0_50 = arith.constant 0 : index
    %60 = vector.load %arg19[%c0_49, %c0_50] : memref<8x640xf32, #tpu.memory_space<vmem>>, vector<8x512xf32>
    tpu.vector_store %arg19[%c0_49, %c0_50], %59 {strides = array<i32>} : memref<8x640xf32, #tpu.memory_space<vmem>>, vector<8x512xf32>,
    %c0_51 = arith.constant 0 : index
    %c16_52 = arith.constant 16 : index
    %61 = vector.load %arg19[%c0_51, %c16_52] : memref<8x640xf32, #tpu.memory_space<vmem>>, vector<8x512xf32>
    %62 = arith.maximumf %59, %61 : vector<8x512xf32>
    %c0_53 = arith.constant 0 : index
    %c0_54 = arith.constant 0 : index
    %63 = vector.load %arg5[%c0_53, %c0_54] : memref<512x128xf32, #tpu.memory_space<vmem>>, vector<512x128xf32>
    %cst_55 = arith.constant dense<0.000000e+00> : vector<8x128xf32>
    %64 = tpu.matmul %62, %63, %cst_55 {dimension_numbers = #tpu.dot_dimension_numbers<[1], [0], [0], [1], [0, 0, 1, 1], [], []>} : vector<8x512xf32>, vector<512x128xf32>, vector<8x128xf32> -> vector<8x128xf32>
    %c0_56 = arith.constant 0 : index
    %c0_57 = arith.constant 0 : index
    %65 = vector.load %arg3[%c0_56, %c0_57] : memref<8x1xf32, #tpu.memory_space<vmem>>, vector<8x1xf32>
    %66 = vector.broadcast %65 : vector<8x1xf32> to vector<8x128xf32>
    %67 = arith.addf %64, %66 : vector<8x128xf32>
    %cst_58 = arith.constant 0.000000e+00 : f32
    %68 = vector.broadcast %cst_58 : f32 to vector<8x128xf32>
    %69 = arith.maximumf %67, %68 : vector<8x128xf32>
    %cst_59 = arith.constant 0.000000e+00 : f32
    %70 = vector.broadcast %cst_59 : f32 to vector<8x128xf32>
    %c0_60 = arith.constant 0 : index
    %c0_61 = arith.constant 0 : index
    %71 = vector.load %arg20[%c0_60, %c0_61] : memref<8x384xf32, #tpu.memory_space<vmem>>, vector<8x128xf32>
    tpu.vector_store %arg20[%c0_60, %c0_61], %70 {strides = array<i32>} : memref<8x384xf32, #tpu.memory_space<vmem>>, vector<8x128xf32>,
    %cst_62 = arith.constant 0.000000e+00 : f32
    %72 = vector.broadcast %cst_62 : f32 to vector<8x128xf32>
    %c0_63 = arith.constant 0 : index
    %c256 = arith.constant 256 : index
    %73 = vector.load %arg20[%c0_63, %c256] : memref<8x384xf32, #tpu.memory_space<vmem>>, vector<8x128xf32>
    tpu.vector_store %arg20[%c0_63, %c256], %72 {strides = array<i32>} : memref<8x384xf32, #tpu.memory_space<vmem>>, vector<8x128xf32>,
    %c0_64 = arith.constant 0 : index
    %c128_65 = arith.constant 128 : index
    %74 = vector.load %arg20[%c0_64, %c128_65] : memref<8x384xf32, #tpu.memory_space<vmem>>, vector<8x128xf32>
    tpu.vector_store %arg20[%c0_64, %c128_65], %69 {strides = array<i32>} : memref<8x384xf32, #tpu.memory_space<vmem>>, vector<8x128xf32>,
    %c0_66 = arith.constant 0 : index
    %c119 = arith.constant 119 : index
    %75 = vector.load %arg20[%c0_66, %c119] : memref<8x384xf32, #tpu.memory_space<vmem>>, vector<8x128xf32>
    %c0_67 = arith.constant 0 : index
    %c0_68 = arith.constant 0 : index
    %76 = vector.load %arg8[%c0_67, %c0_68] : memref<9x128xf32, #tpu.memory_space<vmem>>, vector<1x128xf32>
    %77 = vector.broadcast %76 : vector<1x128xf32> to vector<8x128xf32>
    %78 = arith.mulf %75, %77 : vector<8x128xf32>
    %c0_69 = arith.constant 0 : index
    %c0_70 = arith.constant 0 : index
    %79 = vector.load %arg21[%c0_69, %c0_70] : memref<72x128xf32, #tpu.memory_space<vmem>>, vector<8x128xf32>
    tpu.vector_store %arg21[%c0_69, %c0_70], %78 {strides = array<i32>} : memref<72x128xf32, #tpu.memory_space<vmem>>, vector<8x128xf32>,
    %c0_71 = arith.constant 0 : index
    %c120 = arith.constant 120 : index
    %80 = vector.load %arg20[%c0_71, %c120] : memref<8x384xf32, #tpu.memory_space<vmem>>, vector<8x128xf32>
    %c1_72 = arith.constant 1 : index
    %c0_73 = arith.constant 0 : index
    %81 = vector.load %arg8[%c1_72, %c0_73] : memref<9x128xf32, #tpu.memory_space<vmem>>, vector<1x128xf32>
    %82 = vector.broadcast %81 : vector<1x128xf32> to vector<8x128xf32>
    %83 = arith.mulf %80, %82 : vector<8x128xf32>
    %c8_74 = arith.constant 8 : index
    %c0_75 = arith.constant 0 : index
    %84 = vector.load %arg21[%c8_74, %c0_75] : memref<72x128xf32, #tpu.memory_space<vmem>>, vector<8x128xf32>
    tpu.vector_store %arg21[%c8_74, %c0_75], %83 {strides = array<i32>} : memref<72x128xf32, #tpu.memory_space<vmem>>, vector<8x128xf32>,
    %c0_76 = arith.constant 0 : index
    %c121 = arith.constant 121 : index
    %85 = vector.load %arg20[%c0_76, %c121] : memref<8x384xf32, #tpu.memory_space<vmem>>, vector<8x128xf32>
    %c2_77 = arith.constant 2 : index
    %c0_78 = arith.constant 0 : index
    %86 = vector.load %arg8[%c2_77, %c0_78] : memref<9x128xf32, #tpu.memory_space<vmem>>, vector<1x128xf32>
    %87 = vector.broadcast %86 : vector<1x128xf32> to vector<8x128xf32>
    %88 = arith.mulf %85, %87 : vector<8x128xf32>
    %c16_79 = arith.constant 16 : index
    %c0_80 = arith.constant 0 : index
    %89 = vector.load %arg21[%c16_79, %c0_80] : memref<72x128xf32, #tpu.memory_space<vmem>>, vector<8x128xf32>
    tpu.vector_store %arg21[%c16_79, %c0_80], %88 {strides = array<i32>} : memref<72x128xf32, #tpu.memory_space<vmem>>, vector<8x128xf32>,
    %c0_81 = arith.constant 0 : index
    %c127_82 = arith.constant 127 : index
    %90 = vector.load %arg20[%c0_81, %c127_82] : memref<8x384xf32, #tpu.memory_space<vmem>>, vector<8x128xf32>
    %c3_83 = arith.constant 3 : index
    %c0_84 = arith.constant 0 : index
    %91 = vector.load %arg8[%c3_83, %c0_84] : memref<9x128xf32, #tpu.memory_space<vmem>>, vector<1x128xf32>
    %92 = vector.broadcast %91 : vector<1x128xf32> to vector<8x128xf32>
    %93 = arith.mulf %90, %92 : vector<8x128xf32>
    %c24_85 = arith.constant 24 : index
    %c0_86 = arith.constant 0 : index
    %94 = vector.load %arg21[%c24_85, %c0_86] : memref<72x128xf32, #tpu.memory_space<vmem>>, vector<8x128xf32>
    tpu.vector_store %arg21[%c24_85, %c0_86], %93 {strides = array<i32>} : memref<72x128xf32, #tpu.memory_space<vmem>>, vector<8x128xf32>,
    %c0_87 = arith.constant 0 : index
    %c128_88 = arith.constant 128 : index
    %95 = vector.load %arg20[%c0_87, %c128_88] : memref<8x384xf32, #tpu.memory_space<vmem>>, vector<8x128xf32>
    %c4_89 = arith.constant 4 : index
    %c0_90 = arith.constant 0 : index
    %96 = vector.load %arg8[%c4_89, %c0_90] : memref<9x128xf32, #tpu.memory_space<vmem>>, vector<1x128xf32>
    %97 = vector.broadcast %96 : vector<1x128xf32> to vector<8x128xf32>
    %98 = arith.mulf %95, %97 : vector<8x128xf32>
    %c32_91 = arith.constant 32 : index
    %c0_92 = arith.constant 0 : index
    %99 = vector.load %arg21[%c32_91, %c0_92] : memref<72x128xf32, #tpu.memory_space<vmem>>, vector<8x128xf32>
    tpu.vector_store %arg21[%c32_91, %c0_92], %98 {strides = array<i32>} : memref<72x128xf32, #tpu.memory_space<vmem>>, vector<8x128xf32>,
    %c0_93 = arith.constant 0 : index
    %c129_94 = arith.constant 129 : index
    %100 = vector.load %arg20[%c0_93, %c129_94] : memref<8x384xf32, #tpu.memory_space<vmem>>, vector<8x128xf32>
    %c5_95 = arith.constant 5 : index
    %c0_96 = arith.constant 0 : index
    %101 = vector.load %arg8[%c5_95, %c0_96] : memref<9x128xf32, #tpu.memory_space<vmem>>, vector<1x128xf32>
    %102 = vector.broadcast %101 : vector<1x128xf32> to vector<8x128xf32>
    %103 = arith.mulf %100, %102 : vector<8x128xf32>
    %c40_97 = arith.constant 40 : index
    %c0_98 = arith.constant 0 : index
    %104 = vector.load %arg21[%c40_97, %c0_98] : memref<72x128xf32, #tpu.memory_space<vmem>>, vector<8x128xf32>
    tpu.vector_store %arg21[%c40_97, %c0_98], %103 {strides = array<i32>} : memref<72x128xf32, #tpu.memory_space<vmem>>, vector<8x128xf32>,
    %c0_99 = arith.constant 0 : index
    %c135 = arith.constant 135 : index
    %105 = vector.load %arg20[%c0_99, %c135] : memref<8x384xf32, #tpu.memory_space<vmem>>, vector<8x128xf32>
    %c6_100 = arith.constant 6 : index
    %c0_101 = arith.constant 0 : index
    %106 = vector.load %arg8[%c6_100, %c0_101] : memref<9x128xf32, #tpu.memory_space<vmem>>, vector<1x128xf32>
    %107 = vector.broadcast %106 : vector<1x128xf32> to vector<8x128xf32>
    %108 = arith.mulf %105, %107 : vector<8x128xf32>
    %c48_102 = arith.constant 48 : index
    %c0_103 = arith.constant 0 : index
    %109 = vector.load %arg21[%c48_102, %c0_103] : memref<72x128xf32, #tpu.memory_space<vmem>>, vector<8x128xf32>
    tpu.vector_store %arg21[%c48_102, %c0_103], %108 {strides = array<i32>} : memref<72x128xf32, #tpu.memory_space<vmem>>, vector<8x128xf32>,
    %c0_104 = arith.constant 0 : index
    %c136 = arith.constant 136 : index
    %110 = vector.load %arg20[%c0_104, %c136] : memref<8x384xf32, #tpu.memory_space<vmem>>, vector<8x128xf32>
    %c7_105 = arith.constant 7 : index
    %c0_106 = arith.constant 0 : index
    %111 = vector.load %arg8[%c7_105, %c0_106] : memref<9x128xf32, #tpu.memory_space<vmem>>, vector<1x128xf32>
    %112 = vector.broadcast %111 : vector<1x128xf32> to vector<8x128xf32>
    %113 = arith.mulf %110, %112 : vector<8x128xf32>
    %c56_107 = arith.constant 56 : index
    %c0_108 = arith.constant 0 : index
    %114 = vector.load %arg21[%c56_107, %c0_108] : memref<72x128xf32, #tpu.memory_space<vmem>>, vector<8x128xf32>
    tpu.vector_store %arg21[%c56_107, %c0_108], %113 {strides = array<i32>} : memref<72x128xf32, #tpu.memory_space<vmem>>, vector<8x128xf32>,
    %c0_109 = arith.constant 0 : index
    %c137 = arith.constant 137 : index
    %115 = vector.load %arg20[%c0_109, %c137] : memref<8x384xf32, #tpu.memory_space<vmem>>, vector<8x128xf32>
    %c8_110 = arith.constant 8 : index
    %c0_111 = arith.constant 0 : index
    %116 = vector.load %arg8[%c8_110, %c0_111] : memref<9x128xf32, #tpu.memory_space<vmem>>, vector<1x128xf32>
    %117 = vector.broadcast %116 : vector<1x128xf32> to vector<8x128xf32>
    %118 = arith.mulf %115, %117 : vector<8x128xf32>
    %c64_112 = arith.constant 64 : index
    %c0_113 = arith.constant 0 : index
    %119 = vector.load %arg21[%c64_112, %c0_113] : memref<72x128xf32, #tpu.memory_space<vmem>>, vector<8x128xf32>
    tpu.vector_store %arg21[%c64_112, %c0_113], %118 {strides = array<i32>} : memref<72x128xf32, #tpu.memory_space<vmem>>, vector<8x128xf32>,
    %c0_114 = arith.constant 0 : index
    %c0_115 = arith.constant 0 : index
    %120 = vector.load %arg6[%c0_114, %c0_115] : memref<16x72xf32, #tpu.memory_space<vmem>>, vector<16x72xf32>
    %c0_116 = arith.constant 0 : index
    %c0_117 = arith.constant 0 : index
    %121 = vector.load %arg21[%c0_116, %c0_117] : memref<72x128xf32, #tpu.memory_space<vmem>>, vector<72x128xf32>
    %cst_118 = arith.constant dense<0.000000e+00> : vector<16x128xf32>
    %122 = tpu.matmul %120, %121, %cst_118 {dimension_numbers = #tpu.dot_dimension_numbers<[1], [0], [0], [1], [0, 0, 1, 1], [], []>} : vector<16x72xf32>, vector<72x128xf32>, vector<16x128xf32> -> vector<16x128xf32>
    %cst_119 = arith.constant 0.000000e+00 : f32
    %123 = vector.broadcast %cst_119 : f32 to vector<16x128xf32>
    %c0_120 = arith.constant 0 : index
    %c128_121 = arith.constant 128 : index
    %124 = vector.load %arg22[%c0_120, %c128_121] : memref<16x256xf32, #tpu.memory_space<vmem>>, vector<16x128xf32>
    tpu.vector_store %arg22[%c0_120, %c128_121], %123 {strides = array<i32>} : memref<16x256xf32, #tpu.memory_space<vmem>>, vector<16x128xf32>,
    %c0_122 = arith.constant 0 : index
    %c0_123 = arith.constant 0 : index
    %125 = vector.load %arg22[%c0_122, %c0_123] : memref<16x256xf32, #tpu.memory_space<vmem>>, vector<16x128xf32>
    tpu.vector_store %arg22[%c0_122, %c0_123], %122 {strides = array<i32>} : memref<16x256xf32, #tpu.memory_space<vmem>>, vector<16x128xf32>,
    %c0_124 = arith.constant 0 : index
    %c1_125 = arith.constant 1 : index
    %126 = vector.load %arg22[%c0_124, %c1_125] : memref<16x256xf32, #tpu.memory_space<vmem>>, vector<16x128xf32>
    %127 = arith.maximumf %122, %126 : vector<16x128xf32>
    %c0_126 = arith.constant 0 : index
    %c0_127 = arith.constant 0 : index
    %128 = vector.load %arg22[%c0_126, %c0_127] : memref<16x256xf32, #tpu.memory_space<vmem>>, vector<16x128xf32>
    tpu.vector_store %arg22[%c0_126, %c0_127], %127 {strides = array<i32>} : memref<16x256xf32, #tpu.memory_space<vmem>>, vector<16x128xf32>,
    %c0_128 = arith.constant 0 : index
    %c8_129 = arith.constant 8 : index
    %129 = vector.load %arg22[%c0_128, %c8_129] : memref<16x256xf32, #tpu.memory_space<vmem>>, vector<16x128xf32>
    %130 = arith.maximumf %127, %129 : vector<16x128xf32>
    %c0_130 = arith.constant 0 : index
    %c0_131 = arith.constant 0 : index
    %131 = vector.load %arg9[%c0_130, %c0_131] : memref<128x32xf32, #tpu.memory_space<vmem>>, vector<128x32xf32>
    %cst_132 = arith.constant dense<0.000000e+00> : vector<16x32xf32>
    %132 = tpu.matmul %130, %131, %cst_132 {dimension_numbers = #tpu.dot_dimension_numbers<[1], [0], [0], [1], [0, 0, 1, 1], [], []>} : vector<16x128xf32>, vector<128x32xf32>, vector<16x32xf32> -> vector<16x32xf32>
    %c0_133 = arith.constant 0 : index
    %c0_134 = arith.constant 0 : index
    %133 = vector.load %arg7[%c0_133, %c0_134] : memref<16x1xf32, #tpu.memory_space<vmem>>, vector<16x1xf32>
    %134 = vector.broadcast %133 : vector<16x1xf32> to vector<16x32xf32>
    %135 = arith.addf %132, %134 : vector<16x32xf32>
    %cst_135 = arith.constant 0.000000e+00 : f32
    %136 = vector.broadcast %cst_135 : f32 to vector<16x32xf32>
    %137 = arith.maximumf %135, %136 : vector<16x32xf32>
    %c0_136 = arith.constant 0 : index
    %c0_137 = arith.constant 0 : index
    %138 = vector.load %arg10[%c0_136, %c0_137] : memref<32x16xf32, #tpu.memory_space<vmem>>, vector<32x16xf32>
    %cst_138 = arith.constant dense<0.000000e+00> : vector<32x32xf32>
    %139 = tpu.matmul %138, %137, %cst_138 {dimension_numbers = #tpu.dot_dimension_numbers<[1], [0], [0], [1], [0, 0, 1, 1], [], []>} : vector<32x16xf32>, vector<16x32xf32>, vector<32x32xf32> -> vector<32x32xf32>
    %140 = vector.extract_strided_slice %139 {offsets = [0, 0], sizes = [8, 32], strides = [1, 1]} : vector<32x32xf32> to vector<8x32xf32>
    %c0_139 = arith.constant 0 : index
    %c0_140 = arith.constant 0 : index
    %c0_141 = arith.constant 0 : index
    %141 = vector.load %arg12[%c0_139, %c0_140, %c0_141] : memref<4x32x128xf32, #tpu.memory_space<vmem>>, vector<1x32x128xf32>
    %142 = vector.shape_cast %141 : vector<1x32x128xf32> to vector<32x128xf32>
    %cst_142 = arith.constant dense<0.000000e+00> : vector<8x128xf32>
    %143 = tpu.matmul %140, %142, %cst_142 {dimension_numbers = #tpu.dot_dimension_numbers<[1], [0], [0], [1], [0, 0, 1, 1], [], []>} : vector<8x32xf32>, vector<32x128xf32>, vector<8x128xf32> -> vector<8x128xf32>
    %144 = vector.extract_strided_slice %139 {offsets = [8, 0], sizes = [8, 32], strides = [1, 1]} : vector<32x32xf32> to vector<8x32xf32>
    %c1_143 = arith.constant 1 : index
    %c0_144 = arith.constant 0 : index
    %c0_145 = arith.constant 0 : index
    %145 = vector.load %arg12[%c1_143, %c0_144, %c0_145] : memref<4x32x128xf32, #tpu.memory_space<vmem>>, vector<1x32x128xf32>
    %146 = vector.shape_cast %145 : vector<1x32x128xf32> to vector<32x128xf32>
    %cst_146 = arith.constant dense<0.000000e+00> : vector<8x128xf32>
    %147 = tpu.matmul %144, %146, %cst_146 {dimension_numbers = #tpu.dot_dimension_numbers<[1], [0], [0], [1], [0, 0, 1, 1], [], []>} : vector<8x32xf32>, vector<32x128xf32>, vector<8x128xf32> -> vector<8x128xf32>
    %148 = arith.addf %143, %147 : vector<8x128xf32>
    %149 = vector.extract_strided_slice %139 {offsets = [16, 0], sizes = [8, 32], strides = [1, 1]} : vector<32x32xf32> to vector<8x32xf32>
    %c2_147 = arith.constant 2 : index
    %c0_148 = arith.constant 0 : index
    %c0_149 = arith.constant 0 : index
    %150 = vector.load %arg12[%c2_147, %c0_148, %c0_149] : memref<4x32x128xf32, #tpu.memory_space<vmem>>, vector<1x32x128xf32>
    %151 = vector.shape_cast %150 : vector<1x32x128xf32> to vector<32x128xf32>
    %cst_150 = arith.constant dense<0.000000e+00> : vector<8x128xf32>
    %152 = tpu.matmul %149, %151, %cst_150 {dimension_numbers = #tpu.dot_dimension_numbers<[1], [0], [0], [1], [0, 0, 1, 1], [], []>} : vector<8x32xf32>, vector<32x128xf32>, vector<8x128xf32> -> vector<8x128xf32>
    %153 = arith.addf %148, %152 : vector<8x128xf32>
    %154 = vector.extract_strided_slice %139 {offsets = [24, 0], sizes = [8, 32], strides = [1, 1]} : vector<32x32xf32> to vector<8x32xf32>
    %c3_151 = arith.constant 3 : index
    %c0_152 = arith.constant 0 : index
    %c0_153 = arith.constant 0 : index
    %155 = vector.load %arg12[%c3_151, %c0_152, %c0_153] : memref<4x32x128xf32, #tpu.memory_space<vmem>>, vector<1x32x128xf32>
    %156 = vector.shape_cast %155 : vector<1x32x128xf32> to vector<32x128xf32>
    %cst_154 = arith.constant dense<0.000000e+00> : vector<8x128xf32>
    %157 = tpu.matmul %154, %156, %cst_154 {dimension_numbers = #tpu.dot_dimension_numbers<[1], [0], [0], [1], [0, 0, 1, 1], [], []>} : vector<8x32xf32>, vector<32x128xf32>, vector<8x128xf32> -> vector<8x128xf32>
    %158 = arith.addf %153, %157 : vector<8x128xf32>
    %c0_155 = arith.constant 0 : index
    %c0_156 = arith.constant 0 : index
    %159 = vector.load %arg11[%c0_155, %c0_156] : memref<8x1xf32, #tpu.memory_space<vmem>>, vector<8x1xf32>
    %160 = vector.broadcast %159 : vector<8x1xf32> to vector<8x128xf32>
    %161 = arith.addf %158, %160 : vector<8x128xf32>
    %cst_157 = arith.constant 0.000000e+00 : f32
    %162 = vector.broadcast %cst_157 : f32 to vector<8x128xf32>
    %163 = arith.maximumf %161, %162 : vector<8x128xf32>
    %c0_158 = arith.constant 0 : index
    %c0_159 = arith.constant 0 : index
    %164 = vector.load %arg13[%c0_158, %c0_159] : memref<32x8xf32, #tpu.memory_space<vmem>>, vector<32x8xf32>
    %cst_160 = arith.constant dense<0.000000e+00> : vector<32x128xf32>
    %165 = tpu.matmul %164, %163, %cst_160 {dimension_numbers = #tpu.dot_dimension_numbers<[1], [0], [0], [1], [0, 0, 1, 1], [], []>} : vector<32x8xf32>, vector<8x128xf32>, vector<32x128xf32> -> vector<32x128xf32>
    %166 = vector.extract_strided_slice %165 {offsets = [0, 0], sizes = [8, 128], strides = [1, 1]} : vector<32x128xf32> to vector<8x128xf32>
    %c0_161 = arith.constant 0 : index
    %c0_162 = arith.constant 0 : index
    %c0_163 = arith.constant 0 : index
    %167 = vector.load %arg15[%c0_161, %c0_162, %c0_163] : memref<4x128x512xf32, #tpu.memory_space<vmem>>, vector<1x128x512xf32>
    %168 = vector.shape_cast %167 : vector<1x128x512xf32> to vector<128x512xf32>
    %cst_164 = arith.constant dense<0.000000e+00> : vector<8x512xf32>
    %169 = tpu.matmul %166, %168, %cst_164 {dimension_numbers = #tpu.dot_dimension_numbers<[1], [0], [0], [1], [0, 0, 1, 1], [], []>} : vector<8x128xf32>, vector<128x512xf32>, vector<8x512xf32> -> vector<8x512xf32>
    %170 = vector.extract_strided_slice %165 {offsets = [8, 0], sizes = [8, 128], strides = [1, 1]} : vector<32x128xf32> to vector<8x128xf32>
    %c1_165 = arith.constant 1 : index
    %c0_166 = arith.constant 0 : index
    %c0_167 = arith.constant 0 : index
    %171 = vector.load %arg15[%c1_165, %c0_166, %c0_167] : memref<4x128x512xf32, #tpu.memory_space<vmem>>, vector<1x128x512xf32>
    %172 = vector.shape_cast %171 : vector<1x128x512xf32> to vector<128x512xf32>
    %cst_168 = arith.constant dense<0.000000e+00> : vector<8x512xf32>
    %173 = tpu.matmul %170, %172, %cst_168 {dimension_numbers = #tpu.dot_dimension_numbers<[1], [0], [0], [1], [0, 0, 1, 1], [], []>} : vector<8x128xf32>, vector<128x512xf32>, vector<8x512xf32> -> vector<8x512xf32>
    %174 = arith.addf %169, %173 : vector<8x512xf32>
    %175 = vector.extract_strided_slice %165 {offsets = [16, 0], sizes = [8, 128], strides = [1, 1]} : vector<32x128xf32> to vector<8x128xf32>
    %c2_169 = arith.constant 2 : index
    %c0_170 = arith.constant 0 : index
    %c0_171 = arith.constant 0 : index
    %176 = vector.load %arg15[%c2_169, %c0_170, %c0_171] : memref<4x128x512xf32, #tpu.memory_space<vmem>>, vector<1x128x512xf32>
    %177 = vector.shape_cast %176 : vector<1x128x512xf32> to vector<128x512xf32>
    %cst_172 = arith.constant dense<0.000000e+00> : vector<8x512xf32>
    %178 = tpu.matmul %175, %177, %cst_172 {dimension_numbers = #tpu.dot_dimension_numbers<[1], [0], [0], [1], [0, 0, 1, 1], [], []>} : vector<8x128xf32>, vector<128x512xf32>, vector<8x512xf32> -> vector<8x512xf32>
    %179 = arith.addf %174, %178 : vector<8x512xf32>
    %180 = vector.extract_strided_slice %165 {offsets = [24, 0], sizes = [8, 128], strides = [1, 1]} : vector<32x128xf32> to vector<8x128xf32>
    %c3_173 = arith.constant 3 : index
    %c0_174 = arith.constant 0 : index
    %c0_175 = arith.constant 0 : index
    %181 = vector.load %arg15[%c3_173, %c0_174, %c0_175] : memref<4x128x512xf32, #tpu.memory_space<vmem>>, vector<1x128x512xf32>
    %182 = vector.shape_cast %181 : vector<1x128x512xf32> to vector<128x512xf32>
    %cst_176 = arith.constant dense<0.000000e+00> : vector<8x512xf32>
    %183 = tpu.matmul %180, %182, %cst_176 {dimension_numbers = #tpu.dot_dimension_numbers<[1], [0], [0], [1], [0, 0, 1, 1], [], []>} : vector<8x128xf32>, vector<128x512xf32>, vector<8x512xf32> -> vector<8x512xf32>
    %184 = arith.addf %179, %183 : vector<8x512xf32>
    %c0_177 = arith.constant 0 : index
    %c0_178 = arith.constant 0 : index
    %185 = vector.load %arg14[%c0_177, %c0_178] : memref<8x1xf32, #tpu.memory_space<vmem>>, vector<8x1xf32>
    %186 = vector.broadcast %185 : vector<8x1xf32> to vector<8x512xf32>
    %187 = arith.addf %184, %186 : vector<8x512xf32>
    %cst_179 = arith.constant 0.000000e+00 : f32
    %188 = vector.broadcast %cst_179 : f32 to vector<8x512xf32>
    %189 = arith.subf %188, %187 : vector<8x512xf32>
    %190 = math.exp %189 : vector<8x512xf32>
    %cst_180 = arith.constant 1.000000e+00 : f32
    %191 = vector.broadcast %cst_180 : f32 to vector<8x512xf32>
    %192 = arith.addf %191, %190 : vector<8x512xf32>
    %193 = tpu.reciprocal %192 : vector<8x512xf32> -> vector<8x512xf32>
    %c0_181 = arith.constant 0 : index
    %c0_182 = arith.constant 0 : index
    %c0_183 = arith.constant 0 : index
    %194 = vector.load %arg16[%c0_181, %c0_182, %c0_183] : memref<1x8x512xf32, #tpu.memory_space<vmem>>, vector<1x8x512xf32>
    %195 = vector.shape_cast %194 : vector<1x8x512xf32> to vector<8x512xf32>
    %196 = vector.shape_cast %193 : vector<8x512xf32> to vector<1x8x512xf32>
    tpu.vector_store %arg16[%c0_181, %c0_182, %c0_183], %196 {strides = array<i32>} : memref<1x8x512xf32, #tpu.memory_space<vmem>>, vector<1x8x512xf32>,
    return
  }
  func.func @transform_0(%arg0: i32) -> (i32, i32, i32) {
    %c0_i32 = arith.constant 0 : i32
    %c0_i32_0 = arith.constant 0 : i32
    %c0_i32_1 = arith.constant 0 : i32
    return %arg0, %c0_i32, %c0_i32_0 : i32, i32, i32
  }
  func.func @transform_1(%arg0: i32) -> (i32, i32) {
    %c0_i32 = arith.constant 0 : i32
    %c0_i32_0 = arith.constant 0 : i32
    %c0_i32_1 = arith.constant 0 : i32
    return %c0_i32, %c0_i32_0 : i32, i32
  }
  func.func @transform_2(%arg0: i32) -> (i32, i32) {
    %c0_i32 = arith.constant 0 : i32
    %c0_i32_0 = arith.constant 0 : i32
    %c0_i32_1 = arith.constant 0 : i32
    return %c0_i32, %c0_i32_0 : i32, i32
  }
  func.func @transform_3(%arg0: i32) -> (i32, i32) {
    %c0_i32 = arith.constant 0 : i32
    %c0_i32_0 = arith.constant 0 : i32
    %c0_i32_1 = arith.constant 0 : i32
    return %c0_i32, %c0_i32_0 : i32, i32
  }
  func.func @transform_4(%arg0: i32) -> (i32, i32) {
    %c0_i32 = arith.constant 0 : i32
    %c0_i32_0 = arith.constant 0 : i32
    %c0_i32_1 = arith.constant 0 : i32
    return %c0_i32, %c0_i32_0 : i32, i32
  }
  func.func @transform_5(%arg0: i32) -> (i32, i32) {
    %c0_i32 = arith.constant 0 : i32
    %c0_i32_0 = arith.constant 0 : i32
    %c0_i32_1 = arith.constant 0 : i32
    return %c0_i32, %c0_i32_0 : i32, i32
  }
  func.func @transform_6(%arg0: i32) -> (i32, i32) {
    %c0_i32 = arith.constant 0 : i32
    %c0_i32_0 = arith.constant 0 : i32
    %c0_i32_1 = arith.constant 0 : i32
    return %c0_i32, %c0_i32_0 : i32, i32
  }
  func.func @transform_7(%arg0: i32) -> (i32, i32) {
    %c0_i32 = arith.constant 0 : i32
    %c0_i32_0 = arith.constant 0 : i32
    %c0_i32_1 = arith.constant 0 : i32
    return %c0_i32, %c0_i32_0 : i32, i32
  }
  func.func @transform_8(%arg0: i32) -> (i32, i32) {
    %c0_i32 = arith.constant 0 : i32
    %c0_i32_0 = arith.constant 0 : i32
    %c0_i32_1 = arith.constant 0 : i32
    return %c0_i32, %c0_i32_0 : i32, i32
  }
  func.func @transform_9(%arg0: i32) -> (i32, i32) {
    %c0_i32 = arith.constant 0 : i32
    %c0_i32_0 = arith.constant 0 : i32
    %c0_i32_1 = arith.constant 0 : i32
    return %c0_i32, %c0_i32_0 : i32, i32
  }
  func.func @transform_10(%arg0: i32) -> (i32, i32) {
    %c0_i32 = arith.constant 0 : i32
    %c0_i32_0 = arith.constant 0 : i32
    %c0_i32_1 = arith.constant 0 : i32
    return %c0_i32, %c0_i32_0 : i32, i32
  }
  func.func @transform_11(%arg0: i32) -> (i32, i32, i32) {
    %c0_i32 = arith.constant 0 : i32
    %c0_i32_0 = arith.constant 0 : i32
    %c0_i32_1 = arith.constant 0 : i32
    %c0_i32_2 = arith.constant 0 : i32
    return %c0_i32, %c0_i32_0, %c0_i32_1 : i32, i32, i32
  }
  func.func @transform_12(%arg0: i32) -> (i32, i32) {
    %c0_i32 = arith.constant 0 : i32
    %c0_i32_0 = arith.constant 0 : i32
    %c0_i32_1 = arith.constant 0 : i32
    return %c0_i32, %c0_i32_0 : i32, i32
  }
  func.func @transform_13(%arg0: i32) -> (i32, i32) {
    %c0_i32 = arith.constant 0 : i32
    %c0_i32_0 = arith.constant 0 : i32
    %c0_i32_1 = arith.constant 0 : i32
    return %c0_i32, %c0_i32_0 : i32, i32
  }
  func.func @transform_14(%arg0: i32) -> (i32, i32, i32) {
    %c0_i32 = arith.constant 0 : i32
    %c0_i32_0 = arith.constant 0 : i32
    %c0_i32_1 = arith.constant 0 : i32
    %c0_i32_2 = arith.constant 0 : i32
    return %c0_i32, %c0_i32_0, %c0_i32_1 : i32, i32, i32
  }
  func.func @transform_15(%arg0: i32) -> (i32, i32, i32) {
    %c0_i32 = arith.constant 0 : i32
    %c0_i32_0 = arith.constant 0 : i32
    %c0_i32_1 = arith.constant 0 : i32
    return %arg0, %c0_i32, %c0_i32_0 : i32, i32, i32
  }
}

</mosaic_0001>

<bundles_post_ra>
// kernel: forward.1
= control target key start
LH: loop header
LB: loop body
LE: loop exit
PB: predicated region body
PF: predicated region fallthrough
CT: control target
= control target key end

     0   :  { %20 = vsyncpa [#allocation9], 0  ;;  %s4596_s18 = smov 0   ;;  %s5440_s0 = inlined_call_operand.vmem [shape: f32[2,8,512], index: 0, kind: input, shape index: {}]   ;;  %s5441_s1 = inlined_call_operand.vmem [shape: f32[8,72], index: 1, kind: input, shape index: {}]   ;;  %s5442_s2 = inlined_call_operand.vmem [shape: f32[8,1], index: 2, kind: input, shape index: {}]   ;;  %s5443_s3 = inlined_call_operand.vmem [shape: f32[9,512], index: 3, kind: input, shape index: {}]   ;;  %s5444_s4 = inlined_call_operand.vmem [shape: f32[512,128], index: 4, kind: input, shape index: {}]   ;;  %s5445_s5 = inlined_call_operand.vmem [shape: f32[16,72], index: 5, kind: input, shape index: {}]   ;;  %s5446_s6 = inlined_call_operand.vmem [shape: f32[16,1], index: 6, kind: input, shape index: {}]   ;;  %s5447_s7 = inlined_call_operand.vmem [shape: f32[9,128], index: 7, kind: input, shape index: {}]   ;;  %s5448_s8 = inlined_call_operand.vmem [shape: f32[128,32], index: 8, kind: input, shape index: {}]   ;;  %s5449_s9 = inlined_call_operand.vmem [shape: f32[32,16], index: 9, kind: input, shape index: {}]   ;;  %s5450_s10 = inlined_call_operand.vmem [shape: f32[8,1], index: 10, kind: input, shape index: {}]   ;;  %s5451_s11 = inlined_call_operand.vmem [shape: f32[4,32,128], index: 11, kind: input, shape index: {}]   ;;  %s5452_s12 = inlined_call_operand.vmem [shape: f32[32,8], index: 12, kind: input, shape index: {}]   ;;  %s5453_s13 = inlined_call_operand.vmem [shape: f32[8,1], index: 13, kind: input, shape index: {}]   ;;  %s5454_s14 = inlined_call_operand.hbm [shape: f32[4,128,512], index: 14, kind: input, shape index: {}]   ;;  %s5455_s15 = inlined_call_operand.vmem [shape: f32[2,8,512], index: 15, kind: output, shape index: {}]  }
   0x1 LB: > { %s4602_s19 = sadd.s32 4294967295, %s4493_s18   ;;  %p3507_p0 = scmp.ge.s32.totalorder %s4493_s18, 1  ;;  %s4493_s18 = sphi %s4596_s18, %s26_s18  }
   0x2   : > { %p377_p1 = scmp.lt.s32.totalorder %s4493_s18, 3  ;;  %s4495_s20 = smov [#allocation8]  }
   0x3   : > { %s428_s21 = sshll.u32 %s4495_s20, 4  ;;  %p5456_p3 = scmp.eq.s32.totalorder %s4602_s19, 0  ;;  %s429_s21 = int_to_ptr.vmem [resolvable:$true] %s428_s21 }
   0x4   : > { %p4606_p2 = pnand %p3507_p0, %p377_p1  ;;  %s4455_s26 = scalar_lea.hbm %s5454_s14, 32768 }
   0x5   : > { %p4456_p6 = scmp.ne.s32.totalorder %s5454_s14, %s4455_s26  ;;  %p4462_p10 = scmp.lt.u32.totalorder %s4455_s26, %s5454_s14 }
   0x6   : > { %s5463_s22 = scalar_select %p4606_p2, 1, 0 }
   0x7   : > { %p4257_p4 = pneg %p4606_p2 }
   0x9   : > { %p4615_p5 = pnand %p5456_p3, %p4257_p4 }
   0xb   : > { %p4457_p7 = pneg %p4615_p5 }
   0xd   : > { %p4458_p8 = pnand %p4457_p7, %p4456_p6 }
   0xf   : > { %p4459_p9 = pneg %p4458_p8 }
  0x11   : > { %p4464_p11 = pnand %p4462_p10, %p4459_p9 }
  0x13   : > { %4467 = shalt.err (!%p4464_p11)
}
  0x14   : > { %s4468_s16 = scalar_lea.vmem %s429_s21, 32768  ;;  %p4476_p1 = scmp.lt.s32.totalorder %s429_s21, %s429_s21 }
  0x15   : > { %p4469_p12 = scmp.ne.s32.totalorder %s429_s21, %s4468_s16  ;;  %p4477_p4 = scmp.lt.s32.totalorder %s4468_s16, %s4468_s16 }
  0x17   : > { %p4471_p13 = pnand %p4469_p12, %p4457_p7  ;;  %p4478_p3 = por %p4477_p4, %p4476_p1 }
  0x19   : > { %p4472_p0 = pneg %p4471_p13 }
  0x1b   : > { %p4479_p2 = pnand %p4478_p3, %p4472_p0 }
  0x1d   : > { %4482 = shalt.err (!%p4479_p2)
}
  0x1e   : > { %s4496_s17 = smov 512   ;;  %s4497_s20 = smov 32  }
  0x1f   : > { %4260 = dma.hbm_to_vmem [thread:$0]  (!%p4615_p5), %s5454_s14, 32768, %s429_s21, [#allocation9], %s4496_s17, %s4496_s17, %s4497_s20  }
  0x20   : > { %p5465_p6 = scmp.ne.s32.totalorder %s5463_s22, 0 }
  0x21   : > { %p5466_p8 = scmp.eq.s32.totalorder (!%p5465_p6), %s4602_s19, 0 }
  0x22   : > { %452 = sbr.rel (%p5465_p6) target bundleno = 2873 (0xb39), region = 80 }
  0x29   : > { %4488 = dma.done.wait (%p5466_p8), [#allocation9], 32768   ;;  %p5467_p7 = pmov %p5466_p8 }
  0x2a   : > { %v527_v0 = vlaneseq  ;;  %v525_v6 = vld [vmem:[%s5443_s3] ss:$8 sm:$0xf]  ;;  %s4498_s22 = smov 111   ;;  %s4499_s28 = smov 112   ;;  %vm551_vm0 = vcmask 908288  }
  0x2b   : > { %4490 = vsyncadd (%p5467_p7), [#allocation9], 4294934528  ;;  %v3516_v11 = vld [vmem:[%s5443_s3 + $0x1] ss:$8 sm:$0xf]  ;;  %s4500_s16 = smov 113  }
  0x2c   : > { %v528_v1 = vshrl.u32 %v527_v0, 7  ;;  %v3517_v16 = vld [vmem:[%s5443_s3 + $0x2] ss:$8 sm:$0xf]  ;;  %s5459_s24 = smov 127   ;;  %s4502_s23 = smov 1  }
  0x2d   : > { %v3518_v21 = vld [vmem:[%s5443_s3 + $0x3] ss:$8 sm:$0xf]  ;;  %v3520_v26 = vld [vmem:[%s5443_s3 + $0x5] ss:$8 sm:$0xf] }
  0x2e   : > { %v4641_v2 = vsub.s32 2, %v528_v1  ;;  %v4643_v3 = vsub.s32 0, %v528_v1  ;;  %v4645_v4 = vsub.s32 3, %v528_v1  ;;  %v4647_v5 = vsub.s32 1, %v528_v1  ;;  %s4503_s29 = smov 15   ;;  %s4504_s20 = smov 16  }
  0x2f   : > { %v3521_v31 = vld [vmem:[%s5443_s3 + $0x6] ss:$8 sm:$0xf]  ;;  %v3522_v36 = vld [vmem:[%s5443_s3 + $0x7] ss:$8 sm:$0xf] }
  0x30   : > { %v538_v7 = vrot.slane %v525_v6, %v4641_v2  ;;  %v530_v8 = vrot.slane %v525_v6, %v4643_v3  ;;  %v542_v9 = vrot.slane %v525_v6, %v4645_v4  ;;  %v534_v10 = vrot.slane %v525_v6, %v4647_v5  ;;  %v3523_v41 = vld [vmem:[%s5443_s3 + $0x20] ss:$8 sm:$0xf]  ;;  %s4505_s26 = smov 17   ;;  %p500_p2 = scmp.lt.s32.totalorder %s4602_s19, 1 }
  0x31   : > { %v608_v12 = vrot.slane %v3516_v11, %v4647_v5  ;;  %v604_v13 = vrot.slane %v3516_v11, %v4643_v3  ;;  %v616_v14 = vrot.slane %v3516_v11, %v4645_v4  ;;  %v612_v15 = vrot.slane %v3516_v11, %v4641_v2  ;;  %s5461_s21 = smov 120  }
  0x32   : > { %547 = vrot.lane.b32.xlu1 %v538_v7, %s4498_s22  ;;  %543 = vrot.lane.b32.xlu0 %v530_v8, %s4498_s22  ;;  %v682_v17 = vrot.slane %v3517_v16, %v4647_v5  ;;  %v678_v18 = vrot.slane %v3517_v16, %v4643_v3  ;;  %v690_v19 = vrot.slane %v3517_v16, %v4645_v4  ;;  %s5472_s19 = smov (!%p500_p2, %s4602_s19), 1  ;;  %vm625_vm1 = vcmask 916480  }
  0x33   : > { %v686_v20 = vrot.slane %v3517_v16, %v4641_v2  ;;  %v756_v22 = vrot.slane %v3518_v21, %v4647_v5  ;;  %v752_v23 = vrot.slane %v3518_v21, %v4643_v3  ;;  %v764_v24 = vrot.slane %v3518_v21, %v4645_v4  ;;  %s5458_s27 = sshll.u32 %s5472_s19, 5 }
  0x34   : > { %v760_v25 = vrot.slane %v3518_v21, %v4641_v2  ;;  %v865_v27 = vrot.slane %v3520_v26, %v4647_v5  ;;  %v861_v28 = vrot.slane %v3520_v26, %v4643_v3  ;;  %v873_v29 = vrot.slane %v3520_v26, %v4645_v4  ;;  %s504_s25 = scalar_lea.vmem %s5440_s0, %s5458_s27  ;;  %s4509_s27 = smov 121  }
  0x35   : > { %v869_v30 = vrot.slane %v3520_v26, %v4641_v2  ;;  %v937_v32 = vrot.slane %v3521_v31, %v4647_v5  ;;  %v933_v33 = vrot.slane %v3521_v31, %v4643_v3  ;;  %v945_v34 = vrot.slane %v3521_v31, %v4645_v4  ;;  %v4765_v6 = vld [vmem:[%s504_s25] sm:$0xff] }
  0x36   : > { %549 = vrot.lane.b32.xlu1 %v542_v9, %s4498_s22  ;;  %545 = vrot.lane.b32.xlu0 %v534_v10, %s4498_s22  ;;  %v941_v35 = vrot.slane %v3521_v31, %v4641_v2  ;;  %v1009_v37 = vrot.slane %v3522_v36, %v4647_v5  ;;  %v1005_v38 = vrot.slane %v3522_v36, %v4643_v3  ;;  %vm699_vm2 = vcmask 924672  }
  0x37   : > { %v1013_v39 = vrot.slane %v3522_v36, %v4641_v2  ;;  %v1017_v40 = vrot.slane %v3522_v36, %v4645_v4  ;;  %v1081_v42 = vrot.slane %v3523_v41, %v4647_v5  ;;  %v1077_v43 = vrot.slane %v3523_v41, %v4643_v3 }
  0x38   : > { %v1089_v44 = vrot.slane %v3523_v41, %v4645_v4  ;;  %v1085_v45 = vrot.slane %v3523_v41, %v4641_v2  ;;  %vm773_vm3 = vcmask 1039360   ;;  %vm802_vm4 = vcmask 7168  }
  0x39   : > { %vm728_vm5 = vcmask 121856   ;;  %vm654_vm6 = vcmask 130048   ;;  %vm580_vm7 = vcmask 138240   ;;  %vm1175_vm8 = vcmask 588800  }
  0x3a   : > { %619 = vrot.lane.b32.xlu1 %v608_v12, %s4499_s28  ;;  %617 = vrot.lane.b32.xlu0 %v604_v13, %s4499_s28  ;;  %v4777_v13 = vld [vmem:[%s504_s25 + $0x10] sm:$0xff]  ;;  %vm1627_vm9 = vcmask 72704   ;;  %vm1650_vm10 = vcmask 64512   ;;  %vm1673_vm11 = vcmask 56320   ;;  %vm1748_vm12 = vcmask 990208  }
  0x3b   : > { %vm1771_vm13 = vcmask 982016   ;;  %vm1794_vm14 = vcmask 973824   ;;  %vm4515_vm15 = vmmov 0  }
  0x3e   : > { %623 = vrot.lane.b32.xlu1 %v616_v14, %s4499_s28  ;;  %621 = vrot.lane.b32.xlu0 %v612_v15, %s4499_s28  ;;  %v4779_v14 = vld [vmem:[%s504_s25 + $0x18] sm:$0xff] }
  0x42   : > { %693 = vrot.lane.b32.xlu1 %v682_v17, %s4500_s16  ;;  %691 = vrot.lane.b32.xlu0 %v678_v18, %s4500_s16 }
  0x46   : > { %697 = vrot.lane.b32.xlu1 %v690_v19, %s4500_s16  ;;  %695 = vrot.lane.b32.xlu0 %v686_v20, %s4500_s16 }
  0x4a   : > { %767 = vrot.lane.b32.xlu1 %v756_v22, %s5459_s24  ;;  %765 = vrot.lane.b32.xlu0 %v752_v23, %s5459_s24 }
  0x4e   : > { %771 = vrot.lane.b32.xlu1 %v764_v24, %s5459_s24  ;;  %769 = vrot.lane.b32.xlu0 %v760_v25, %s5459_s24  ;;  %v4789_v24 = vld [vmem:[%s504_s25 + $0x8] sm:$0xff]  ;;  %s5468_s25 = smov 127  }
  0x52   : > { %876 = vrot.lane.b32.xlu1 %v865_v27, %s4502_s23  ;;  %874 = vrot.lane.b32.xlu0 %v861_v28, %s4502_s23 }
  0x56   : > { %880 = vrot.lane.b32.xlu1 %v873_v29, %s4502_s23  ;;  %878 = vrot.lane.b32.xlu0 %v869_v30, %s4502_s23 }
  0x5a   : > { %948 = vrot.lane.b32.xlu1 %v937_v32, %s4503_s29  ;;  %946 = vrot.lane.b32.xlu0 %v933_v33, %s4503_s29 }
  0x5e   : > { %952 = vrot.lane.b32.xlu1 %v945_v34, %s4503_s29  ;;  %950 = vrot.lane.b32.xlu0 %v941_v35, %s4503_s29 }
  0x62   : > { %1020 = vrot.lane.b32.xlu1 %v1009_v37, %s4504_s20  ;;  %1018 = vrot.lane.b32.xlu0 %v1005_v38, %s4504_s20 }
  0x66   : > { %1022 = vrot.lane.b32.xlu0 %v1013_v39, %s4504_s20  ;;  %1024 = vrot.lane.b32.xlu1 %v1017_v40, %s4504_s20 }
  0x6a   : > { %1092 = vrot.lane.b32.xlu1 %v1081_v42, %s4505_s26  ;;  %1090 = vrot.lane.b32.xlu0 %v1077_v43, %s4505_s26 }
  0x6e   : > { %1096 = vrot.lane.b32.xlu1 %v1089_v44, %s4505_s26  ;;  %1094 = vrot.lane.b32.xlu0 %v1085_v45, %s4505_s26 }
  0xa4   : > { %v548_v46 = vpop.permute.xlu1 %547  ;;  %v544_v47 = vpop.permute.xlu0 %543 }
  0xa5   : > { %v560_v48 = vmul.f32 0.0, %v544_v47 }
  0xa7   : > { %570 = vrot.lane.b32.xlu0 %v560_v48, %s4505_s26 }
  0xa8   : > { %v550_v49 = vpop.permute.xlu1 %549  ;;  %v546_v50 = vpop.permute.xlu0 %545 }
  0xa9   : > { %v554_v12 = vsel %vm551_vm0, %v548_v46, %v550_v49  ;;  %v564_v17 = vmul.f32 %v550_v49, %v4779_v14  ;;  %v552_v21 = vsel %vm551_vm0, %v544_v47, %v546_v50  ;;  %v553_v25 = vsel %vm551_vm0, %v546_v50, %v548_v46 }
  0xaa   : > { %v563_v16 = vmul.f32 %v554_v12, %v4777_v13  ;;  %v561_v30 = vmul.f32 %v552_v21, %v4765_v6  ;;  %v562_v31 = vmul.f32 %v553_v25, %v4789_v24 }
  0xac   : > { %v4738_v51 = vpop.permute.xlu1 %619  ;;  %v618_v52 = vpop.permute.xlu0 %617  ;;  %v4297_v23 = vpack.i.bf16 %v564_v17, %v563_v16  ;;  %v4292_v45 = vpack.i.bf16 %v562_v31, %v561_v30 }
  0xad   : > { %v634_v53 = vmul.f32 0.0, %v618_v52  ;;  %v626_v39 = vsel %vm625_vm1, %v618_v52, %v4738_v51 }
  0xae   : > { %v635_v46 = vmul.f32 %v626_v39, %v4765_v6 }
  0xaf   : > { %644 = vrot.lane.b32.xlu1 %v634_v53, %s4504_s20 }
  0xb0   : > { %v624_v54 = vpop.permute.xlu1 %623  ;;  %v622_v55 = vpop.permute.xlu0 %621 }
  0xb1   : > { %v628_v20 = vsel %vm625_vm1, %v622_v55, %v624_v54  ;;  %v638_v26 = vmul.f32 %v624_v54, %v4779_v14  ;;  %v627_v32 = vsel %vm625_vm1, %v4738_v51, %v622_v55 }
  0xb2   : > { %v637_v27 = vmul.f32 %v628_v20, %v4777_v13  ;;  %v636_v40 = vmul.f32 %v627_v32, %v4789_v24 }
  0xb4   : > { %v4741_v56 = vpop.permute.xlu1 %693  ;;  %v4743_v57 = vpop.permute.xlu0 %691  ;;  %v4307_v37 = vpack.i.bf16 %v638_v26, %v637_v27  ;;  %v4302_v50 = vpack.i.bf16 %v636_v40, %v635_v46 }
  0xb5   : > { %v708_v58 = vmul.f32 0.0, %v4743_v57  ;;  %v700_v49 = vsel %vm699_vm2, %v4743_v57, %v4741_v56 }
  0xb7   : > { %718 = vrot.lane.b32.xlu0 %v708_v58, %s4503_s29 }
  0xb8   : > { %v698_v59 = vpop.permute.xlu1 %697  ;;  %v696_v60 = vpop.permute.xlu0 %695 }
  0xb9   : > { %v702_v28 = vsel %vm699_vm2, %v696_v60, %v698_v59  ;;  %v712_v34 = vmul.f32 %v698_v59, %v4779_v14  ;;  %v701_v47 = vsel %vm699_vm2, %v4741_v56, %v696_v60  ;;  %v709_v60 = vmul.f32 %v700_v49, %v4765_v6 }
  0xba   : > { %v711_v35 = vmul.f32 %v702_v28, %v4777_v13  ;;  %v710_v51 = vmul.f32 %v701_v47, %v4789_v24 }
  0xbc   : > { %v4751_v61 = vpop.permute.xlu1 %767  ;;  %v4753_v62 = vpop.permute.xlu0 %765  ;;  %v4317_v44 = vpack.i.bf16 %v712_v34, %v711_v35 }
  0xbd   : > { %v782_v63 = vmul.f32 0.0, %v4753_v62  ;;  %v774_v56 = vsel %vm773_vm3, %v4753_v62, %v4751_v61 }
  0xbe   : > { %v783_v17 = vmul.f32 %v774_v56, %v4765_v6 }
  0xbf   : > { %792 = vrot.lane.b32.xlu1 %v782_v63, %s4502_s23 }
  0xc0   : > { %v772_v0 = vpop.permute.xlu1 %771  ;;  %v4758_v1 = vpop.permute.xlu0 %769 }
  0xc1   : > { %v776_v38 = vsel %vm773_vm3, %v4758_v1, %v772_v0  ;;  %v786_v41 = vmul.f32 %v772_v0, %v4779_v14  ;;  %v775_v58 = vsel %vm773_vm3, %v4751_v61, %v4758_v1 }
  0xc2   : > { %v785_v42 = vmul.f32 %v776_v38, %v4777_v13  ;;  %v784_v0 = vmul.f32 %v775_v58, %v4789_v24  ;;  %v4506_v38 = vmov 0.0  }
  0xc3   : > { %1243 = vmatprep.mubr.f32.mxu0 %v4506_v38  ;;  %1314 = vmatprep.mubr.f32.mxu1 %v4506_v38 }
  0xc4   : > { %v4767_v7 = vpop.permute.xlu1 %876  ;;  %v4769_v8 = vpop.permute.xlu0 %874  ;;  %v4327_v54 = vpack.i.bf16 %v786_v41, %v785_v42 }
  0xc5   : > { %v890_v9 = vmul.f32 %v4769_v8, %v4765_v6 }
  0xc7   : > { %900 = vrot.lane.b32.xlu0 %v890_v9, %s5459_s24 }
  0xc8   : > { %v881_v10 = vpop.permute.xlu1 %880  ;;  %v4774_v11 = vpop.permute.xlu0 %878 }
  0xc9   : > { %v884_v48 = vsel %vm802_vm4, %v4774_v11, %v881_v10  ;;  %v894_v52 = vmul.f32 0.0, %v881_v10  ;;  %v4312_v10 = vpack.i.bf16 %v710_v51, %v709_v60  ;;  %v883_v12 = vsel %vm802_vm4, %v4767_v7, %v4774_v11 }
  0xca   : > { %v893_v53 = vmul.f32 %v884_v48, %v4779_v14  ;;  %v892_v11 = vmul.f32 %v883_v12, %v4777_v13 }
  0xcc   : > { %v947_v15 = vpop.permute.xlu0 %946  ;;  %v949_v18 = vpop.permute.xlu1 %948  ;;  %v4337_v9 = vpack.i.bf16 %v894_v52, %v893_v53 }
  0xcd   : > { %v962_v19 = vmul.f32 %v947_v15, %v4765_v6  ;;  %v954_v57 = vsel %vm728_vm5, %v947_v15, %v949_v18  ;;  %v882_v15 = vsel %vm802_vm4, %v4769_v8, %v4767_v7 }
  0xce   : > { %v891_v26 = vmul.f32 %v882_v15, %v4789_v24 }
  0xcf   : > { %972 = vrot.lane.b32.xlu1 %v962_v19, %s4500_s16  ;;  %v963_v19 = vmul.f32 %v954_v57, %v4789_v24 }
  0xd0   : > { %v4787_v22 = vpop.permute.xlu0 %950  ;;  %v4795_v29 = vpop.permute.xlu1 %952  ;;  %v4332_v31 = vpack.i.bf16 %v892_v11, %v891_v26 }
  0xd1   : > { %v955_v59 = vsel %vm728_vm5, %v949_v18, %v4787_v22  ;;  %v956_v25 = vsel %vm728_vm5, %v4787_v22, %v4795_v29  ;;  %v966_v8 = vmul.f32 0.0, %v4795_v29 }
  0xd2   : > { %v964_v1 = vmul.f32 %v955_v59, %v4777_v13  ;;  %v965_v28 = vmul.f32 %v956_v25, %v4779_v14 }
  0xd3   : > { %4298 = vrot.lane.b32.xlu1 %v4297_v23, %s4505_s26  ;;  %v4322_v23 = vpack.i.bf16 %v784_v0, %v783_v17 }
  0xd4   : > { %v1019_v33 = vpop.permute.xlu0 %1018  ;;  %v1021_v43 = vpop.permute.xlu1 %1020  ;;  %v4342_v21 = vpack.i.bf16 %v964_v1, %v963_v19  ;;  %v4347_v29 = vpack.i.bf16 %v966_v8, %v965_v28  ;;  %v3519_v1 = vld [vmem:[%s5443_s3 + $0x4] ss:$8 sm:$0xf] }
  0xd5   : > { %v1034_v36 = vmul.f32 %v1019_v33, %v4765_v6  ;;  %v1026_v18 = vsel %vm654_vm6, %v1019_v33, %v1021_v43  ;;  %v833_v15 = vrot.slane %v3519_v1, %v4641_v2 }
  0xd6   : > { %v1035_v27 = vmul.f32 %v1026_v18, %v4789_v24 }
  0xd7   : > { %4308 = vrot.lane.b32.xlu1 %v4307_v37, %s4504_s20  ;;  %1044 = vrot.lane.b32.xlu0 %v1034_v36, %s4499_s28 }
  0xd8   : > { %v1025_v55 = vpop.permute.xlu1 %1024  ;;  %v1023_v63 = vpop.permute.xlu0 %1022 }
  0xd9   : > { %v1027_v16 = vsel %vm654_vm6, %v1021_v43, %v1023_v63  ;;  %v1028_v22 = vsel %vm654_vm6, %v1023_v63, %v1025_v55  ;;  %v1038_v37 = vmul.f32 0.0, %v1025_v55 }
  0xda   : > { %v1036_v20 = vmul.f32 %v1027_v16, %v4777_v13  ;;  %v1037_v36 = vmul.f32 %v1028_v22, %v4779_v14 }
  0xdb   : > { %4318 = vrot.lane.b32.xlu1 %v4317_v44, %s4503_s29  ;;  %4293 = vrot.lane.b32.xlu0 %v4292_v45, %s4505_s26 }
  0xdc   : > { %v1093_v61 = vpop.permute.xlu1 %1092  ;;  %v1091_v62 = vpop.permute.xlu0 %1090  ;;  %v4352_v30 = vpack.i.bf16 %v1036_v20, %v1035_v27  ;;  %v4357_v40 = vpack.i.bf16 %v1038_v37, %v1037_v36 }
  0xdd   : > { %v1098_v7 = vsel %vm580_vm7, %v1091_v62, %v1093_v61  ;;  %v1106_v42 = vmul.f32 %v1091_v62, %v4765_v6  ;;  %v829_v62 = vrot.slane %v3519_v1, %v4647_v5 }
  0xde   : > { %v1107_v34 = vmul.f32 %v1098_v7, %v4789_v24 }
  0xdf   : > { %4328 = vrot.lane.b32.xlu1 %v4327_v54, %s4502_s23  ;;  %4303 = vrot.lane.b32.xlu0 %v4302_v50, %s4504_s20  ;;  %s4512_s20 = smov 7  }
  0xe0   : > { %v1097_v32 = vpop.permute.xlu1 %1096  ;;  %v1095_v33 = vpop.permute.xlu0 %1094 }
  0xe1   : > { %v1100_v35 = vsel %vm580_vm7, %v1095_v33, %v1097_v32  ;;  %v1099_v41 = vsel %vm580_vm7, %v1093_v61, %v1095_v33  ;;  %v1110_v44 = vmul.f32 0.0, %v1097_v32  ;;  %v837_v61 = vrot.slane %v3519_v1, %v4645_v4 }
  0xe2   : > { %v1109_v39 = vmul.f32 %v1100_v35, %v4779_v14  ;;  %v1108_v43 = vmul.f32 %v1099_v41, %v4777_v13  ;;  %v825_v35 = vrot.slane %v3519_v1, %v4643_v3  ;;  %v843_v41 = vmul.f32 %v829_v62, %v4789_v24 }
  0xe3   : > { %4338 = vrot.lane.b32.xlu1 %v4337_v9, %s5459_s24  ;;  %4313 = vrot.lane.b32.xlu0 %v4312_v10, %s4503_s29  ;;  %s5470_s29 = sshll.u32 %s5472_s19, 5 }
  0xe4   : > { %v842_v3 = vmul.f32 %v825_v35, %v4765_v6  ;;  %s509_s26 = scalar_lea.vmem %s5455_s15, %s5470_s29 }
  0xe7   : > { %4343 = vrot.lane.b32.xlu1 %v4342_v21, %s4500_s16  ;;  %4323 = vrot.lane.b32.xlu0 %v4322_v23, %s4502_s23 }
  0xeb   : > { %4353 = vrot.lane.b32.xlu1 %v4352_v30, %s4499_s28  ;;  %4333 = vrot.lane.b32.xlu0 %v4332_v31, %s5459_s24 }
  0xef   : > { %1118 = vrot.lane.b32.xlu1 %v1107_v34, %s4498_s22  ;;  %4348 = vrot.lane.b32.xlu0 %v4347_v29, %s4500_s16 }
  0xf3   : > { %1122 = vrot.lane.b32.xlu1 %v1109_v39, %s4498_s22  ;;  %4358 = vrot.lane.b32.xlu0 %v4357_v40, %s4499_s28  ;;  %v845_v40 = vmul.f32 %v837_v61, %v4779_v14 }
  0xf7   : > { %1116 = vrot.lane.b32.xlu1 %v1106_v42, %s4498_s22  ;;  %1120 = vrot.lane.b32.xlu0 %v1108_v43, %s4498_s22  ;;  %v844_v42 = vmul.f32 %v833_v15, %v4777_v13 }
  0xfb   : > { %1124 = vrot.lane.b32.xlu0 %v1110_v44, %s4498_s22  ;;  %s4508_s22 = smov 119  }
 0x119   : > { %v571_v46 = vpop.permute.xlu0 %570 }
 0x121   : > { %v645_v45 = vpop.permute.xlu1 %644 }
 0x129   : > { %v4885_v48 = vpop.permute.xlu0 %718 }
 0x131   : > { %v4883_v47 = vpop.permute.xlu1 %792 }
 0x139   : > { %v4889_v50 = vpop.permute.xlu0 %900 }
 0x141   : > { %v4887_v49 = vpop.permute.xlu1 %972 }
 0x145   : > { %v4299_v51 = vpop.permute.xlu1 %4298 }
 0x146   : > { %v4301_v52 = vunpack.i.h.bf16 %v4299_v51  ;;  %v4300_v53 = vunpack.i.l.bf16 %v4299_v51 }
 0x148   : > { %v584_v60 = vsel %vm580_vm7, %v4300_v53, %v4301_v52 }
 0x149   : > { %v4309_v54 = vpop.permute.xlu1 %4308  ;;  %v4891_v55 = vpop.permute.xlu0 %1044 }
 0x14a   : > { %v4311_v58 = vunpack.i.h.bf16 %v4309_v54  ;;  %v4310_v59 = vunpack.i.l.bf16 %v4309_v54 }
 0x14c   : > { %v658_v63 = vsel %vm654_vm6, %v4310_v59, %v4311_v58 }
 0x14d   : > { %v4319_v56 = vpop.permute.xlu1 %4318  ;;  %v4294_v57 = vpop.permute.xlu0 %4293  ;;  %v3829_v0 = vpack.c.bf16 %v658_v63, %v584_v60 }
 0x14e   : > { %v4321_v9 = vunpack.i.h.bf16 %v4319_v56  ;;  %v4320_v10 = vunpack.i.l.bf16 %v4319_v56  ;;  %v4296_v12 = vunpack.i.h.bf16 %v4294_v57  ;;  %v4295_v16 = vunpack.i.l.bf16 %v4294_v57 }
 0x14f   : > { %3830 = vmatprep.subr.bf16.mxu1 %v3829_v0 }
 0x150   : > { %v582_v23 = vsel %vm580_vm7, %v4295_v16, %v4296_v12  ;;  %v583_v25 = vsel %vm580_vm7, %v4296_v12, %v4300_v53  ;;  %v581_v26 = vsel %vm580_vm7, %v571_v46, %v4295_v16  ;;  %v732_v27 = vsel %vm728_vm5, %v4320_v10, %v4321_v9 }
 0x151   : > { %v4329_v17 = vpop.permute.xlu1 %4328  ;;  %v4304_v19 = vpop.permute.xlu0 %4303 }
 0x152   : > { %v4331_v18 = vunpack.i.h.bf16 %v4329_v17  ;;  %v4330_v11 = vunpack.i.l.bf16 %v4329_v17  ;;  %v4306_v20 = vunpack.i.h.bf16 %v4304_v19  ;;  %v4305_v21 = vunpack.i.l.bf16 %v4304_v19 }
 0x154   : > { %v656_v7 = vsel %vm654_vm6, %v4305_v21, %v4306_v20  ;;  %v657_v4 = vsel %vm654_vm6, %v4306_v20, %v4310_v59  ;;  %v655_v5 = vsel %vm654_vm6, %v645_v45, %v4305_v21  ;;  %v806_v2 = vsel %vm802_vm4, %v4330_v11, %v4331_v18 }
 0x155   : > { %v4339_v8 = vpop.permute.xlu1 %4338  ;;  %v4314_v28 = vpop.permute.xlu0 %4313  ;;  %v3813_v30 = vpack.c.bf16 %v656_v7, %v582_v23  ;;  %v3831_v31 = vpack.c.bf16 %v657_v4, %v583_v25  ;;  %v3815_v32 = vpack.c.bf16 %v655_v5, %v581_v26  ;;  %v3833_v33 = vpack.c.bf16 %v806_v2, %v732_v27 }
 0x156   : > { %v4341_v22 = vunpack.i.h.bf16 %v4339_v8  ;;  %v4340_v34 = vunpack.i.l.bf16 %v4339_v8  ;;  %v4316_v36 = vunpack.i.h.bf16 %v4314_v28  ;;  %v4315_v37 = vunpack.i.l.bf16 %v4314_v28 }
 0x157   : > { %3814 = vmatprep.subr.bf16.mxu0 %v3813_v30  ;;  %3832 = vmatpush1.bf16.msra.mxu1 %v3831_v31 }
 0x158   : > { %3816 = vmatpush1.bf16.msra.mxu0 %v3815_v32  ;;  %3834 = vmatprep.subr.bf16.mxu1 %v3833_v33  ;;  %v913_v45 = vsel %vm773_vm3, %v4340_v34, %v4341_v22  ;;  %v730_v51 = vsel %vm728_vm5, %v4315_v37, %v4316_v36  ;;  %v731_v52 = vsel %vm728_vm5, %v4316_v36, %v4320_v10  ;;  %v1138_v33 = vld [vmem:[%s5441_s1] sm:$0xff] }
 0x159   : > { %v4344_v29 = vpop.permute.xlu1 %4343  ;;  %v4324_v39 = vpop.permute.xlu0 %4323  ;;  %v729_v53 = vsel %vm728_vm5, %v4885_v48, %v4315_v37  ;;  %v3837_v56 = vpack.c.bf16 %v913_v45, %v845_v40 }
 0x15a   : > { %v4326_v43 = vunpack.i.h.bf16 %v4324_v39  ;;  %v4325_v44 = vunpack.i.l.bf16 %v4324_v39  ;;  %v4346_v46 = vunpack.i.h.bf16 %v4344_v29  ;;  %v4345_v54 = vunpack.i.l.bf16 %v4344_v29 }
 0x15c   : > { %v804_v14 = vsel %vm802_vm4, %v4325_v44, %v4326_v43  ;;  %v805_v24 = vsel %vm802_vm4, %v4326_v43, %v4330_v11  ;;  %v803_v13 = vsel %vm802_vm4, %v4883_v47, %v4325_v44  ;;  %v983_v15 = vsel %vm699_vm2, %v4345_v54, %v4346_v46  ;;  %v1411_v43 = vld [vmem:[%s5444_s4 + $0x88] sm:$0xff]  ;;  %v1394_v44 = vld [vmem:[%s5444_s4] sm:$0xff] }
 0x15d   : > { %v4354_v58 = vpop.permute.xlu1 %4353  ;;  %v4334_v59 = vpop.permute.xlu0 %4333  ;;  %v3817_v60 = vpack.c.bf16 %v804_v14, %v730_v51  ;;  %v3835_v6 = vpack.c.bf16 %v805_v24, %v731_v52  ;;  %v3819_v63 = vpack.c.bf16 %v803_v13, %v729_v53  ;;  %v982_v25 = vsel %vm699_vm2, %v4887_v49, %v4345_v54  ;;  %v1443_v51 = vld [vmem:[%s5444_s4 + $0x188] sm:$0xff]  ;;  %v1426_v54 = vld [vmem:[%s5444_s4 + $0x100] sm:$0xff]  ;;  %v1412_v24 = vld [vmem:[%s5444_s4 + $0x90] sm:$0xff] }
 0x15e   : > { %v4356_v57 = vunpack.i.h.bf16 %v4354_v58  ;;  %v4355_v0 = vunpack.i.l.bf16 %v4354_v58  ;;  %v4336_v1 = vunpack.i.h.bf16 %v4334_v59  ;;  %v4335_v9 = vunpack.i.l.bf16 %v4334_v59  ;;  %v1427_v14 = vld [vmem:[%s5444_s4 + $0x108] sm:$0xff]  ;;  %v1413_v58 = vld [vmem:[%s5444_s4 + $0x98] sm:$0xff]  ;;  %v1396_v59 = vld [vmem:[%s5444_s4 + $0x10] sm:$0xff] }
 0x15f   : > { %3818 = vmatprep.subr.bf16.mxu0 %v3817_v60  ;;  %3836 = vmatpush1.bf16.msra.mxu1 %v3835_v6  ;;  %v3879_v13 = vpack.c.bf16 %v1427_v14, %v1426_v54  ;;  %v1397_v60 = vld [vmem:[%s5444_s4 + $0x18] sm:$0xff]  ;;  %v3849_v6 = vpack.c.bf16 %v1413_v58, %v1412_v24  ;;  %v1422_v24 = vld [vmem:[%s5444_s4 + $0xe0] sm:$0xff] }
 0x160   : > { %3820 = vmatpush1.bf16.msra.mxu0 %v3819_v63  ;;  %3838 = vmatprep.subr.bf16.mxu1 %v3837_v56  ;;  %v911_v48 = vsel %vm773_vm3, %v4335_v9, %v4336_v1  ;;  %v912_v10 = vsel %vm773_vm3, %v4336_v1, %v4340_v34  ;;  %v910_v47 = vsel %vm773_vm3, %v4889_v50, %v4335_v9  ;;  %v1444_v56 = vld [vmem:[%s5444_s4 + $0x190] sm:$0xff]  ;;  %v1429_v9 = vld [vmem:[%s5444_s4 + $0x118] sm:$0xff] }
 0x161   : > { %v1119_v12 = vpop.permute.xlu1 %1118  ;;  %v4349_v16 = vpop.permute.xlu0 %4348  ;;  %v3821_v17 = vpack.c.bf16 %v911_v48, %v843_v41  ;;  %v3839_v19 = vpack.c.bf16 %v912_v10, %v844_v42  ;;  %v3823_v61 = vpack.c.bf16 %v910_v47, %v842_v3  ;;  %v1055_v62 = vsel %vm625_vm1, %v4355_v0, %v4356_v57  ;;  %v1410_v42 = vld [vmem:[%s5444_s4 + $0x80] sm:$0xff]  ;;  %v1395_v3 = vld [vmem:[%s5444_s4 + $0x8] sm:$0xff]  ;;  %v1437_v14 = vld [vmem:[%s5444_s4 + $0x158] sm:$0xff] }
 0x162   : > { %v3825_v18 = vpack.c.bf16 %v1055_v62, %v983_v15  ;;  %v1054_v11 = vsel %vm625_vm1, %v4891_v55, %v4355_v0  ;;  %v4351_v20 = vunpack.i.h.bf16 %v4349_v16  ;;  %v4350_v21 = vunpack.i.l.bf16 %v4349_v16  ;;  %v1428_v0 = vld [vmem:[%s5444_s4 + $0x110] sm:$0xff]  ;;  %v1414_v48 = vld [vmem:[%s5444_s4 + $0xa0] sm:$0xff]  ;;  %v1415_v10 = vld [vmem:[%s5444_s4 + $0xa8] sm:$0xff] }
 0x163   : > { %3822 = vmatprep.subr.bf16.mxu0 %v3821_v17  ;;  %3840 = vmatpush1.bf16.msra.mxu1 %v3839_v19  ;;  %v3827_v7 = vpack.c.bf16 %v1054_v11, %v982_v25  ;;  %v3845_v45 = vpack.c.bf16 %v1411_v43, %v1410_v42  ;;  %v3847_v52 = vpack.c.bf16 %v1395_v3, %v1394_v44  ;;  %v1398_v16 = vld [vmem:[%s5444_s4 + $0x20] sm:$0xff]  ;;  %v1399_v17 = vld [vmem:[%s5444_s4 + $0x28] sm:$0xff]  ;;  %v1421_v42 = vld [vmem:[%s5444_s4 + $0xd8] sm:$0xff] }
 0x164   : > { %3824 = vmatpush1.bf16.msra.mxu0 %v3823_v61  ;;  %v985_v4 = vsel %vm699_vm2, %v4350_v21, %v4351_v20  ;;  %v984_v2 = vsel %vm699_vm2, %v4346_v46, %v4350_v21  ;;  %v1442_v46 = vld [vmem:[%s5444_s4 + $0x180] sm:$0xff]  ;;  %v3851_v63 = vpack.c.bf16 %v1397_v60, %v1396_v59  ;;  %v3883_v47 = vpack.c.bf16 %v1429_v9, %v1428_v0  ;;  %v1447_v61 = vld [vmem:[%s5444_s4 + $0x1a8] sm:$0xff]  ;;  %v1416_v20 = vld [vmem:[%s5444_s4 + $0xb0] sm:$0xff] }
 0x165   : > { %v1123_v23 = vpop.permute.xlu1 %1122  ;;  %v4359_v50 = vpop.permute.xlu0 %4358  ;;  %3826 = vmatprep.subr.bf16.mxu0 %v3825_v18  ;;  %v3877_v53 = vpack.c.bf16 %v1443_v51, %v1442_v46  ;;  %v1446_v19 = vld [vmem:[%s5444_s4 + $0x1a0] sm:$0xff]  ;;  %v1431_v15 = vld [vmem:[%s5444_s4 + $0x128] sm:$0xff]  ;;  %v3855_v18 = vpack.c.bf16 %v1399_v17, %v1398_v16  ;;  %v1417_v21 = vld [vmem:[%s5444_s4 + $0xb8] sm:$0xff] }
 0x166   : > { %v4361_v26 = vunpack.i.h.bf16 %v4359_v50  ;;  %v4360_v27 = vunpack.i.l.bf16 %v4359_v50  ;;  %v1430_v62 = vld [vmem:[%s5444_s4 + $0x120] sm:$0xff]  ;;  %v3885_v11 = vpack.c.bf16 %v1447_v61, %v1446_v19  ;;  %v3857_v25 = vpack.c.bf16 %v1417_v21, %v1416_v20  ;;  %v1452_v43 = vld [vmem:[%s5444_s4 + $0x1d0] sm:$0xff]  ;;  %v1453_v44 = vld [vmem:[%s5444_s4 + $0x1d8] sm:$0xff] }
 0x167   : > { %v3887_v50 = vpack.c.bf16 %v1431_v15, %v1430_v62  ;;  %v1404_v51 = vld [vmem:[%s5444_s4 + $0x50] sm:$0xff]  ;;  %v3897_v54 = vpack.c.bf16 %v1453_v44, %v1452_v43  ;;  %v1455_v0 = vld [vmem:[%s5444_s4 + $0x1e8] sm:$0xff]  ;;  %v1438_v9 = vld [vmem:[%s5444_s4 + $0x160] sm:$0xff] }
 0x168   : > { %3828 = vmatpush1.bf16.msra.mxu0 %v3827_v7  ;;  %v1057_v5 = vsel %vm625_vm1, %v4360_v27, %v4361_v26  ;;  %v1056_v55 = vsel %vm625_vm1, %v4356_v57, %v4360_v27  ;;  %v1445_v57 = vld [vmem:[%s5444_s4 + $0x198] sm:$0xff]  ;;  %v1448_v27 = vld [vmem:[%s5444_s4 + $0x1b0] sm:$0xff] }
 0x169   : > { %v1117_v8 = vpop.permute.xlu1 %1116  ;;  %v1121_v28 = vpop.permute.xlu0 %1120  ;;  %v3841_v30 = vpack.c.bf16 %v1057_v5, %v985_v4  ;;  %v3843_v31 = vpack.c.bf16 %v1056_v55, %v984_v2  ;;  %v3881_v1 = vpack.c.bf16 %v1445_v57, %v1444_v56  ;;  %v1401_v26 = vld [vmem:[%s5444_s4 + $0x38] sm:$0xff]  ;;  %v1432_v5 = vld [vmem:[%s5444_s4 + $0x130] sm:$0xff]  ;;  %v1418_v55 = vld [vmem:[%s5444_s4 + $0xc0] sm:$0xff] }
 0x16a   : > { %v1127_v32 = vsel %vm551_vm0, %v1119_v12, %v1121_v28  ;;  %v1126_v49 = vsel %vm551_vm0, %v1117_v8, %v1119_v12  ;;  %v1128_v35 = vsel %vm551_vm0, %v1121_v28, %v1123_v23  ;;  %v3853_v12 = vpack.c.bf16 %v1415_v10, %v1414_v48  ;;  %v1449_v7 = vld [vmem:[%s5444_s4 + $0x1b8] sm:$0xff]  ;;  %v1419_v8 = vld [vmem:[%s5444_s4 + $0xc8] sm:$0xff]  ;;  %v1454_v57 = vld [vmem:[%s5444_s4 + $0x1e0] sm:$0xff] }
 0x16b   : > { %1195 = vmatprep.subr.mxu0 %v1127_v32  ;;  %3842 = vmatprep.subr.bf16.mxu1 %v3841_v30  ;;  %v3889_v4 = vpack.c.bf16 %v1449_v7, %v1448_v27  ;;  %v1433_v2 = vld [vmem:[%s5444_s4 + $0x138] sm:$0xff]  ;;  %v1450_v30 = vld [vmem:[%s5444_s4 + $0x1c0] sm:$0xff]  ;;  %v1439_v48 = vld [vmem:[%s5444_s4 + $0x168] sm:$0xff] }
 0x16c   : > { %1196 = vmatpush1.msra.mxu0 %v1126_v49  ;;  %3844 = vmatpush1.bf16.msra.mxu1 %v3843_v31  ;;  %v1451_v31 = vld [vmem:[%s5444_s4 + $0x1c8] sm:$0xff]  ;;  %v3891_v32 = vpack.c.bf16 %v1433_v2, %v1432_v5  ;;  %v3861_v49 = vpack.c.bf16 %v1419_v8, %v1418_v55  ;;  %v3903_v10 = vpack.c.bf16 %v1439_v48, %v1438_v9  ;;  %v1408_v17 = vld [vmem:[%s5444_s4 + $0x70] sm:$0xff]  ;;  %v1409_v19 = vld [vmem:[%s5444_s4 + $0x78] sm:$0xff] }
 0x16d   : > { %v1125_v22 = vpop.permute.xlu0 %1124  ;;  %3524 = vmatmul.mubr.msk.f32.vlgmr.msra.gmra.mrb[0].mxu0 %vm1175_vm8, %v1138_v33  ;;  %3846 = vmatprep.subr.bf16.mxu0 %v3845_v45  ;;  %v3875_v61 = vpack.c.bf16 %v1409_v19, %v1408_v17  ;;  %v1456_v62 = vld [vmem:[%s5444_s4 + $0x1f0] sm:$0xff]  ;;  %v1457_v15 = vld [vmem:[%s5444_s4 + $0x1f8] sm:$0xff] }
 0x16e   : > { %v1129_v34 = vsel %vm551_vm0, %v1123_v23, %v1125_v22  ;;  %3848 = vmatpush3.bf16.msra.mxu0 %v3847_v52  ;;  %v1400_v23 = vld [vmem:[%s5444_s4 + $0x30] sm:$0xff]  ;;  %v1403_v22 = vld [vmem:[%s5444_s4 + $0x48] sm:$0xff]  ;;  %v1405_v52 = vld [vmem:[%s5444_s4 + $0x58] sm:$0xff]  ;;  %vm2155_vm0 = vcmask 261120  }
 0x16f   : > { %1266 = vmatprep.subr.mxu1 %v1129_v34  ;;  %3850 = vmatprep.subr.bf16.mxu0 %v3849_v6  ;;  %v3859_v28 = vpack.c.bf16 %v1401_v26, %v1400_v23  ;;  %v1434_v34 = vld [vmem:[%s5444_s4 + $0x140] sm:$0xff]  ;;  %v3867_v58 = vpack.c.bf16 %v1405_v52, %v1404_v51  ;;  %v1440_v20 = vld [vmem:[%s5444_s4 + $0x170] sm:$0xff]  ;;  %v1441_v21 = vld [vmem:[%s5444_s4 + $0x178] sm:$0xff] }
 0x170   : > { %1267 = vmatpush1.msra.mxu1 %v1128_v35  ;;  %v3893_v35 = vpack.c.bf16 %v1451_v31, %v1450_v30  ;;  %v1406_v6 = vld [vmem:[%s5444_s4 + $0x60] sm:$0xff]  ;;  %v3907_v26 = vpack.c.bf16 %v1441_v21, %v1440_v20 }
 0x171   : > { %3525 = vmatmul.mubr.msk.f32.vlgmr.msra.gmra.mrb[0].mxu1 %vm1175_vm8, %v1138_v33  ;;  %3878 = vmatprep.subr.bf16.mxu1 %v3877_v53  ;;  %v1402_v33 = vld [vmem:[%s5444_s4 + $0x40] sm:$0xff]  ;;  %v1436_v53 = vld [vmem:[%s5444_s4 + $0x150] sm:$0xff] }
 0x172   : > { %3880 = vmatpush3.bf16.msra.mxu1 %v3879_v13  ;;  %3852 = vmatpush3.bf16.msra.mxu0 %v3851_v63  ;;  %v3863_v45 = vpack.c.bf16 %v1403_v22, %v1402_v33  ;;  %v1423_v13 = vld [vmem:[%s5444_s4 + $0xe8] sm:$0xff]  ;;  %v3899_v59 = vpack.c.bf16 %v1437_v14, %v1436_v53 }
 0x173   : > { %3882 = vmatprep.subr.bf16.mxu1 %v3881_v1  ;;  %3854 = vmatprep.subr.bf16.mxu0 %v3853_v12  ;;  %v3869_v60 = vpack.c.bf16 %v1423_v13, %v1422_v24  ;;  %v1407_v63 = vld [vmem:[%s5444_s4 + $0x68] sm:$0xff]  ;;  %v3901_v1 = vpack.c.bf16 %v1455_v0, %v1454_v57  ;;  %v1425_v12 = vld [vmem:[%s5444_s4 + $0xf8] sm:$0xff] }
 0x174   : > { %v3871_v56 = vpack.c.bf16 %v1407_v63, %v1406_v6 }
 0x176   : > { %3884 = vmatpush3.bf16.msra.mxu1 %v3883_v47  ;;  %3856 = vmatpush3.bf16.msra.mxu0 %v3855_v18  ;;  %v1424_v47 = vld [vmem:[%s5444_s4 + $0xf0] sm:$0xff] }
 0x177   : > { %3886 = vmatprep.subr.bf16.mxu1 %v3885_v11  ;;  %3858 = vmatprep.subr.bf16.mxu0 %v3857_v25  ;;  %v3873_v16 = vpack.c.bf16 %v1425_v12, %v1424_v47  ;;  %v3905_v11 = vpack.c.bf16 %v1457_v15, %v1456_v62 }
 0x17a   : > { %3888 = vmatpush3.bf16.msra.mxu1 %v3887_v50  ;;  %3860 = vmatpush3.bf16.msra.mxu0 %v3859_v28 }
 0x17b   : > { %3890 = vmatprep.subr.bf16.mxu1 %v3889_v4  ;;  %3862 = vmatprep.subr.bf16.mxu0 %v3861_v49 }
 0x17e   : > { %3892 = vmatpush3.bf16.msra.mxu1 %v3891_v32  ;;  %3864 = vmatpush3.bf16.msra.mxu0 %v3863_v45  ;;  %v4507_v32 = vmov 0  }
 0x17f   : > { %3894 = vmatprep.subr.bf16.mxu1 %v3893_v35  ;;  %4382 = vset.pattern.permute.xlu0 %v4507_v32  ;;  %v3529_v35 = vld [vmem:[%s5447_s7 + $0x3] ss:$0 sm:$0xff] }
 0x180   : > { %4438 = vset.pattern.permute.xlu1 %v4507_v32 }
 0x240   : > { %v4946_v36 = vpop.f32.mrb[0].mxu0 }
 0x241   : > { %v4948_v37 = vpop.f32.mrb[1].mxu0 }
 0x244   : > { %v4950_v29 = vpop.f32.mrb[0].mxu1 }
 0x245   : > { %v4362_v39 = vpack.i.bf16 %v4950_v29, %v4948_v37  ;;  %v4954_v40 = vpop.f32.mrb[1].mxu1 }
 0x246   : > { %v4367_v41 = vpack.i.bf16 %v4946_v36, %v4954_v40 }
 0x247   : > { %4363 = vrot.lane.b32.xlu0 %v4362_v39, %s5459_s24  ;;  %v1435_v39 = vld [vmem:[%s5444_s4 + $0x148] sm:$0xff] }
 0x248   : > { %4368 = vrot.lane.b32.xlu1 %v4367_v41, %s5459_s24  ;;  %v1420_v41 = vld [vmem:[%s5444_s4 + $0xd0] sm:$0xff]  ;;  %v3895_v3 = vpack.c.bf16 %v1435_v39, %v1434_v34  ;;  %v3531_v34 = vld [vmem:[%s5447_s7 + $0x5] ss:$0 sm:$0xff]  ;;  %v3533_v39 = vld [vmem:[%s5447_s7 + $0x7] ss:$0 sm:$0xff] }
 0x249   : > { %v3865_v46 = vpack.c.bf16 %v1421_v42, %v1420_v41  ;;  %v3532_v41 = vld [vmem:[%s5447_s7 + $0x6] ss:$0 sm:$0xff]  ;;  %v3534_v42 = vld [vmem:[%s5447_s7 + $0x8] ss:$0 sm:$0xff] }
 0x24a   : > { %3896 = vmatpush3.bf16.msra.mxu1 %v3895_v3 }
 0x24b   : > { %1344 = vrot.lane.b32.xlu0 %v4506_v38, %s5459_s24  ;;  %3866 = vmatprep.subr.bf16.mxu0 %v3865_v46 }
 0x24c   : > { %3898 = vmatprep.subr.bf16.mxu1 %v3897_v54  ;;  %3868 = vmatpush3.bf16.msra.mxu0 %v3867_v58 }
 0x24d   : > { %3870 = vmatprep.subr.bf16.mxu0 %v3869_v60 }
 0x24e   : > { %3900 = vmatpush3.bf16.msra.mxu1 %v3899_v59 }
 0x24f   : > { %3902 = vmatprep.subr.bf16.mxu1 %v3901_v1 }
 0x250   : > { %3872 = vmatpush3.bf16.msra.mxu0 %v3871_v56 }
 0x251   : > { %3874 = vmatprep.subr.bf16.mxu0 %v3873_v16 }
 0x252   : > { %3904 = vmatpush3.bf16.msra.mxu1 %v3903_v10 }
 0x253   : > { %3906 = vmatprep.subr.bf16.mxu1 %v3905_v11 }
 0x254   : > { %3876 = vmatpush3.bf16.msra.mxu0 %v3875_v61 }
 0x256   : > { %3908 = vmatpush3.bf16.msra.mxu1 %v3907_v26 }
 0x2b9   : > { %v4364_v18 = vpop.permute.xlu0 %4363 }
 0x2ba   : > { %v4366_v23 = vunpack.i.h.bf16 %v4364_v18  ;;  %v4365_v50 = vunpack.i.l.bf16 %v4364_v18  ;;  %v4369_v25 = vpop.permute.xlu1 %4368 }
 0x2bb   : > { %v4371_v27 = vunpack.i.h.bf16 %v4369_v25  ;;  %v4370_v7 = vunpack.i.l.bf16 %v4369_v25 }
 0x2bc   : > { %v1347_v4 = vsel %vm773_vm3, %v4365_v50, %v4366_v23 }
 0x2bd   : > { %v1346_v5 = vsel %vm773_vm3, %v4371_v27, %v4365_v50  ;;  %v1348_v2 = vsel %vm773_vm3, %v4366_v23, %v4370_v7  ;;  %v1345_v55 = vpop.permute.xlu0 %1344  ;;  %v1355_v8 = vmax.f32 %v4948_v37, %v1347_v4  ;;  %v1458_v37 = vld [vmem:[%s5442_s2] sm:$0xff] }
 0x2be   : > { %v1349_v28 = vsel %vm773_vm3, %v4370_v7, %v1345_v55  ;;  %v1356_v30 = vmax.f32 %v4950_v29, %v1348_v2  ;;  %v1354_v31 = vmax.f32 %v4946_v36, %v1346_v5  ;;  %v3526_v36 = vld [vmem:[%s5447_s7] ss:$0 sm:$0xff]  ;;  %v3528_v29 = vld [vmem:[%s5447_s7 + $0x2] ss:$0 sm:$0xff] }
 0x2bf   : > { %v1357_v49 = vmax.f32 %v4954_v40, %v1349_v28  ;;  %v3527_v40 = vld [vmem:[%s5447_s7 + $0x1] ss:$0 sm:$0xff] }
 0x2c0   : > { %v4372_v33 = vpack.i.bf16 %v1356_v30, %v1355_v8 }
 0x2c1   : > { %v4377_v22 = vpack.i.bf16 %v1357_v49, %v1354_v31 }
 0x2c2   : > { %4373 = vrot.lane.b32.xlu1 %v4372_v33, %s4499_s28 }
 0x2c3   : > { %4378 = vrot.lane.b32.xlu0 %v4377_v22, %s4499_s28  ;;  %v1798_v22 = vld [vmem:[%s5445_s5] sm:$0xff] }
 0x2c6   : > { %1380 = vrot.lane.b32.xlu1 %v4506_v38, %s4499_s28  ;;  %s4511_s28 = smov 8  }
 0x2c7   : > { %1461 = vperm.xlu0 %4382, %v1458_v37  }
 0x2ca   : > { %1616 = vrot.lane.b32.xlu1 %v3526_v36, %s4508_s22 }
 0x2cb   : > { %1662 = vrot.lane.b32.xlu0 %v3528_v29, %s4509_s27 }
 0x2ce   : > { %1639 = vrot.lane.b32.xlu1 %v3527_v40, %s5461_s21  ;;  %s4513_s21 = smov 9  }
 0x2cf   : > { %1715 = vrot.lane.b32.xlu0 %v3531_v34, %s4502_s23 }
 0x2d2   : > { %1685 = vrot.lane.b32.xlu1 %v3529_v35, %s5468_s25 }
 0x2d3   : > { %1760 = vrot.lane.b32.xlu0 %v3533_v39, %s4511_s28 }
 0x2d6   : > { %1737 = vrot.lane.b32.xlu1 %v3532_v41, %s4512_s20 }
 0x2da   : > { %1783 = vrot.lane.b32.xlu1 %v3534_v42, %s4513_s21 }
 0x334   : > { %v4374_v43 = vpop.permute.xlu1 %4373 }
 0x335   : > { %v4376_v44 = vunpack.i.h.bf16 %v4374_v43  ;;  %v4375_v45 = vunpack.i.l.bf16 %v4374_v43  ;;  %v4379_v3 = vpop.permute.xlu0 %4378 }
 0x336   : > { %v4381_v46 = vunpack.i.h.bf16 %v4379_v3  ;;  %v4380_v51 = vunpack.i.l.bf16 %v4379_v3 }
 0x337   : > { %v1383_v52 = vsel %vm625_vm1, %v4375_v45, %v4376_v44 }
 0x338   : > { %v1384_v53 = vsel %vm625_vm1, %v4376_v44, %v4381_v46  ;;  %v1382_v54 = vsel %vm625_vm1, %v4380_v51, %v4375_v45  ;;  %v1381_v14 = vpop.permute.xlu1 %1380  ;;  %v1391_v24 = vmax.f32 %v1355_v8, %v1383_v52 }
 0x339   : > { %v1390_v13 = vmax.f32 %v1354_v31, %v1382_v54  ;;  %v1385_v58 = vsel %vm625_vm1, %v4381_v46, %v1381_v14  ;;  %v1392_v60 = vmax.f32 %v1356_v30, %v1384_v53 }
 0x33a   : > { %v1393_v59 = vmax.f32 %v1357_v49, %v1385_v58  ;;  %1528 = vmatprep.mubr.f32.mxu0 %v1391_v24 }
 0x33b   : > { %1529 = vmatmul.mubr.f32.vlgmr.msra.gmra.mrb[2].mxu0 %v1390_v13  ;;  %v3530_v13 = vld [vmem:[%s5447_s7 + $0x4] ss:$0 sm:$0xff] }
 0x33c   : > { %1598 = vmatprep.mubr.f32.mxu1 %v1393_v59  ;;  %v1617_v6 = vpop.permute.xlu1 %1616  ;;  %3713 = vmatprep.mubr.msk.f32.mxu0 %vm1175_vm8, %v1798_v22 }
 0x33d   : > { %1599 = vmatmul.mubr.f32.vlgmr.msra.gmra.mrb[2].mxu1 %v1392_v60  ;;  %v1619_v62 = vmul.f32 0.0, %v1617_v6 }
 0x340   : > { %v1640_v9 = vpop.permute.xlu1 %1639 }
 0x341   : > { %v1642_v19 = vmul.f32 0.0, %v1640_v9 }
 0x344   : > { %v1686_v61 = vpop.permute.xlu1 %1685 }
 0x345   : > { %v1688_v11 = vmul.f32 0.0, %v1686_v61 }
 0x346   : > { %v1462_v63 = vpop.permute.xlu0 %1461 }
 0x348   : > { %v1738_v27 = vpop.permute.xlu1 %1737 }
 0x349   : > { %v1741_v7 = vmul.f32 0.0, %v1738_v27 }
 0x34a   : > { %v1663_v12 = vpop.permute.xlu0 %1662 }
 0x34b   : > { %v1665_v20 = vmul.f32 0.0, %v1663_v12 }
 0x34c   : > { %v1784_v33 = vpop.permute.xlu1 %1783 }
 0x34d   : > { %v1787_v29 = vmul.f32 0.0, %v1784_v33 }
 0x34e   : > { %v1716_v21 = vpop.permute.xlu0 %1715 }
 0x34f   : > { %v1719_v4 = vmul.f32 0.0, %v1716_v21 }
 0x352   : > { %v1761_v28 = vpop.permute.xlu0 %1760 }
 0x353   : > { %v1764_v49 = vmul.f32 0.0, %v1761_v28 }
 0x40e   : > { %v3597_v56 = vpop.f32.mrb[2].mxu0 }
 0x40f   : > { %v3598_v57 = vpop.f32.mrb[3].mxu0 }
 0x410   : > { %v3599_v0 = vadd.f32 %v3598_v57, %v3597_v56  ;;  %v3632_v1 = vpop.f32.mrb[2].mxu1 }
 0x411   : > { %v3633_v48 = vpop.f32.mrb[3].mxu1 }
 0x412   : > { %v1531_v10 = vadd.f32 %v3599_v0, %v1462_v63  ;;  %v3634_v47 = vadd.f32 %v3633_v48, %v3632_v1 }
 0x414   : > { %v1601_v16 = vadd.f32 %v3634_v47, %v1531_v10 }
 0x416   : > { %v5205_v17 = vmax.f32 %v1601_v16, 0.0 }
 0x418   : > { %v1643_v15 = vmul.f32 %v1640_v9, %v5205_v17  ;;  %v1620_v18 = vmul.f32 %v1617_v6, %v5205_v17  ;;  %v1689_v25 = vmul.f32 %v1686_v61, %v5205_v17  ;;  %v1666_v26 = vmul.f32 %v1663_v12, %v5205_v17 }
 0x419   : > { %v1740_v5 = vmul.f32 %v1738_v27, %v5205_v17  ;;  %v1718_v2 = vmul.f32 %v1716_v21, %v5205_v17  ;;  %v1763_v32 = vmul.f32 %v1761_v28, %v5205_v17  ;;  %v1786_v37 = vmul.f32 %v1784_v33, %v5205_v17  ;;  %v1943_v27 = vld [vmem:[%s5448_s8 + $0x18] sm:$0xff] }
 0x41a   : > { %v4388_v23 = vpack.i.bf16 %v1643_v15, %v1642_v19  ;;  %v4383_v50 = vpack.i.bf16 %v1620_v18, %v1619_v62  ;;  %v4398_v55 = vpack.i.bf16 %v1689_v25, %v1688_v11  ;;  %v4393_v8 = vpack.i.bf16 %v1666_v26, %v1665_v20  ;;  %v1799_v15 = vld [vmem:[%s5445_s5 + $0x8] sm:$0xff]  ;;  %v1942_v25 = vld [vmem:[%s5448_s8 + $0x10] sm:$0xff]  ;;  %v1951_v33 = vld [vmem:[%s5448_s8 + $0x58] sm:$0xff] }
 0x41b   : > { %v4408_v30 = vpack.i.bf16 %v1741_v7, %v1740_v5  ;;  %v4403_v31 = vpack.i.bf16 %v1719_v4, %v1718_v2  ;;  %v4413_v36 = vpack.i.bf16 %v1764_v49, %v1763_v32  ;;  %v1705_v56 = vmul.f32 %v3530_v13, %v5205_v17  ;;  %v1944_v4 = vld [vmem:[%s5448_s8 + $0x20] sm:$0xff]  ;;  %v1945_v5 = vld [vmem:[%s5448_s8 + $0x28] sm:$0xff]  ;;  %v1950_v49 = vld [vmem:[%s5448_s8 + $0x50] sm:$0xff] }
 0x41c   : > { %4389 = vrot.lane.b32.xlu1 %v4388_v23, %s4511_s28  ;;  %4384 = vrot.lane.b32.xlu0 %v4383_v50, %s4513_s21  ;;  %v1940_v23 = vld [vmem:[%s5448_s8] sm:$0xff]  ;;  %v1941_v50 = vld [vmem:[%s5448_s8 + $0x8] sm:$0xff]  ;;  %v3929_v7 = vpack.c.bf16 %v1943_v27, %v1942_v25  ;;  %v3933_v2 = vpack.c.bf16 %v1945_v5, %v1944_v4  ;;  %v3945_v22 = vpack.c.bf16 %v1951_v33, %v1950_v49 }
 0x41d   : > { %v3925_v26 = vpack.c.bf16 %v1941_v50, %v1940_v23  ;;  %v1956_v13 = vld [vmem:[%s5446_s6] sm:$0xff]  ;;  %v2046_v23 = vld [vmem:[%s5449_s9 + $0x8] sm:$0xff]  ;;  %v2047_v25 = vld [vmem:[%s5449_s9 + $0x10] sm:$0xff] }
 0x41e   : > { %v3544_v27 = vld [vmem:[%s5451_s11 + $0x38] sm:$0xff]  ;;  %v3547_v5 = vld [vmem:[%s5451_s11 + $0x40] sm:$0xff]  ;;  %v2148_v33 = vld [vmem:[%s5451_s11 + $0x10] sm:$0xff] }
 0x41f   : > { %3926 = vmatprep.subr.bf16.mxu1 %v3925_v26 }
 0x420   : > { %4399 = vrot.lane.b32.xlu1 %v4398_v55, %s4502_s23  ;;  %4394 = vrot.lane.b32.xlu0 %v4393_v8, %s4512_s20  ;;  %s5469_s23 = smov 120   ;;  %v1946_v55 = vld [vmem:[%s5448_s8 + $0x30] sm:$0xff]  ;;  %v1947_v8 = vld [vmem:[%s5448_s8 + $0x38] sm:$0xff] }
 0x421   : > { %3928 = vmatpush3.bf16.msra.mxu1 %v3925_v26  ;;  %v3937_v28 = vpack.c.bf16 %v1947_v8, %v1946_v55  ;;  %v3543_v26 = vld [vmem:[%s5451_s11 + $0x30] sm:$0xff] }
 0x422   : > { %3930 = vmatprep.subr.bf16.mxu1 %v3929_v7  ;;  %v3965_v4 = vpack.c.bf16 %v3544_v27, %v3543_v26  ;;  %v3549_v8 = vld [vmem:[%s5451_s11 + $0x50] sm:$0xff]  ;;  %v2689_v26 = vld [vmem:[#allocation8 + $0x3b8] sm:$0xff] }
 0x424   : > { %4409 = vrot.lane.b32.xlu1 %v4408_v30, %s4509_s27  ;;  %4404 = vrot.lane.b32.xlu0 %v4403_v31, %s5468_s25  ;;  %v1948_v30 = vld [vmem:[%s5448_s8 + $0x40] sm:$0xff]  ;;  %v1949_v31 = vld [vmem:[%s5448_s8 + $0x48] sm:$0xff] }
 0x425   : > { %3932 = vmatpush3.bf16.msra.mxu1 %v3929_v7  ;;  %v3941_v32 = vpack.c.bf16 %v1949_v31, %v1948_v30  ;;  %v2048_v7 = vld [vmem:[%s5449_s9 + $0x18] sm:$0xff]  ;;  %v2146_v31 = vld [vmem:[%s5451_s11] sm:$0xff] }
 0x426   : > { %3934 = vmatprep.subr.bf16.mxu1 %v3933_v2 }
 0x428   : > { %1790 = vrot.lane.b32.xlu1 %v1786_v37, %s4508_s22  ;;  %4414 = vrot.lane.b32.xlu0 %v4413_v36, %s5469_s23  ;;  %v1952_v37 = vld [vmem:[%s5448_s8 + $0x60] sm:$0xff]  ;;  %v1953_v36 = vld [vmem:[%s5448_s8 + $0x68] sm:$0xff] }
 0x429   : > { %3936 = vmatpush3.bf16.msra.mxu1 %v3933_v2  ;;  %v3548_v2 = vld [vmem:[%s5451_s11 + $0x48] sm:$0xff] }
 0x42a   : > { %3938 = vmatprep.subr.bf16.mxu1 %v3937_v28  ;;  %v3974_v55 = vpack.c.bf16 %v3548_v2, %v3547_v5  ;;  %v2688_v5 = vld [vmem:[#allocation8 + $0x3b0] sm:$0xff]  ;;  %v2693_v2 = vld [vmem:[#allocation8 + $0x3d8] sm:$0xff] }
 0x42c   : > { %1792 = vrot.lane.b32.xlu0 %v1787_v29, %s4508_s22  ;;  %v3949_v29 = vpack.c.bf16 %v1953_v36, %v1952_v37 }
 0x42d   : > { %3940 = vmatpush3.bf16.msra.mxu1 %v3937_v28  ;;  %v3550_v28 = vld [vmem:[%s5451_s11 + $0x58] sm:$0xff] }
 0x42e   : > { %3942 = vmatprep.subr.bf16.mxu1 %v3941_v32  ;;  %v3977_v30 = vpack.c.bf16 %v3550_v28, %v3549_v8 }
 0x431   : > { %3944 = vmatpush3.bf16.msra.mxu1 %v3941_v32  ;;  %v2147_v32 = vld [vmem:[%s5451_s11 + $0x8] sm:$0xff] }
 0x432   : > { %3946 = vmatprep.subr.bf16.mxu1 %v3945_v22  ;;  %v3968_v49 = vpack.c.bf16 %v2147_v32, %v2146_v31  ;;  %v2696_v31 = vld [vmem:[#allocation8 + $0x3f0] sm:$0xff] }
 0x435   : > { %3948 = vmatpush3.bf16.msra.mxu1 %v3945_v22  ;;  %v2149_v22 = vld [vmem:[%s5451_s11 + $0x18] sm:$0xff] }
 0x436   : > { %3950 = vmatprep.subr.bf16.mxu1 %v3949_v29 }
 0x439   : > { %3952 = vmatpush3.bf16.msra.mxu1 %v3949_v29  ;;  %v3971_v29 = vpack.c.bf16 %v2149_v22, %v2148_v33 }
 0x48e   : > { %v4390_v40 = vpop.permute.xlu1 %4389  ;;  %v4385_v34 = vpop.permute.xlu0 %4384 }
 0x48f   : > { %v4392_v35 = vunpack.i.h.bf16 %v4390_v40  ;;  %v4391_v39 = vunpack.i.l.bf16 %v4390_v40  ;;  %v4387_v41 = vunpack.i.h.bf16 %v4385_v34  ;;  %v4386_v42 = vunpack.i.l.bf16 %v4385_v34  ;;  %v1954_v40 = vld [vmem:[%s5448_s8 + $0x70] sm:$0xff]  ;;  %v1955_v34 = vld [vmem:[%s5448_s8 + $0x78] sm:$0xff] }
 0x491   : > { %v1628_v43 = vsel %vm1627_vm9, %v4386_v42, %v4387_v41  ;;  %v1651_v44 = vsel %vm1650_vm10, %v4391_v39, %v4392_v35  ;;  %v3953_v35 = vpack.c.bf16 %v1955_v34, %v1954_v40  ;;  %v3552_v40 = vld [vmem:[%s5451_s11 + $0x60] sm:$0xff]  ;;  %v3553_v34 = vld [vmem:[%s5451_s11 + $0x68] sm:$0xff] }
 0x492   : > { %v4400_v45 = vpop.permute.xlu1 %4399  ;;  %v4395_v3 = vpop.permute.xlu0 %4394  ;;  %v3909_v46 = vpack.c.bf16 %v1651_v44, %v1628_v43 }
 0x493   : > { %v4402_v51 = vunpack.i.h.bf16 %v4400_v45  ;;  %v4401_v52 = vunpack.i.l.bf16 %v4400_v45  ;;  %v4397_v53 = vunpack.i.h.bf16 %v4395_v3  ;;  %v4396_v54 = vunpack.i.l.bf16 %v4395_v3  ;;  %3954 = vmatprep.subr.bf16.mxu1 %v3953_v35 }
 0x494   : > { %3910 = vmatprep.subr.bf16.mxu0 %v3909_v46  ;;  %3956 = vmatpush3.bf16.msra.mxu1 %v3953_v35 }
 0x495   : > { %3912 = vmatpush3.bf16.msra.mxu0 %v3909_v46  ;;  %v1674_v14 = vsel %vm1673_vm11, %v4396_v54, %v4397_v53  ;;  %v1696_v24 = vsel %vm802_vm4, %v4401_v52, %v4402_v51 }
 0x496   : > { %v4410_v58 = vpop.permute.xlu1 %4409  ;;  %v4405_v59 = vpop.permute.xlu0 %4404  ;;  %v3913_v60 = vpack.c.bf16 %v1696_v24, %v1674_v14  ;;  %v1957_v14 = vld [vmem:[%s5446_s6 + $0x8] sm:$0xff]  ;;  %v3404_v24 = vld [vmem:[%s5453_s13] sm:$0xff] }
 0x497   : > { %v4407_v6 = vunpack.i.h.bf16 %v4405_v59  ;;  %v4406_v63 = vunpack.i.l.bf16 %v4405_v59  ;;  %v4412_v57 = vunpack.i.h.bf16 %v4410_v58  ;;  %v4411_v0 = vunpack.i.l.bf16 %v4410_v58  ;;  %v2460_v58 = vld [vmem:[%s5450_s10] sm:$0xff] }
 0x498   : > { %3914 = vmatprep.subr.bf16.mxu0 %v3913_v60 }
 0x499   : > { %3916 = vmatpush3.bf16.msra.mxu0 %v3913_v60  ;;  %v1726_v1 = vsel %vm773_vm3, %v4406_v63, %v4407_v6  ;;  %v1749_v12 = vsel %vm1748_vm12, %v4411_v0, %v4412_v57 }
 0x49a   : > { %v4415_v9 = vpop.permute.xlu0 %4414  ;;  %v3917_v48 = vpack.c.bf16 %v1726_v1, %v1705_v56  ;;  %v1791_v17 = vpop.permute.xlu1 %1790 }
 0x49b   : > { %v4417_v10 = vunpack.i.h.bf16 %v4415_v9  ;;  %v4416_v47 = vunpack.i.l.bf16 %v4415_v9 }
 0x49c   : > { %3918 = vmatprep.subr.bf16.mxu0 %v3917_v48 }
 0x49d   : > { %3920 = vmatpush3.bf16.msra.mxu0 %v3917_v48  ;;  %v1772_v16 = vsel %vm1771_vm13, %v4416_v47, %v4417_v10  ;;  %v2045_v10 = vld [vmem:[%s5449_s9] sm:$0xff]  ;;  %v4514_v47 = vmov 0.0|0.0  }
 0x49e   : > { %v1793_v19 = vpop.permute.xlu0 %1792  ;;  %v3921_v61 = vpack.c.bf16 %v1772_v16, %v1749_v12  ;;  %3973 = vmatprep.subr.bf16.mxu1 %v4514_v47 }
 0x49f   : > { %v1795_v62 = vsel %vm1794_vm14, %v1791_v17, %v1793_v19 }
 0x4a0   : > { %3922 = vmatprep.subr.bf16.mxu0 %v3921_v61 }
 0x4a1   : > { %3924 = vmatpush3.bf16.msra.mxu0 %v3921_v61 }
 0x4a2   : > { %3711 = vmatprep.subr.mxu0 %v1795_v62 }
 0x4a5   : > { %3712 = vmatpush3.msra.mxu0 %v1795_v62 }
 0x4a6   : > { %3714 = vmatmul.mubr.msk.f32.vlgmr.msra.gmra.mrb[4].mxu0 %vm1175_vm8, %v1799_v15 }
 0x4a7   : > { %3755 = vmatprep.mubr.msk.f32.mxu0 %vm654_vm6, %v2045_v10 }
 0x579   : > { %v3715_v18 = vpop.f32.mrb[4].mxu0 }
 0x57a   : > { %v4423_v11 = vpack.i.bf16 %v4506_v38, %v3715_v18  ;;  %v1881_v20 = vpop.f32.mrb[5].mxu0 }
 0x57b   : > { %v4418_v21 = vpack.i.bf16 %v4506_v38, %v1881_v20 }
 0x57c   : > { %4424 = vrot.lane.b32.xlu0 %v4423_v11, %s5468_s25 }
 0x57d   : > { %4419 = vrot.lane.b32.xlu1 %v4418_v21, %s5468_s25  ;;  %v3542_v21 = vld [vmem:[%s5451_s11 + $0x28] sm:$0xff] }
 0x5ee   : > { %v4425_v39 = vpop.permute.xlu0 %4424 }
 0x5ef   : > { %v4427_v41 = vunpack.i.h.bf16 %v4425_v39  ;;  %v4426_v42 = vunpack.i.l.bf16 %v4425_v39  ;;  %v4420_v43 = vpop.permute.xlu1 %4419 }
 0x5f0   : > { %v4422_v44 = vunpack.i.h.bf16 %v4420_v43  ;;  %v4421_v45 = vunpack.i.l.bf16 %v4420_v43  ;;  %v3555_v43 = vld [vmem:[%s5451_s11 + $0x78] sm:$0xff] }
 0x5f1   : > { %v1911_v3 = vsel %vm773_vm3, %v4426_v42, %v4427_v41  ;;  %v3980_v41 = vpack.c.bf16 %v3553_v34, %v3552_v40  ;;  %v3554_v42 = vld [vmem:[%s5451_s11 + $0x70] sm:$0xff] }
 0x5f2   : > { %v1910_v46 = vsel %vm773_vm3, %v4421_v45, %v4422_v44  ;;  %v1915_v51 = vmax.f32 %v3715_v18, %v1911_v3  ;;  %v3983_v44 = vpack.c.bf16 %v3555_v43, %v3554_v42  ;;  %v2468_v45 = vld [vmem:[%s5452_s12] sm:$0xff]  ;;  %v2637_v3 = vld [vmem:[#allocation8 + $0x218] sm:$0xff]  ;;  %v2635_v43 = vld [vmem:[#allocation8 + $0x208] sm:$0xff] }
 0x5f3   : > { %v1914_v52 = vmax.f32 %v1881_v20, %v1910_v46  ;;  %v3541_v20 = vld [vmem:[%s5451_s11 + $0x20] sm:$0xff]  ;;  %v2641_v46 = vld [vmem:[#allocation8 + $0x238] sm:$0xff] }
 0x5f4   : > { %v4433_v53 = vpack.i.bf16 %v4506_v38, %v1915_v51  ;;  %v3962_v50 = vpack.c.bf16 %v3542_v21, %v3541_v20 }
 0x5f5   : > { %v4428_v54 = vpack.i.bf16 %v4506_v38, %v1914_v52 }
 0x5f6   : > { %4434 = vrot.lane.b32.xlu0 %v4433_v53, %s5469_s23  ;;  %v2640_v53 = vld [vmem:[#allocation8 + $0x230] sm:$0xff] }
 0x5f7   : > { %4429 = vrot.lane.b32.xlu1 %v4428_v54, %s5469_s23 }
 0x5fa   : > { %1965 = vperm.xlu0 %4382, %v1957_v14   ;;  %v2645_v14 = vld [vmem:[#allocation8 + $0x258] sm:$0xff] }
 0x5fb   : > { %1960 = vperm.xlu1 %4438, %v1956_v13  }
 0x5fe   : > { %3407 = vperm.xlu0 %4382, %v3404_v24   ;;  %v2649_v24 = vld [vmem:[#allocation8 + $0x278] sm:$0xff] }
 0x5ff   : > { %2463 = vperm.xlu1 %4438, %v2460_v58   ;;  %v4021_v13 = vpack.c.bf16 %v2649_v24, %v2645_v14  ;;  %v2644_v58 = vld [vmem:[#allocation8 + $0x250] sm:$0xff]  ;;  %v2469_v14 = vld [vmem:[%s5452_s12 + $0x8] sm:$0xff] }
 0x668   : > { %v4435_v59 = vpop.permute.xlu0 %4434 }
 0x669   : > { %v4437_v60 = vunpack.i.h.bf16 %v4435_v59  ;;  %v4436_v6 = vunpack.i.l.bf16 %v4435_v59  ;;  %v4430_v63 = vpop.permute.xlu1 %4429  ;;  %v2648_v59 = vld [vmem:[#allocation8 + $0x270] sm:$0xff] }
 0x66a   : > { %v4432_v56 = vunpack.i.h.bf16 %v4430_v63  ;;  %v4431_v57 = vunpack.i.l.bf16 %v4430_v63  ;;  %v2657_v63 = vld [vmem:[#allocation8 + $0x2b8] sm:$0xff] }
 0x66b   : > { %v1935_v0 = vsel %vm1771_vm13, %v4436_v6, %v4437_v60  ;;  %v4023_v60 = vpack.c.bf16 %v2648_v59, %v2644_v58  ;;  %v2653_v6 = vld [vmem:[#allocation8 + $0x298] sm:$0xff]  ;;  %v2642_v59 = vld [vmem:[#allocation8 + $0x240] sm:$0xff] }
 0x66c   : > { %v1934_v1 = vsel %vm1771_vm13, %v4431_v57, %v4432_v56  ;;  %v1939_v48 = vmax.f32 %v1915_v51, %v1935_v0  ;;  %v4017_v51 = vpack.c.bf16 %v2641_v46, %v2637_v3  ;;  %v4025_v56 = vpack.c.bf16 %v2657_v63, %v2653_v6  ;;  %v2652_v57 = vld [vmem:[#allocation8 + $0x290] sm:$0xff]  ;;  %v2634_v3 = vld [vmem:[#allocation8 + $0x200] sm:$0xff]  ;;  %v2651_v6 = vld [vmem:[#allocation8 + $0x288] sm:$0xff] }
 0x66d   : > { %v1938_v9 = vmax.f32 %v1914_v52, %v1934_v1  ;;  %v2636_v52 = vld [vmem:[#allocation8 + $0x210] sm:$0xff]  ;;  %v2661_v1 = vld [vmem:[#allocation8 + $0x2d8] sm:$0xff]  ;;  %v2638_v46 = vld [vmem:[#allocation8 + $0x220] sm:$0xff] }
 0x66e   : > { %v4019_v54 = vpack.c.bf16 %v2640_v53, %v2636_v52  ;;  %v2656_v0 = vld [vmem:[#allocation8 + $0x2b0] sm:$0xff]  ;;  %v2647_v52 = vld [vmem:[#allocation8 + $0x268] sm:$0xff]  ;;  %v3987_v24 = vpack.c.bf16 %v2638_v46, %v2634_v3  ;;  %v2584_v3 = vld [vmem:[#allocation8 + $0x78] sm:$0xff] }
 0x66f   : > { %3748 = vmatprep.mubr.f32.mxu1 %v1938_v9  ;;  %v4027_v9 = vpack.c.bf16 %v2656_v0, %v2652_v57  ;;  %v2655_v63 = vld [vmem:[#allocation8 + $0x2a8] sm:$0xff] }
 0x670   : > { %3749 = vmatmul.mubr.f32.vlgmr.msra.gmra.mrb[4].mxu1 %v1939_v48  ;;  %v2665_v48 = vld [vmem:[#allocation8 + $0x2f8] sm:$0xff]  ;;  %v3993_v0 = vpack.c.bf16 %v2655_v63, %v2651_v6 }
 0x671   : > { %3791 = vmatprep.mubr.msk.f32.mxu1 %vm4515_vm15, %v4506_v38  ;;  %3975 = vmatpush3.bf16.msra.mxu1 %v3974_v55  ;;  %v4029_v10 = vpack.c.bf16 %v2665_v48, %v2661_v1  ;;  %v2697_v55 = vld [vmem:[#allocation8 + $0x3f8] sm:$0xff]  ;;  %v2650_v1 = vld [vmem:[#allocation8 + $0x280] sm:$0xff]  ;;  %v2659_v48 = vld [vmem:[#allocation8 + $0x2c8] sm:$0xff] }
 0x672   : > { %3976 = vmatprep.subr.bf16.mxu1 %v4514_v47  ;;  %v4045_v28 = vpack.c.bf16 %v2697_v55, %v2693_v2  ;;  %v2682_v2 = vld [vmem:[#allocation8 + $0x380] sm:$0xff]  ;;  %v2588_v6 = vld [vmem:[#allocation8 + $0x98] sm:$0xff] }
 0x673   : > { %v2686_v55 = vld [vmem:[#allocation8 + $0x3a0] sm:$0xff]  ;;  %v2592_v63 = vld [vmem:[#allocation8 + $0xb8] sm:$0xff] }
 0x675   : > { %3978 = vmatpush3.bf16.msra.mxu1 %v3977_v30  ;;  %v2692_v30 = vld [vmem:[#allocation8 + $0x3d0] sm:$0xff] }
 0x676   : > { %v4047_v32 = vpack.c.bf16 %v2696_v31, %v2692_v30  ;;  %v4011_v30 = vpack.c.bf16 %v2686_v55, %v2682_v2 }
 0x679   : > { %v1966_v12 = vpop.permute.xlu0 %1965 }
 0x67a   : > { %v1961_v19 = vpop.permute.xlu1 %1960 }
 0x67e   : > { %v2464_v42 = vpop.permute.xlu1 %2463 }
 0x743   : > { %v3750_v16 = vpop.f32.mrb[4].mxu1 }
 0x744   : > { %v2040_v61 = vadd.f32 %v3750_v16, %v1966_v12  ;;  %v2034_v17 = vpop.f32.mrb[5].mxu1  ;;  %v2664_v12 = vld [vmem:[#allocation8 + $0x2f0] sm:$0xff]  ;;  %v2669_v16 = vld [vmem:[#allocation8 + $0x318] sm:$0xff] }
 0x745   : > { %v2035_v62 = vadd.f32 %v2034_v17, %v1961_v19  ;;  %v2673_v19 = vld [vmem:[#allocation8 + $0x338] sm:$0xff] }
 0x746   : > { %v2044_v15 = vmax.f32 %v2040_v61, 0.0  ;;  %v4033_v17 = vpack.c.bf16 %v2673_v19, %v2669_v16  ;;  %v2658_v16 = vld [vmem:[#allocation8 + $0x2c0] sm:$0xff] }
 0x747   : > { %v2043_v18 = vmax.f32 %v2035_v62, 0.0  ;;  %v2668_v62 = vld [vmem:[#allocation8 + $0x310] sm:$0xff]  ;;  %v2662_v19 = vld [vmem:[#allocation8 + $0x2e0] sm:$0xff] }
 0x749   : > { %v3957_v11 = vpack.c.bf16 %v2044_v15, %v2043_v18  ;;  %v2672_v15 = vld [vmem:[#allocation8 + $0x330] sm:$0xff]  ;;  %v2677_v18 = vld [vmem:[#allocation8 + $0x358] sm:$0xff] }
 0x74a   : > { %v4035_v20 = vpack.c.bf16 %v2672_v15, %v2668_v62  ;;  %v3999_v62 = vpack.c.bf16 %v2662_v19, %v2658_v16  ;;  %v2594_v16 = vld [vmem:[#allocation8 + $0xc8] sm:$0xff] }
 0x74b   : > { %3958 = vmatprep.subr.bf16.mxu0 %v3957_v11  ;;  %v2598_v19 = vld [vmem:[#allocation8 + $0xe8] sm:$0xff] }
 0x74c   : > { %3960 = vmatpush3.bf16.msra.mxu0 %v3957_v11  ;;  %v2681_v11 = vld [vmem:[#allocation8 + $0x378] sm:$0xff] }
 0x74d   : > { %3961 = vmatprep.subr.bf16.mxu0 %v4514_v47  ;;  %v4037_v21 = vpack.c.bf16 %v2681_v11, %v2677_v18  ;;  %v2666_v18 = vld [vmem:[#allocation8 + $0x300] sm:$0xff] }
 0x74e   : > { %v2670_v11 = vld [vmem:[#allocation8 + $0x320] sm:$0xff] }
 0x74f   : > { %3756 = vmatmul.mubr.msk.f32.vlgmr.msra.gmra.mrb[6].mxu0 %vm654_vm6, %v2046_v23  ;;  %v2676_v23 = vld [vmem:[#allocation8 + $0x350] sm:$0xff] }
 0x750   : > { %3758 = vmatprep.mubr.msk.f32.mxu0 %vm654_vm6, %v2047_v25  ;;  %3963 = vmatpush3.bf16.msra.mxu0 %v3962_v50  ;;  %v2680_v50 = vld [vmem:[#allocation8 + $0x370] sm:$0xff]  ;;  %v2685_v25 = vld [vmem:[#allocation8 + $0x398] sm:$0xff] }
 0x751   : > { %3964 = vmatprep.subr.bf16.mxu0 %v4514_v47  ;;  %v4039_v27 = vpack.c.bf16 %v2680_v50, %v2676_v23  ;;  %v4003_v23 = vpack.c.bf16 %v2670_v11, %v2666_v18 }
 0x753   : > { %3759 = vmatmul.mubr.msk.f32.gmra.mrb[8].mxu0 %vm654_vm6, %v2048_v7  ;;  %v4041_v7 = vpack.c.bf16 %v2689_v26, %v2685_v25  ;;  %v2674_v25 = vld [vmem:[#allocation8 + $0x340] sm:$0xff] }
 0x754   : > { %3966 = vmatpush3.bf16.msra.mxu0 %v3965_v4  ;;  %3769 = vmatprep.mubr.msk.f32.mxu0 %vm4515_vm15, %v4506_v38  ;;  %v2684_v4 = vld [vmem:[#allocation8 + $0x390] sm:$0xff]  ;;  %v2678_v26 = vld [vmem:[#allocation8 + $0x360] sm:$0xff] }
 0x755   : > { %3967 = vmatprep.subr.bf16.mxu0 %v4514_v47  ;;  %v4043_v8 = vpack.c.bf16 %v2688_v5, %v2684_v4  ;;  %v4007_v4 = vpack.c.bf16 %v2678_v26, %v2674_v25  ;;  %v2595_v25 = vld [vmem:[#allocation8 + $0xd0] sm:$0xff] }
 0x756   : > { %v2599_v26 = vld [vmem:[#allocation8 + $0xf0] sm:$0xff] }
 0x757   : > { %v4095_v55 = vpack.c.bf16 %v2599_v26, %v2595_v25  ;;  %v2985_v25 = vld [vmem:[#allocation8 + $0x410] sm:$0xff] }
 0x758   : > { %v2989_v26 = vld [vmem:[#allocation8 + $0x430] sm:$0xff] }
 0x822   : > { %v3757_v37 = vpop.f32.mrb[6].mxu0 }
 0x823   : > { %v2127_v36 = vpop.f32.mrb[7].mxu0  ;;  %3770 = vmatmul.mubr.msk.f32.vlgmr.msra.gmra.mrb[10].mxu0 %vm2155_vm0, %v3757_v37 }
 0x824   : > { %3969 = vmatpush3.bf16.msra.mxu0 %v3968_v49  ;;  %3780 = vmatprep.mubr.msk.f32.mxu0 %vm4515_vm15, %v4506_v38 }
 0x825   : > { %3970 = vmatprep.subr.bf16.mxu0 %v4514_v47 }
 0x826   : > { %v3760_v35 = vpop.f32.mrb[8].mxu0 }
 0x827   : > { %v2137_v39 = vpop.f32.mrb[9].mxu0 }
 0x828   : > { %3972 = vmatpush3.bf16.msra.mxu0 %v3971_v29  ;;  %3792 = vmatmul.mubr.msk.f32.vlgmr.msra.gmra.mrb[6].mxu1 %vm2155_vm0, %v2137_v39 }
 0x829   : > { %3979 = vmatprep.subr.bf16.mxu0 %v4514_v47  ;;  %3807 = vmatprep.mubr.msk.f32.mxu1 %vm1650_vm10, %v2468_v45 }
 0x82b   : > { %3781 = vmatmul.mubr.msk.f32.vlgmr.msra.gmra.mrb[12].mxu0 %vm2155_vm0, %v2127_v36 }
 0x82c   : > { %3981 = vmatpush3.bf16.msra.mxu0 %v3980_v41  ;;  %3802 = vmatprep.mubr.msk.f32.mxu0 %vm4515_vm15, %v4506_v38 }
 0x82d   : > { %3982 = vmatprep.subr.bf16.mxu0 %v4514_v47  ;;  %v2660_v47 = vld [vmem:[#allocation8 + $0x2d0] sm:$0xff] }
 0x82e   : > { %v4031_v61 = vpack.c.bf16 %v2664_v12, %v2660_v47 }
 0x830   : > { %3984 = vmatpush3.bf16.msra.mxu0 %v3983_v44  ;;  %v2639_v44 = vld [vmem:[#allocation8 + $0x228] sm:$0xff] }
 0x831   : > { %4018 = vmatprep.subr.bf16.mxu0 %v4017_v51  ;;  %v2643_v51 = vld [vmem:[#allocation8 + $0x248] sm:$0xff] }
 0x832   : > { %v3989_v58 = vpack.c.bf16 %v2647_v52, %v2643_v51  ;;  %v2577_v52 = vld [vmem:[#allocation8 + $0x40] sm:$0xff] }
 0x833   : > { %3803 = vmatmul.mubr.msk.f32.vlgmr.msra.gmra.mrb[14].mxu0 %vm2155_vm0, %v3760_v35 }
 0x834   : > { %2833 = vmatprep.mubr.f32.mxu0 %v4506_v38  ;;  %4020 = vmatpush1.bf16.msra.mxu0 %v4019_v54  ;;  %v3985_v54 = vpack.c.bf16 %v2639_v44, %v2635_v43  ;;  %v2578_v43 = vld [vmem:[#allocation8 + $0x48] sm:$0xff] }
 0x835   : > { %4022 = vmatprep.subr.bf16.mxu0 %v4021_v13  ;;  %v2470_v13 = vld [vmem:[%s5452_s12 + $0x10] sm:$0xff]  ;;  %v2582_v44 = vld [vmem:[#allocation8 + $0x68] sm:$0xff] }
 0x838   : > { %4024 = vmatpush1.bf16.msra.mxu0 %v4023_v60  ;;  %v2646_v60 = vld [vmem:[#allocation8 + $0x260] sm:$0xff] }
 0x839   : > { %4026 = vmatprep.subr.bf16.mxu0 %v4025_v56  ;;  %v2471_v56 = vld [vmem:[%s5452_s12 + $0x18] sm:$0xff]  ;;  %v3991_v57 = vpack.c.bf16 %v2646_v60, %v2642_v59  ;;  %v2590_v60 = vld [vmem:[#allocation8 + $0xa8] sm:$0xff] }
 0x83c   : > { %4028 = vmatpush1.bf16.msra.mxu0 %v4027_v9  ;;  %v2654_v9 = vld [vmem:[#allocation8 + $0x2a0] sm:$0xff] }
 0x83d   : > { %4030 = vmatprep.subr.bf16.mxu0 %v4029_v10  ;;  %v2663_v10 = vld [vmem:[#allocation8 + $0x2e8] sm:$0xff]  ;;  %v3995_v47 = vpack.c.bf16 %v2654_v9, %v2650_v1  ;;  %v2585_v1 = vld [vmem:[#allocation8 + $0x80] sm:$0xff] }
 0x83e   : > { %v3997_v12 = vpack.c.bf16 %v2663_v10, %v2659_v48  ;;  %v2589_v9 = vld [vmem:[#allocation8 + $0xa0] sm:$0xff]  ;;  %v4089_v10 = vpack.c.bf16 %v2592_v63, %v2588_v6  ;;  %v2628_v6 = vld [vmem:[#allocation8 + $0x1d8] sm:$0xff] }
 0x83f   : > { %v4059_v18 = vpack.c.bf16 %v2589_v9, %v2585_v1  ;;  %v2632_v63 = vld [vmem:[#allocation8 + $0x1f8] sm:$0xff]  ;;  %v2625_v1 = vld [vmem:[#allocation8 + $0x1c0] sm:$0xff] }
 0x840   : > { %4032 = vmatpush1.bf16.msra.mxu0 %v4031_v61  ;;  %v2667_v61 = vld [vmem:[#allocation8 + $0x308] sm:$0xff]  ;;  %v2629_v9 = vld [vmem:[#allocation8 + $0x1e0] sm:$0xff] }
 0x841   : > { %4034 = vmatprep.subr.bf16.mxu0 %v4033_v17  ;;  %v2671_v17 = vld [vmem:[#allocation8 + $0x328] sm:$0xff] }
 0x842   : > { %v4001_v15 = vpack.c.bf16 %v2671_v17, %v2667_v61  ;;  %v2596_v61 = vld [vmem:[#allocation8 + $0xd8] sm:$0xff] }
 0x843   : > { %v2600_v17 = vld [vmem:[#allocation8 + $0xf8] sm:$0xff] }
 0x844   : > { %4036 = vmatpush1.bf16.msra.mxu0 %v4035_v20  ;;  %v2675_v20 = vld [vmem:[#allocation8 + $0x348] sm:$0xff] }
 0x845   : > { %4038 = vmatprep.subr.bf16.mxu0 %v4037_v21  ;;  %v2679_v21 = vld [vmem:[#allocation8 + $0x368] sm:$0xff] }
 0x846   : > { %v4005_v50 = vpack.c.bf16 %v2679_v21, %v2675_v20  ;;  %v2593_v20 = vld [vmem:[#allocation8 + $0xc0] sm:$0xff] }
 0x847   : > { %v2597_v21 = vld [vmem:[#allocation8 + $0xe0] sm:$0xff] }
 0x848   : > { %4040 = vmatpush1.bf16.msra.mxu0 %v4039_v27  ;;  %v2683_v27 = vld [vmem:[#allocation8 + $0x388] sm:$0xff]  ;;  %v4063_v2 = vpack.c.bf16 %v2597_v21, %v2593_v20  ;;  %v2983_v20 = vld [vmem:[#allocation8 + $0x400] sm:$0xff] }
 0x849   : > { %4042 = vmatprep.subr.bf16.mxu0 %v4041_v7  ;;  %v2687_v7 = vld [vmem:[#allocation8 + $0x3a8] sm:$0xff]  ;;  %v2987_v21 = vld [vmem:[#allocation8 + $0x420] sm:$0xff] }
 0x84a   : > { %v4009_v5 = vpack.c.bf16 %v2687_v7, %v2683_v27  ;;  %v2602_v27 = vld [vmem:[#allocation8 + $0x108] sm:$0xff] }
 0x84b   : > { %v2606_v7 = vld [vmem:[#allocation8 + $0x128] sm:$0xff] }
 0x84c   : > { %4044 = vmatpush1.bf16.msra.mxu0 %v4043_v8  ;;  %v2691_v8 = vld [vmem:[#allocation8 + $0x3c8] sm:$0xff] }
 0x84d   : > { %4046 = vmatprep.subr.bf16.mxu0 %v4045_v28  ;;  %v2695_v28 = vld [vmem:[#allocation8 + $0x3e8] sm:$0xff] }
 0x84e   : > { %v4013_v31 = vpack.c.bf16 %v2695_v28, %v2691_v8  ;;  %v2601_v8 = vld [vmem:[#allocation8 + $0x100] sm:$0xff] }
 0x84f   : > { %v2605_v28 = vld [vmem:[#allocation8 + $0x120] sm:$0xff] }
 0x850   : > { %4048 = vmatpush1.bf16.msra.mxu0 %v4047_v32  ;;  %v2690_v32 = vld [vmem:[#allocation8 + $0x3c0] sm:$0xff] }
 0x8f6   : > { %v2225_v49 = vpop.f32.mrb[10].mxu0 }
 0x8f7   : > { %v3771_v33 = vpop.f32.mrb[11].mxu0 }
 0x8fb   : > { %v2376_v22 = vpop.f32.mrb[6].mxu1 }
 0x8fc   : > { %v3793_v37 = vpop.f32.mrb[7].mxu1 }
 0x8fd   : > { %v2574_v37 = vld [vmem:[#allocation8 + $0x28] sm:$0xff] }
 0x8fe   : > { %v2298_v36 = vpop.f32.mrb[12].mxu0 }
 0x8ff   : > { %v2299_v29 = vadd.f32 %v2298_v36, %v2225_v49  ;;  %v3782_v40 = vpop.f32.mrb[13].mxu0  ;;  %v2694_v49 = vld [vmem:[#allocation8 + $0x3e0] sm:$0xff]  ;;  %v2572_v36 = vld [vmem:[#allocation8 + $0x18] sm:$0xff] }
 0x900   : > { %v4015_v33 = vpack.c.bf16 %v2694_v49, %v2690_v32  ;;  %v2576_v40 = vld [vmem:[#allocation8 + $0x38] sm:$0xff]  ;;  %v2603_v32 = vld [vmem:[#allocation8 + $0x110] sm:$0xff] }
 0x901   : > { %v2380_v34 = vadd.f32 %v2376_v22, %v2299_v29  ;;  %v2570_v22 = vld [vmem:[#allocation8 + $0x8] sm:$0xff]  ;;  %v2607_v49 = vld [vmem:[#allocation8 + $0x130] sm:$0xff] }
 0x902   : > { %v4049_v29 = vpack.c.bf16 %v2574_v37, %v2570_v22  ;;  %v2614_v22 = vld [vmem:[#allocation8 + $0x168] sm:$0xff]  ;;  %v2612_v37 = vld [vmem:[#allocation8 + $0x158] sm:$0xff] }
 0x906   : > { %v2455_v35 = vpop.f32.mrb[14].mxu0 }
 0x907   : > { %v2459_v39 = vadd.f32 %v2455_v35, %v2380_v34  ;;  %v3804_v41 = vpop.f32.mrb[15].mxu0  ;;  %v4081_v34 = vpack.c.bf16 %v2576_v40, %v2572_v36  ;;  %v2569_v35 = vld [vmem:[#allocation8] sm:$0xff]  ;;  %v2616_v36 = vld [vmem:[#allocation8 + $0x178] sm:$0xff]  ;;  %v4099_v40 = vpack.c.bf16 %v2607_v49, %v2603_v32  ;;  %v2993_v32 = vld [vmem:[#allocation8 + $0x450] sm:$0xff] }
 0x908   : > { %v2571_v41 = vld [vmem:[#allocation8 + $0x10] sm:$0xff] }
 0x909   : > { %v2466_v45 = vadd.f32 %v2464_v42, %v2459_v39  ;;  %4082 = vmatprep.subr.bf16.mxu0 %v4081_v34  ;;  %v2573_v39 = vld [vmem:[#allocation8 + $0x20] sm:$0xff]  ;;  %v2575_v42 = vld [vmem:[#allocation8 + $0x30] sm:$0xff] }
 0x90a   : > { %v4051_v46 = vpack.c.bf16 %v2573_v39, %v2569_v35  ;;  %v4083_v51 = vpack.c.bf16 %v2575_v42, %v2571_v41  ;;  %v2609_v34 = vld [vmem:[#allocation8 + $0x140] sm:$0xff]  ;;  %v4101_v41 = vpack.c.bf16 %v2616_v36, %v2612_v37  ;;  %v2611_v42 = vld [vmem:[#allocation8 + $0x150] sm:$0xff]  ;;  %v3002_v37 = vld [vmem:[#allocation8 + $0x498] sm:$0xff] }
 0x90b   : > { %v2467_v53 = vmax.f32 %v2466_v45, 0.0  ;;  %v2580_v45 = vld [vmem:[#allocation8 + $0x58] sm:$0xff]  ;;  %v2613_v35 = vld [vmem:[#allocation8 + $0x160] sm:$0xff]  ;;  %v2997_v49 = vld [vmem:[#allocation8 + $0x470] sm:$0xff] }
 0x90c   : > { %v3006_v36 = vld [vmem:[#allocation8 + $0x4b8] sm:$0xff] }
 0x90d   : > { %3805 = vmatprep.subr.mxu1 %v2467_v53 }
 0x90e   : > { %3806 = vmatpush3.msra.mxu1 %v2467_v53  ;;  %v2581_v53 = vld [vmem:[#allocation8 + $0x60] sm:$0xff] }
 0x90f   : > { %3808 = vmatmul.mubr.msk.f32.vlgmr.msra.gmra.mrb[8].mxu1 %vm1650_vm10, %v2469_v14  ;;  %3986 = vmatprep.subr.bf16.mxu1 %v3985_v54  ;;  %v4053_v54 = vpack.c.bf16 %v2582_v44, %v2578_v43  ;;  %v4085_v14 = vpack.c.bf16 %v2584_v3, %v2580_v45  ;;  %v2615_v43 = vld [vmem:[#allocation8 + $0x170] sm:$0xff]  ;;  %v2618_v44 = vld [vmem:[#allocation8 + $0x188] sm:$0xff]  ;;  %v2620_v3 = vld [vmem:[#allocation8 + $0x198] sm:$0xff] }
 0x910   : > { %3810 = vmatprep.mubr.msk.f32.mxu1 %vm1650_vm10, %v2470_v13  ;;  %3988 = vmatpush1.bf16.msra.mxu1 %v3987_v24  ;;  %v2579_v24 = vld [vmem:[#allocation8 + $0x50] sm:$0xff]  ;;  %v2622_v45 = vld [vmem:[#allocation8 + $0x1a8] sm:$0xff] }
 0x911   : > { %3990 = vmatprep.subr.bf16.mxu1 %v3989_v58  ;;  %v2583_v13 = vld [vmem:[#allocation8 + $0x70] sm:$0xff]  ;;  %v2586_v58 = vld [vmem:[#allocation8 + $0x88] sm:$0xff] }
 0x912   : > { %v4057_v48 = vpack.c.bf16 %v2590_v60, %v2586_v58  ;;  %v2623_v58 = vld [vmem:[#allocation8 + $0x1b0] sm:$0xff]  ;;  %v2630_v60 = vld [vmem:[#allocation8 + $0x1e8] sm:$0xff] }
 0x913   : > { %3811 = vmatmul.mubr.msk.f32.gmra.mrb[10].mxu1 %vm1650_vm10, %v2471_v56 }
 0x914   : > { %3992 = vmatpush1.bf16.msra.mxu1 %v3991_v57  ;;  %2762 = vmatprep.mubr.f32.mxu1 %v4506_v38  ;;  %v4055_v57 = vpack.c.bf16 %v2581_v53, %v2577_v52  ;;  %v4103_v52 = vpack.c.bf16 %v2615_v43, %v2611_v42  ;;  %v2617_v53 = vld [vmem:[#allocation8 + $0x180] sm:$0xff]  ;;  %v3001_v42 = vld [vmem:[#allocation8 + $0x490] sm:$0xff] }
 0x915   : > { %3994 = vmatprep.subr.bf16.mxu1 %v3993_v0  ;;  %v4087_v0 = vpack.c.bf16 %v2583_v13, %v2579_v24  ;;  %v2619_v13 = vld [vmem:[#allocation8 + $0x190] sm:$0xff] }
 0x916   : > { %v3005_v43 = vld [vmem:[#allocation8 + $0x4b0] sm:$0xff] }
 0x918   : > { %3996 = vmatpush1.bf16.msra.mxu1 %v3995_v47  ;;  %v2587_v47 = vld [vmem:[#allocation8 + $0x90] sm:$0xff] }
 0x919   : > { %3998 = vmatprep.subr.bf16.mxu1 %v3997_v12  ;;  %v2591_v12 = vld [vmem:[#allocation8 + $0xb0] sm:$0xff] }
 0x91a   : > { %v4091_v11 = vpack.c.bf16 %v2591_v12, %v2587_v47  ;;  %v2627_v47 = vld [vmem:[#allocation8 + $0x1d0] sm:$0xff] }
 0x91b   : > { %v2631_v12 = vld [vmem:[#allocation8 + $0x1f0] sm:$0xff] }
 0x91c   : > { %4000 = vmatpush1.bf16.msra.mxu1 %v3999_v62 }
 0x91d   : > { %4002 = vmatprep.subr.bf16.mxu1 %v4001_v15 }
 0x920   : > { %4004 = vmatpush1.bf16.msra.mxu1 %v4003_v23  ;;  %v4061_v23 = vpack.c.bf16 %v2598_v19, %v2594_v16  ;;  %v2984_v16 = vld [vmem:[#allocation8 + $0x408] sm:$0xff] }
 0x921   : > { %4006 = vmatprep.subr.bf16.mxu1 %v4005_v50  ;;  %v4093_v50 = vpack.c.bf16 %v2600_v17, %v2596_v61  ;;  %v2988_v19 = vld [vmem:[#allocation8 + $0x428] sm:$0xff]  ;;  %v2986_v61 = vld [vmem:[#allocation8 + $0x418] sm:$0xff] }
 0x922   : > { %v2990_v17 = vld [vmem:[#allocation8 + $0x438] sm:$0xff] }
 0x924   : > { %4008 = vmatpush1.bf16.msra.mxu1 %v4007_v4  ;;  %v2604_v4 = vld [vmem:[#allocation8 + $0x118] sm:$0xff] }
 0x925   : > { %4010 = vmatprep.subr.bf16.mxu1 %v4009_v5  ;;  %v2608_v5 = vld [vmem:[#allocation8 + $0x138] sm:$0xff] }
 0x928   : > { %4012 = vmatpush1.bf16.msra.mxu1 %v4011_v30  ;;  %v4065_v30 = vpack.c.bf16 %v2606_v7, %v2602_v27  ;;  %v2992_v27 = vld [vmem:[#allocation8 + $0x448] sm:$0xff] }
 0x929   : > { %4014 = vmatprep.subr.bf16.mxu1 %v4013_v31  ;;  %v4097_v31 = vpack.c.bf16 %v2608_v5, %v2604_v4  ;;  %v2996_v7 = vld [vmem:[#allocation8 + $0x468] sm:$0xff]  ;;  %v2994_v4 = vld [vmem:[#allocation8 + $0x458] sm:$0xff] }
 0x92a   : > { %v2998_v5 = vld [vmem:[#allocation8 + $0x478] sm:$0xff] }
 0x92c   : > { %4016 = vmatpush1.bf16.msra.mxu1 %v4015_v33  ;;  %v2610_v33 = vld [vmem:[#allocation8 + $0x148] sm:$0xff] }
 0x92d   : > { %4050 = vmatprep.subr.bf16.mxu1 %v4049_v29  ;;  %v4067_v29 = vpack.c.bf16 %v2605_v28, %v2601_v8  ;;  %v4069_v39 = vpack.c.bf16 %v2614_v22, %v2610_v33  ;;  %v2991_v8 = vld [vmem:[#allocation8 + $0x440] sm:$0xff]  ;;  %v3000_v33 = vld [vmem:[#allocation8 + $0x488] sm:$0xff] }
 0x92e   : > { %v2995_v28 = vld [vmem:[#allocation8 + $0x460] sm:$0xff]  ;;  %v3004_v22 = vld [vmem:[#allocation8 + $0x4a8] sm:$0xff] }
 0x9e2   : > { %v3809_v59 = vpop.f32.mrb[8].mxu1 }
 0x9e3   : > { %2763 = vmatmul.mubr.f32.vlgmr.msra.gmra.mrb[12].mxu1 %v3809_v59  ;;  %2834 = vmatmul.mubr.f32.vlgmr.msra.gmra.mrb[16].mxu0 %v3809_v59  ;;  %v5414_v56 = vpop.f32.mrb[9].mxu1  ;;  %v2626_v59 = vld [vmem:[#allocation8 + $0x1c8] sm:$0xff] }
 0x9e4   : > { %4052 = vmatpush1.bf16.msra.mxu1 %v4051_v46  ;;  %4084 = vmatpush1.bf16.msra.mxu0 %v4083_v51  ;;  %v2624_v46 = vld [vmem:[#allocation8 + $0x1b8] sm:$0xff]  ;;  %v4071_v51 = vpack.c.bf16 %v2613_v35, %v2609_v34  ;;  %v2999_v34 = vld [vmem:[#allocation8 + $0x480] sm:$0xff] }
 0x9e5   : > { %4054 = vmatprep.subr.bf16.mxu1 %v4053_v54  ;;  %4086 = vmatprep.subr.bf16.mxu0 %v4085_v14  ;;  %v2621_v54 = vld [vmem:[#allocation8 + $0x1a0] sm:$0xff]  ;;  %v4073_v14 = vpack.c.bf16 %v2622_v45, %v2618_v44  ;;  %v4105_v24 = vpack.c.bf16 %v2624_v46, %v2620_v3  ;;  %v3008_v44 = vld [vmem:[#allocation8 + $0x4c8] sm:$0xff]  ;;  %v3010_v3 = vld [vmem:[#allocation8 + $0x4d8] sm:$0xff] }
 0x9e6   : > { %2904 = vmatprep.mubr.f32.mxu1 %v4506_v38  ;;  %2975 = vmatprep.mubr.f32.mxu0 %v4506_v38  ;;  %v5418_v62 = vpop.f32.mrb[10].mxu1  ;;  %v3003_v35 = vld [vmem:[#allocation8 + $0x4a0] sm:$0xff]  ;;  %v3012_v45 = vld [vmem:[#allocation8 + $0x4e8] sm:$0xff]  ;;  %v3014_v46 = vld [vmem:[#allocation8 + $0x4f8] sm:$0xff] }
 0x9e7   : > { %v5420_v15 = vpop.f32.mrb[11].mxu1 }
 0x9e8   : > { %4056 = vmatpush1.bf16.msra.mxu1 %v4055_v57  ;;  %4088 = vmatpush1.bf16.msra.mxu0 %v4087_v0  ;;  %v4075_v57 = vpack.c.bf16 %v2621_v54, %v2617_v53  ;;  %v4107_v0 = vpack.c.bf16 %v2623_v58, %v2619_v13  ;;  %v3011_v53 = vld [vmem:[#allocation8 + $0x4e0] sm:$0xff]  ;;  %v4125_v54 = vpack.c.bf16 %v3012_v45, %v3008_v44  ;;  %v3013_v13 = vld [vmem:[#allocation8 + $0x4f0] sm:$0xff]  ;;  %v3016_v58 = vld [vmem:[#allocation8 + $0x508] sm:$0xff] }
 0x9e9   : > { %4058 = vmatprep.subr.bf16.mxu1 %v4057_v48  ;;  %4090 = vmatprep.subr.bf16.mxu0 %v4089_v10  ;;  %v4077_v48 = vpack.c.bf16 %v2630_v60, %v2626_v59  ;;  %v4109_v10 = vpack.c.bf16 %v2632_v63, %v2628_v6  ;;  %v3020_v59 = vld [vmem:[#allocation8 + $0x528] sm:$0xff]  ;;  %v3018_v60 = vld [vmem:[#allocation8 + $0x518] sm:$0xff] }
 0x9ea   : > { %v3022_v6 = vld [vmem:[#allocation8 + $0x538] sm:$0xff]  ;;  %v3199_v44 = vld [vmem:[#allocation8 + $0x628] sm:$0xff] }
 0x9eb   : > { %v3197_v45 = vld [vmem:[#allocation8 + $0x618] sm:$0xff] }
 0x9ec   : > { %4060 = vmatpush1.bf16.msra.mxu1 %v4059_v18  ;;  %4092 = vmatpush1.bf16.msra.mxu0 %v4091_v11  ;;  %v4079_v18 = vpack.c.bf16 %v2629_v9, %v2625_v1  ;;  %v4111_v11 = vpack.c.bf16 %v2631_v12, %v2627_v47  ;;  %v3019_v1 = vld [vmem:[#allocation8 + $0x520] sm:$0xff]  ;;  %v4129_v9 = vpack.c.bf16 %v3020_v59, %v3016_v58  ;;  %v3021_v47 = vld [vmem:[#allocation8 + $0x530] sm:$0xff]  ;;  %v3024_v12 = vld [vmem:[#allocation8 + $0x548] sm:$0xff] }
 0x9ed   : > { %4062 = vmatprep.subr.bf16.mxu1 %v4061_v23  ;;  %4094 = vmatprep.subr.bf16.mxu0 %v4093_v50  ;;  %v4113_v23 = vpack.c.bf16 %v2988_v19, %v2984_v16  ;;  %v4145_v50 = vpack.c.bf16 %v2990_v17, %v2986_v61  ;;  %v3028_v16 = vld [vmem:[#allocation8 + $0x568] sm:$0xff]  ;;  %v3026_v19 = vld [vmem:[#allocation8 + $0x558] sm:$0xff] }
 0x9ee   : > { %v3030_v61 = vld [vmem:[#allocation8 + $0x578] sm:$0xff]  ;;  %v3207_v58 = vld [vmem:[#allocation8 + $0x668] sm:$0xff] }
 0x9ef   : > { %v3205_v59 = vld [vmem:[#allocation8 + $0x658] sm:$0xff] }
 0x9f0   : > { %4064 = vmatpush1.bf16.msra.mxu1 %v4063_v2  ;;  %4096 = vmatpush1.bf16.msra.mxu0 %v4095_v55  ;;  %v4115_v2 = vpack.c.bf16 %v2987_v21, %v2983_v20  ;;  %v4147_v55 = vpack.c.bf16 %v2989_v26, %v2985_v25  ;;  %v3027_v20 = vld [vmem:[#allocation8 + $0x560] sm:$0xff]  ;;  %v4133_v21 = vpack.c.bf16 %v3028_v16, %v3024_v12  ;;  %v3029_v25 = vld [vmem:[#allocation8 + $0x570] sm:$0xff]  ;;  %v3032_v26 = vld [vmem:[#allocation8 + $0x588] sm:$0xff] }
 0x9f1   : > { %4066 = vmatprep.subr.bf16.mxu1 %v4065_v30  ;;  %4098 = vmatprep.subr.bf16.mxu0 %v4097_v31  ;;  %v4117_v30 = vpack.c.bf16 %v2996_v7, %v2992_v27  ;;  %v4149_v31 = vpack.c.bf16 %v2998_v5, %v2994_v4  ;;  %v3036_v27 = vld [vmem:[#allocation8 + $0x5a8] sm:$0xff]  ;;  %v3034_v7 = vld [vmem:[#allocation8 + $0x598] sm:$0xff] }
 0x9f2   : > { %v3038_v4 = vld [vmem:[#allocation8 + $0x5b8] sm:$0xff]  ;;  %v3215_v12 = vld [vmem:[#allocation8 + $0x6a8] sm:$0xff] }
 0x9f3   : > { %v3213_v16 = vld [vmem:[#allocation8 + $0x698] sm:$0xff] }
 0x9f4   : > { %4068 = vmatpush1.bf16.msra.mxu1 %v4067_v29  ;;  %4100 = vmatpush1.bf16.msra.mxu0 %v4099_v40  ;;  %v4119_v29 = vpack.c.bf16 %v2995_v28, %v2991_v8  ;;  %v4151_v40 = vpack.c.bf16 %v2997_v49, %v2993_v32  ;;  %v3035_v8 = vld [vmem:[#allocation8 + $0x5a0] sm:$0xff]  ;;  %v4137_v28 = vpack.c.bf16 %v3036_v27, %v3032_v26  ;;  %v3037_v32 = vld [vmem:[#allocation8 + $0x5b0] sm:$0xff]  ;;  %v3040_v49 = vld [vmem:[#allocation8 + $0x5c8] sm:$0xff] }
 0x9f5   : > { %4070 = vmatprep.subr.bf16.mxu1 %v4069_v39  ;;  %4102 = vmatprep.subr.bf16.mxu0 %v4101_v41  ;;  %v4121_v39 = vpack.c.bf16 %v3004_v22, %v3000_v33  ;;  %v4153_v41 = vpack.c.bf16 %v3006_v36, %v3002_v37  ;;  %v3044_v33 = vld [vmem:[#allocation8 + $0x5e8] sm:$0xff]  ;;  %v3042_v22 = vld [vmem:[#allocation8 + $0x5d8] sm:$0xff] }
 0x9f6   : > { %v3046_v37 = vld [vmem:[#allocation8 + $0x5f8] sm:$0xff]  ;;  %v3223_v26 = vld [vmem:[#allocation8 + $0x6e8] sm:$0xff] }
 0x9f7   : > { %v3221_v27 = vld [vmem:[#allocation8 + $0x6d8] sm:$0xff] }
 0x9f8   : > { %4072 = vmatpush1.bf16.msra.mxu1 %v4071_v51  ;;  %4104 = vmatpush1.bf16.msra.mxu0 %v4103_v52  ;;  %v4155_v51 = vpack.c.bf16 %v3005_v43, %v3001_v42  ;;  %v3007_v52 = vld [vmem:[#allocation8 + $0x4c0] sm:$0xff]  ;;  %v3045_v42 = vld [vmem:[#allocation8 + $0x5f0] sm:$0xff]  ;;  %v3195_v43 = vld [vmem:[#allocation8 + $0x608] sm:$0xff] }
 0x9f9   : > { %4074 = vmatprep.subr.bf16.mxu1 %v4073_v14  ;;  %4106 = vmatprep.subr.bf16.mxu0 %v4105_v24  ;;  %v4157_v14 = vpack.c.bf16 %v3014_v46, %v3010_v3  ;;  %v3009_v24 = vld [vmem:[#allocation8 + $0x4d0] sm:$0xff]  ;;  %v4127_v63 = vpack.c.bf16 %v3011_v53, %v3007_v52  ;;  %v3201_v3 = vld [vmem:[#allocation8 + $0x638] sm:$0xff]  ;;  %v3198_v52 = vld [vmem:[#allocation8 + $0x620] sm:$0xff]  ;;  %v4177_v53 = vpack.c.bf16 %v3199_v44, %v3195_v43 }
 0x9fa   : > { %v3241_v43 = vld [vmem:[#allocation8 + $0x778] sm:$0xff] }
 0x9fc   : > { %4076 = vmatpush1.bf16.msra.mxu1 %v4075_v57  ;;  %4108 = vmatpush1.bf16.msra.mxu0 %v4107_v0  ;;  %v4159_v57 = vpack.c.bf16 %v3013_v13, %v3009_v24  ;;  %v3015_v0 = vld [vmem:[#allocation8 + $0x500] sm:$0xff]  ;;  %v3200_v24 = vld [vmem:[#allocation8 + $0x630] sm:$0xff]  ;;  %v3203_v13 = vld [vmem:[#allocation8 + $0x648] sm:$0xff] }
 0x9fd   : > { %4078 = vmatprep.subr.bf16.mxu1 %v4077_v48  ;;  %4110 = vmatprep.subr.bf16.mxu0 %v4109_v10  ;;  %v4161_v48 = vpack.c.bf16 %v3022_v6, %v3018_v60  ;;  %v3017_v10 = vld [vmem:[#allocation8 + $0x510] sm:$0xff]  ;;  %v4131_v17 = vpack.c.bf16 %v3019_v1, %v3015_v0  ;;  %v3209_v60 = vld [vmem:[#allocation8 + $0x678] sm:$0xff]  ;;  %v3206_v0 = vld [vmem:[#allocation8 + $0x660] sm:$0xff]  ;;  %v4181_v1 = vpack.c.bf16 %v3207_v58, %v3203_v13 }
 0x9fe   : > { %v3249_v13 = vld [vmem:[#allocation8 + $0x7b8] sm:$0xff] }
 0xa00   : > { %4080 = vmatpush1.bf16.msra.mxu1 %v4079_v18  ;;  %4112 = vmatpush1.bf16.msra.mxu0 %v4111_v11  ;;  %v4163_v18 = vpack.c.bf16 %v3021_v47, %v3017_v10  ;;  %v3023_v11 = vld [vmem:[#allocation8 + $0x540] sm:$0xff]  ;;  %v3208_v10 = vld [vmem:[#allocation8 + $0x670] sm:$0xff]  ;;  %v3211_v47 = vld [vmem:[#allocation8 + $0x688] sm:$0xff] }
 0xa01   : > { %4114 = vmatprep.subr.bf16.mxu1 %v4113_v23  ;;  %4146 = vmatprep.subr.bf16.mxu0 %v4145_v50  ;;  %v4165_v23 = vpack.c.bf16 %v3030_v61, %v3026_v19  ;;  %v3025_v50 = vld [vmem:[#allocation8 + $0x550] sm:$0xff]  ;;  %v4135_v5 = vpack.c.bf16 %v3027_v20, %v3023_v11  ;;  %v3217_v19 = vld [vmem:[#allocation8 + $0x6b8] sm:$0xff]  ;;  %v3214_v11 = vld [vmem:[#allocation8 + $0x6a0] sm:$0xff]  ;;  %v4185_v20 = vpack.c.bf16 %v3215_v12, %v3211_v47 }
 0xa02   : > { %v3257_v47 = vld [vmem:[#allocation8 + $0x7f8] sm:$0xff] }
 0xa03   : > { %2905 = vmatmul.mubr.f32.vlgmr.msra.gmra.mrb[12].mxu1 %v5414_v56  ;;  %2976 = vmatmul.mubr.f32.vlgmr.msra.gmra.mrb[16].mxu0 %v5414_v56  ;;  %v4123_v56 = vpack.c.bf16 %v3003_v35, %v2999_v34  ;;  %v3043_v34 = vld [vmem:[#allocation8 + $0x5e0] sm:$0xff]  ;;  %v4141_v35 = vpack.c.bf16 %v3044_v33, %v3040_v49  ;;  %v3229_v49 = vld [vmem:[#allocation8 + $0x718] sm:$0xff] }
 0xa04   : > { %4116 = vmatpush1.bf16.msra.mxu1 %v4115_v2  ;;  %4148 = vmatpush1.bf16.msra.mxu0 %v4147_v55  ;;  %v4167_v2 = vpack.c.bf16 %v3029_v25, %v3025_v50  ;;  %v3031_v55 = vld [vmem:[#allocation8 + $0x580] sm:$0xff]  ;;  %v3216_v50 = vld [vmem:[#allocation8 + $0x6b0] sm:$0xff]  ;;  %v3219_v25 = vld [vmem:[#allocation8 + $0x6c8] sm:$0xff] }
 0xa05   : > { %4118 = vmatprep.subr.bf16.mxu1 %v4117_v30  ;;  %4150 = vmatprep.subr.bf16.mxu0 %v4149_v31  ;;  %v4169_v30 = vpack.c.bf16 %v3038_v4, %v3034_v7  ;;  %v3033_v31 = vld [vmem:[#allocation8 + $0x590] sm:$0xff]  ;;  %v4139_v36 = vpack.c.bf16 %v3035_v8, %v3031_v55  ;;  %v3225_v7 = vld [vmem:[#allocation8 + $0x6f8] sm:$0xff]  ;;  %v4189_v55 = vpack.c.bf16 %v3223_v26, %v3219_v25 }
 0xa06   : > { %3111 = vmatprep.mubr.f32.mxu1 %v4506_v38  ;;  %3182 = vmatprep.mubr.f32.mxu0 %v4506_v38  ;;  %v4221_v8 = vpack.c.bf16 %v3225_v7, %v3221_v27  ;;  %v3233_v33 = vld [vmem:[#allocation8 + $0x738] sm:$0xff] }
 0xa08   : > { %4120 = vmatpush1.bf16.msra.mxu1 %v4119_v29  ;;  %4152 = vmatpush1.bf16.msra.mxu0 %v4151_v40  ;;  %v4171_v29 = vpack.c.bf16 %v3037_v32, %v3033_v31  ;;  %v3039_v40 = vld [vmem:[#allocation8 + $0x5c0] sm:$0xff]  ;;  %v3227_v31 = vld [vmem:[#allocation8 + $0x708] sm:$0xff] }
 0xa09   : > { %4122 = vmatprep.subr.bf16.mxu1 %v4121_v39  ;;  %4154 = vmatprep.subr.bf16.mxu0 %v4153_v41  ;;  %v4173_v39 = vpack.c.bf16 %v3046_v37, %v3042_v22  ;;  %v3041_v41 = vld [vmem:[#allocation8 + $0x5d0] sm:$0xff]  ;;  %v4143_v46 = vpack.c.bf16 %v3043_v34, %v3039_v40  ;;  %v3231_v32 = vld [vmem:[#allocation8 + $0x728] sm:$0xff]  ;;  %v3226_v37 = vld [vmem:[#allocation8 + $0x700] sm:$0xff]  ;;  %v4225_v40 = vpack.c.bf16 %v3233_v33, %v3229_v49 }
 0xa0a   : > { %v3228_v34 = vld [vmem:[#allocation8 + $0x710] sm:$0xff] }
 0xa0c   : > { %4124 = vmatpush1.bf16.msra.mxu1 %v4123_v56  ;;  %4156 = vmatpush1.bf16.msra.mxu0 %v4155_v51  ;;  %v4175_v56 = vpack.c.bf16 %v3045_v42, %v3041_v41  ;;  %v3194_v51 = vld [vmem:[#allocation8 + $0x600] sm:$0xff]  ;;  %v3239_v41 = vld [vmem:[#allocation8 + $0x768] sm:$0xff]  ;;  %v3237_v42 = vld [vmem:[#allocation8 + $0x758] sm:$0xff] }
 0xa0d   : > { %4126 = vmatprep.subr.bf16.mxu1 %v4125_v54  ;;  %4158 = vmatprep.subr.bf16.mxu0 %v4157_v14  ;;  %v4209_v54 = vpack.c.bf16 %v3201_v3, %v3197_v45  ;;  %v3196_v14 = vld [vmem:[#allocation8 + $0x610] sm:$0xff]  ;;  %v4179_v6 = vpack.c.bf16 %v3198_v52, %v3194_v51  ;;  %v3234_v3 = vld [vmem:[#allocation8 + $0x740] sm:$0xff]  ;;  %v4229_v51 = vpack.c.bf16 %v3241_v43, %v3237_v42 }
 0xa0e   : > { %v3236_v52 = vld [vmem:[#allocation8 + $0x750] sm:$0xff] }
 0xa10   : > { %4128 = vmatpush1.bf16.msra.mxu1 %v4127_v63  ;;  %4160 = vmatpush1.bf16.msra.mxu0 %v4159_v57  ;;  %v4211_v63 = vpack.c.bf16 %v3200_v24, %v3196_v14  ;;  %v3202_v57 = vld [vmem:[#allocation8 + $0x640] sm:$0xff]  ;;  %v3247_v14 = vld [vmem:[#allocation8 + $0x7a8] sm:$0xff]  ;;  %v3245_v24 = vld [vmem:[#allocation8 + $0x798] sm:$0xff] }
 0xa11   : > { %4130 = vmatprep.subr.bf16.mxu1 %v4129_v9  ;;  %4162 = vmatprep.subr.bf16.mxu0 %v4161_v48  ;;  %v4213_v9 = vpack.c.bf16 %v3209_v60, %v3205_v59  ;;  %v3204_v48 = vld [vmem:[#allocation8 + $0x650] sm:$0xff]  ;;  %v4183_v61 = vpack.c.bf16 %v3206_v0, %v3202_v57  ;;  %v3242_v60 = vld [vmem:[#allocation8 + $0x780] sm:$0xff]  ;;  %v4233_v57 = vpack.c.bf16 %v3249_v13, %v3245_v24 }
 0xa12   : > { %v3244_v0 = vld [vmem:[#allocation8 + $0x790] sm:$0xff] }
 0xa14   : > { %4132 = vmatpush1.bf16.msra.mxu1 %v4131_v17  ;;  %4164 = vmatpush1.bf16.msra.mxu0 %v4163_v18  ;;  %v4215_v17 = vpack.c.bf16 %v3208_v10, %v3204_v48  ;;  %v3210_v18 = vld [vmem:[#allocation8 + $0x680] sm:$0xff]  ;;  %v3255_v48 = vld [vmem:[#allocation8 + $0x7e8] sm:$0xff]  ;;  %v3253_v10 = vld [vmem:[#allocation8 + $0x7d8] sm:$0xff] }
 0xa15   : > { %4134 = vmatprep.subr.bf16.mxu1 %v4133_v21  ;;  %4166 = vmatprep.subr.bf16.mxu0 %v4165_v23  ;;  %v4217_v21 = vpack.c.bf16 %v3217_v19, %v3213_v16  ;;  %v3212_v23 = vld [vmem:[#allocation8 + $0x690] sm:$0xff]  ;;  %v3250_v19 = vld [vmem:[#allocation8 + $0x7c0] sm:$0xff] }
 0xa16   : > { %v4219_v4 = vpack.c.bf16 %v3216_v50, %v3212_v23  ;;  %v3408_v50 = vpop.permute.xlu0 %3407 }
 0xa18   : > { %4136 = vmatpush1.bf16.msra.mxu1 %v4135_v5  ;;  %4168 = vmatpush1.bf16.msra.mxu0 %v4167_v2  ;;  %v3218_v5 = vld [vmem:[#allocation8 + $0x6c0] sm:$0xff] }
 0xa19   : > { %4138 = vmatprep.subr.bf16.mxu1 %v4137_v28  ;;  %4170 = vmatprep.subr.bf16.mxu0 %v4169_v30  ;;  %v3222_v2 = vld [vmem:[#allocation8 + $0x6e0] sm:$0xff]  ;;  %v3220_v28 = vld [vmem:[#allocation8 + $0x6d0] sm:$0xff] }
 0xa1a   : > { %v3224_v30 = vld [vmem:[#allocation8 + $0x6f0] sm:$0xff]  ;;  %v4191_v22 = vpack.c.bf16 %v3222_v2, %v3218_v5 }
 0xa1c   : > { %4140 = vmatpush1.bf16.msra.mxu1 %v4139_v36  ;;  %4172 = vmatpush1.bf16.msra.mxu0 %v4171_v29  ;;  %v3230_v36 = vld [vmem:[#allocation8 + $0x720] sm:$0xff]  ;;  %v4193_v29 = vpack.c.bf16 %v3231_v32, %v3227_v31 }
 0xa1d   : > { %4142 = vmatprep.subr.bf16.mxu1 %v4141_v35  ;;  %4174 = vmatprep.subr.bf16.mxu0 %v4173_v39  ;;  %v3232_v35 = vld [vmem:[#allocation8 + $0x730] sm:$0xff]  ;;  %v3235_v39 = vld [vmem:[#allocation8 + $0x748] sm:$0xff]  ;;  %v4195_v44 = vpack.c.bf16 %v3230_v36, %v3226_v37 }
 0xa1e   : > { %v4227_v45 = vpack.c.bf16 %v3232_v35, %v3228_v34 }
 0xa20   : > { %4144 = vmatpush1.bf16.msra.mxu1 %v4143_v46  ;;  %4176 = vmatpush1.bf16.msra.mxu0 %v4175_v56  ;;  %v3238_v46 = vld [vmem:[#allocation8 + $0x760] sm:$0xff]  ;;  %v4197_v56 = vpack.c.bf16 %v3239_v41, %v3235_v39 }
 0xa21   : > { %4178 = vmatprep.subr.bf16.mxu1 %v4177_v53  ;;  %4210 = vmatprep.subr.bf16.mxu0 %v4209_v54  ;;  %v3240_v53 = vld [vmem:[#allocation8 + $0x770] sm:$0xff]  ;;  %v3243_v54 = vld [vmem:[#allocation8 + $0x788] sm:$0xff]  ;;  %v4199_v58 = vpack.c.bf16 %v3238_v46, %v3234_v3 }
 0xa22   : > { %v4231_v59 = vpack.c.bf16 %v3240_v53, %v3236_v52 }
 0xa23   : > { %3112 = vmatmul.mubr.f32.vlgmr.msra.gmra.mrb[12].mxu1 %v5420_v15  ;;  %3183 = vmatmul.mubr.f32.vlgmr.msra.gmra.mrb[16].mxu0 %v5420_v15  ;;  %v4187_v15 = vpack.c.bf16 %v3214_v11, %v3210_v18  ;;  %v3254_v18 = vld [vmem:[#allocation8 + $0x7e0] sm:$0xff]  ;;  %v3252_v11 = vld [vmem:[#allocation8 + $0x7d0] sm:$0xff] }
 0xa24   : > { %4180 = vmatpush1.bf16.msra.mxu1 %v4179_v6  ;;  %4212 = vmatpush1.bf16.msra.mxu0 %v4211_v63  ;;  %v3246_v6 = vld [vmem:[#allocation8 + $0x7a0] sm:$0xff]  ;;  %v4201_v63 = vpack.c.bf16 %v3247_v14, %v3243_v54 }
 0xa25   : > { %4182 = vmatprep.subr.bf16.mxu1 %v4181_v1  ;;  %4214 = vmatprep.subr.bf16.mxu0 %v4213_v9  ;;  %v3248_v1 = vld [vmem:[#allocation8 + $0x7b0] sm:$0xff]  ;;  %v3251_v9 = vld [vmem:[#allocation8 + $0x7c8] sm:$0xff]  ;;  %v4203_v12 = vpack.c.bf16 %v3246_v6, %v3242_v60 }
 0xa26   : > { %3322 = vmatprep.mubr.f32.mxu1 %v4506_v38  ;;  %3393 = vmatprep.mubr.f32.mxu0 %v4506_v38  ;;  %v4223_v38 = vpack.c.bf16 %v3224_v30, %v3220_v28  ;;  %v4235_v16 = vpack.c.bf16 %v3248_v1, %v3244_v0 }
 0xa28   : > { %4184 = vmatpush1.bf16.msra.mxu1 %v4183_v61  ;;  %4216 = vmatpush1.bf16.msra.mxu0 %v4215_v17  ;;  %v4205_v61 = vpack.c.bf16 %v3255_v48, %v3251_v9  ;;  %v4237_v17 = vpack.c.bf16 %v3257_v47, %v3253_v10 }
 0xa29   : > { %4186 = vmatprep.subr.bf16.mxu1 %v4185_v20  ;;  %4218 = vmatprep.subr.bf16.mxu0 %v4217_v21  ;;  %v3256_v20 = vld [vmem:[#allocation8 + $0x7f0] sm:$0xff]  ;;  %v4207_v21 = vpack.c.bf16 %v3254_v18, %v3250_v19 }
 0xa2a   : > { %v4239_v23 = vpack.c.bf16 %v3256_v20, %v3252_v11 }
 0xa2c   : > { %4188 = vmatpush1.bf16.msra.mxu1 %v4187_v15  ;;  %4220 = vmatpush1.bf16.msra.mxu0 %v4219_v4 }
 0xa2d   : > { %4190 = vmatprep.subr.bf16.mxu1 %v4189_v55  ;;  %4222 = vmatprep.subr.bf16.mxu0 %v4221_v8 }
 0xa30   : > { %4192 = vmatpush1.bf16.msra.mxu1 %v4191_v22  ;;  %4224 = vmatpush1.bf16.msra.mxu0 %v4223_v38 }
 0xa31   : > { %4194 = vmatprep.subr.bf16.mxu1 %v4193_v29  ;;  %4226 = vmatprep.subr.bf16.mxu0 %v4225_v40 }
 0xa34   : > { %4196 = vmatpush1.bf16.msra.mxu1 %v4195_v44  ;;  %4228 = vmatpush1.bf16.msra.mxu0 %v4227_v45 }
 0xa35   : > { %4198 = vmatprep.subr.bf16.mxu1 %v4197_v56  ;;  %4230 = vmatprep.subr.bf16.mxu0 %v4229_v51 }
 0xa38   : > { %4200 = vmatpush1.bf16.msra.mxu1 %v4199_v58  ;;  %4232 = vmatpush1.bf16.msra.mxu0 %v4231_v59 }
 0xa39   : > { %4202 = vmatprep.subr.bf16.mxu1 %v4201_v63  ;;  %4234 = vmatprep.subr.bf16.mxu0 %v4233_v57 }
 0xa3c   : > { %4204 = vmatpush1.bf16.msra.mxu1 %v4203_v12  ;;  %4236 = vmatpush1.bf16.msra.mxu0 %v4235_v16 }
 0xa3d   : > { %4206 = vmatprep.subr.bf16.mxu1 %v4205_v61  ;;  %4238 = vmatprep.subr.bf16.mxu0 %v4237_v17 }
 0xa40   : > { %4208 = vmatpush1.bf16.msra.mxu1 %v4207_v21  ;;  %4240 = vmatpush1.bf16.msra.mxu0 %v4239_v23 }
 0xa43   : > { %3323 = vmatmul.mubr.f32.vlgmr.msra.gmra.mrb[12].mxu1 %v5418_v62  ;;  %3394 = vmatmul.mubr.f32.vlgmr.msra.gmra.mrb[16].mxu0 %v5418_v62 }
 0xb16   : > { %v3324_v25 = vpop.f32.mrb[12].mxu1  ;;  %v3395_v26 = vpop.f32.mrb[16].mxu0 }
 0xb17   : > { %v3410_v27 = vadd.f32 %v3408_v50, %v3324_v25  ;;  %v3412_v7 = vadd.f32 %v3408_v50, %v3395_v26  ;;  %v3326_v15 = vpop.f32.mrb[13].mxu1  ;;  %v3397_v4 = vpop.f32.mrb[17].mxu0 }
 0xb18   : > { %v3411_v5 = vadd.f32 %v3408_v50, %v3326_v15  ;;  %v3413_v2 = vadd.f32 %v3408_v50, %v3397_v4 }
 0xb19   : > { %v3414_v55 = vsub.f32 0.0, %v3410_v27  ;;  %v3416_v8 = vsub.f32 0.0, %v3412_v7 }
 0xb1a   : > { %v3415_v28 = vsub.f32 0.0, %v3411_v5  ;;  %v3417_v30 = vsub.f32 0.0, %v3413_v2 }
 0xb1b   : > { %v3418_v31 = vmul.f32 1.442695, %v3414_v55  ;;  %v3422_v32 = vmul.f32 1.442695, %v3416_v8 }
 0xb1c   : > { %v3420_v49 = vmul.f32 1.442695, %v3415_v28  ;;  %v3424_v33 = vmul.f32 1.442695, %v3417_v30 }
 0xb1d   : > { %4439 = vpow2.f32 %v3418_v31 }
 0xb1e   : > { %4441 = vpow2.f32 %v3422_v32 }
 0xb1f   : > { %4443 = vpow2.f32 %v3420_v49 }
 0xb20   : > { %4445 = vpow2.f32 %v3424_v33 }
 0xb27   : > { %v4440_v62 = vpop.eup %4439 }
 0xb28   : > { %v4442_v22 = vpop.eup %4441  ;;  %v3426_v38 = vadd.f32 1.0, %v4440_v62 }
 0xb29   : > { %v4444_v37 = vpop.eup %4443  ;;  %v3428_v36 = vadd.f32 1.0, %v4442_v22 }
 0xb2a   : > { %v4446_v29 = vpop.eup %4445  ;;  %4447 = vrcp.f32 %v3426_v38  ;;  %v3427_v40 = vadd.f32 1.0, %v4444_v37 }
 0xb2b   : > { %4449 = vrcp.f32 %v3428_v36  ;;  %v3429_v34 = vadd.f32 1.0, %v4446_v29 }
 0xb2c   : > { %4451 = vrcp.f32 %v3427_v40 }
 0xb2d   : > { %4453 = vrcp.f32 %v3429_v34 }
 0xb34   : > { %v4448_v35 = vpop.eup %4447 }
 0xb35   : > { %v4450_v39 = vpop.eup %4449  ;;  %3434 = vst [vmem:[%s509_s26] sm:$0xff] %v4448_v35 }
 0xb36   : > { %v4452_v41 = vpop.eup %4451  ;;  %3436 = vst [vmem:[%s509_s26 + $0x10] sm:$0xff] %v4450_v39 }
 0xb37   : > { %v4454_v42 = vpop.eup %4453  ;;  %3435 = vst [vmem:[%s509_s26 + $0x8] sm:$0xff] %v4452_v41 }
 0xb38   : > { %3437 = vst [vmem:[%s509_s26 + $0x18] sm:$0xff] %v4454_v42 }
 0xb39 PF: > { %s26_s18 = sadd.s32 1, %s4493_s18  }
 0xb3a   : > { %p23_p3 = scmp.ge.s32.totalorder %s26_s18, 4  }
 0xb3c   :  { %25 = sbr.rel (!%p23_p3) target bundleno = 1 (0x1), region = 129 }
 0xb43   :  { %3459 = vsyncpa [#allocation9], 1 }
 0xb44   :  { %3461 = vsyncpa [#allocation9 + $0x1], 1 }

</bundles_post_ra>
